<compile_context>
chip_gen: v7x
topology: tpu7x:2x2x1
jax: 0.10.0
libtpu: 0.0.40
codegen_flags: <defaults>
</compile_context>

<pallas_src>
import functools

import jax
import jax.numpy as jnp
from jax.experimental import pallas as pl
from jax.experimental.pallas import tpu as pltpu


# ----------------------------------------------------------------------------
# Fused kernel: all LSTM layers + FC + sigmoid in one invocation.
#   in_refs : x_tm, (w_ih, w_hh, bias) per layer, w_fc, b_fc
#   out_ref : (B, O)
#   scratch : gx (T*Bp, 4Hp) f32, hseq (T*Bp, Hp) bf16
# ----------------------------------------------------------------------------
def _fused_lstm_fc_kernel(*refs, seq_len, batch, batch_pad, hidden_pad, num_layers):
    n_in = 1 + 3 * num_layers + 2
    x_ref = refs[0]                       # (T*Bp, D)   bf16, time-major rows
    w_fc_ref = refs[n_in - 2]             # (Hp, O)     bf16
    b_fc_ref = refs[n_in - 1]             # (1, O)      f32
    out_ref = refs[n_in]                  # (B, O)      f32
    gx_scr, hseq_scr = refs[n_in + 1], refs[n_in + 2]

    Bp, Hp = batch_pad, hidden_pad
    h = jnp.zeros((Bp, Hp), jnp.float32)

    for layer in range(num_layers):
        w_ih_ref = refs[1 + 3 * layer]    # (D_in, 4Hp) bf16
        w_hh_ref = refs[2 + 3 * layer]    # (Hp, 4Hp)   bf16
        b_ref = refs[3 + 3 * layer]       # (1, 4Hp)    f32

        inp_ref = x_ref if layer == 0 else hseq_scr

        # ---- hoisted input projection: ONE batched MXU pass over all timesteps ----
        gx_scr[...] = (
            jnp.dot(inp_ref[...], w_ih_ref[...],
                    preferred_element_type=jnp.float32)
            + b_ref[...])                                     # (T*Bp, 4Hp) f32

        # ---- serial recurrence; h/c live in vregs (T small & static -> unrolled) ----
        h = jnp.zeros((Bp, Hp), jnp.float32)
        c = jnp.zeros((Bp, Hp), jnp.float32)
        for t in range(seq_len):
            row = t * Bp                                      # 8-sublane aligned offset
            gates = gx_scr[pl.ds(row, Bp), :]                 # (Bp, 4Hp) f32
            if t > 0:                                         # h0 == 0 -> skip matmul at t=0
                gates = gates + jnp.dot(
                    h.astype(jnp.bfloat16), w_hh_ref[...],
                    preferred_element_type=jnp.float32)
            # gate slices are 128-lane aligned (Hp == 128 per gate block)
            i_g = jax.nn.sigmoid(gates[:, 0 * Hp:1 * Hp])
            f_g = jax.nn.sigmoid(gates[:, 1 * Hp:2 * Hp])
            g_g = jnp.tanh(gates[:, 2 * Hp:3 * Hp])
            o_g = jax.nn.sigmoid(gates[:, 3 * Hp:4 * Hp])
            c = f_g * c + i_g * g_g
            h = o_g * jnp.tanh(c)
            if layer < num_layers - 1:
                # hidden sequence stays in VMEM; feeds next layer's batched projection
                hseq_scr[pl.ds(row, Bp), :] = h.astype(jnp.bfloat16)

    # ---- final FC + sigmoid on the last layer's last-timestep hidden state ----
    logits = jnp.dot(h.astype(jnp.bfloat16), w_fc_ref[...],
                     preferred_element_type=jnp.float32) + b_fc_ref[...]
    out_ref[...] = jax.nn.sigmoid(logits)[:batch, :]


# ----------------------------------------------------------------------------
# Wrapper: pad/pack weights (gate-block padding H -> Hp, rows H -> Hp), pack x
# time-major with batch padded to a sublane multiple, and launch the fused kernel.
# ----------------------------------------------------------------------------
def _round_up(n, m):
    return (n + m - 1) // m * m


def _pad_gate_cols(w, h, hp):
    """(..., 4*h) with torch gate order i|f|g|o -> (..., 4*hp), each gate block 0-padded."""
    if hp == h:
        return w
    lead = w.shape[:-1]
    w4 = w.reshape(lead + (4, h))
    w4 = jnp.pad(w4, [(0, 0)] * len(lead) + [(0, 0), (0, hp - h)])
    return w4.reshape(lead + (4 * hp,))


@jax.jit
def lstm_forward(x, params):
    """x: (B, T, D) float32, batch_first.  Returns sigmoid(fc(lstm(x)[:, -1, :]))."""
    B, T, D = x.shape
    layers = params["layers"]
    L = len(layers)
    H = layers[0]["w_hh"].shape[0]
    O = params["w_fc"].shape[1]
    Hp = _round_up(H, 128)      # lane-aligned gate blocks
    Bp = _round_up(B, 8)        # sublane-aligned per-timestep rows

    # time-major, batch-padded, flattened to 2-D, bf16 for the MXU
    x_tm = jnp.transpose(x, (1, 0, 2))                       # (T, B, D)
    x_tm = jnp.pad(x_tm, ((0, 0), (0, Bp - B), (0, 0)))      # (T, Bp, D)
    x_tm = x_tm.reshape(T * Bp, D).astype(jnp.bfloat16)

    flat_w = []
    for l, lp in enumerate(layers):
        w_ih = _pad_gate_cols(lp["w_ih"], H, Hp)             # (D_in, 4Hp)
        if l > 0:
            w_ih = jnp.pad(w_ih, ((0, Hp - H), (0, 0)))      # input rows H -> Hp
        w_hh = jnp.pad(_pad_gate_cols(lp["w_hh"], H, Hp), ((0, Hp - H), (0, 0)))
        bias = _pad_gate_cols((lp["b_ih"] + lp["b_hh"]).reshape(1, 4 * H), H, Hp)
        flat_w += [w_ih.astype(jnp.bfloat16), w_hh.astype(jnp.bfloat16),
                   bias.astype(jnp.float32)]
    w_fc = jnp.pad(params["w_fc"], ((0, Hp - H), (0, 0))).astype(jnp.bfloat16)
    b_fc = params["b_fc"].reshape(1, O).astype(jnp.float32)

    in_arrays = [x_tm] + flat_w + [w_fc, b_fc]

    def _spec(shape):
        return pl.BlockSpec(shape, lambda i: (0,) * len(shape))

    kernel = functools.partial(
        _fused_lstm_fc_kernel, seq_len=T, batch=B, batch_pad=Bp,
        hidden_pad=Hp, num_layers=L)

    return pl.pallas_call(
        kernel,
        out_shape=jax.ShapeDtypeStruct((B, O), jnp.float32),
        grid_spec=pltpu.PrefetchScalarGridSpec(
            num_scalar_prefetch=0,
            grid=(1,),                                       # single fused invocation
            in_specs=[_spec(a.shape) for a in in_arrays],
            out_specs=_spec((B, O)),
            scratch_shapes=[
                pltpu.VMEM((T * Bp, 4 * Hp), jnp.float32),   # precomputed gates (gx)
                pltpu.VMEM((T * Bp, Hp), jnp.bfloat16),      # inter-layer hidden sequence
            ]),
        compiler_params=pltpu.CompilerParams(
            dimension_semantics=("arbitrary",)),
    )(*in_arrays)


# ----------------------------------------------------------------------------
# Parameter init (torch.nn.LSTM / nn.Linear style uniform init, stored transposed
# for x @ W with gate order i|f|g|o) and a pure-JAX f32 reference for validation.
# ----------------------------------------------------------------------------
def init_lstm_params(key, input_dim, hidden_dim, num_layers, output_dim):
    params = {"layers": []}
    bound = 1.0 / (hidden_dim ** 0.5)
    for layer in range(num_layers):
        d_in = input_dim if layer == 0 else hidden_dim
        key, k1, k2, k3, k4 = jax.random.split(key, 5)
        params["layers"].append({
            "w_ih": jax.random.uniform(k1, (d_in, 4 * hidden_dim), jnp.float32, -bound, bound),
            "w_hh": jax.random.uniform(k2, (hidden_dim, 4 * hidden_dim), jnp.float32, -bound, bound),
            "b_ih": jax.random.uniform(k3, (4 * hidden_dim,), jnp.float32, -bound, bound),
            "b_hh": jax.random.uniform(k4, (4 * hidden_dim,), jnp.float32, -bound, bound),
        })
    key, kf1, kf2 = jax.random.split(key, 3)
    params["w_fc"] = jax.random.uniform(kf1, (hidden_dim, output_dim), jnp.float32, -bound, bound)
    params["b_fc"] = jax.random.uniform(kf2, (output_dim,), jnp.float32, -bound, bound)
    return params


def lstm_reference(x, params):
    B, T, _ = x.shape
    h_seq, h = x, None
    for lp in params["layers"]:
        H = lp["w_hh"].shape[0]
        b = lp["b_ih"] + lp["b_hh"]
        h = jnp.zeros((B, H), jnp.float32)
        c = jnp.zeros((B, H), jnp.float32)
        outs = []
        for t in range(T):
            g = h_seq[:, t, :] @ lp["w_ih"] + h @ lp["w_hh"] + b
            i = jax.nn.sigmoid(g[:, 0 * H:1 * H])
            f = jax.nn.sigmoid(g[:, 1 * H:2 * H])
            gg = jnp.tanh(g[:, 2 * H:3 * H])
            o = jax.nn.sigmoid(g[:, 3 * H:4 * H])
            c = f * c + i * gg
            h = o * jnp.tanh(c)
            outs.append(h)
        h_seq = jnp.stack(outs, axis=1)
    return jax.nn.sigmoid(h @ params["w_fc"] + params["b_fc"])


if __name__ == "__main__":
    batch, seq, input_dim = 2, 8, 16
    hidden_dim, num_layers, output_dim = 32, 2, 4

    key = jax.random.PRNGKey(0)
    key, kx, kp = jax.random.split(key, 3)
    x = jax.random.normal(kx, (batch, seq, input_dim), jnp.float32)
    params = init_lstm_params(kp, input_dim, hidden_dim, num_layers, output_dim)

    out = jax.block_until_ready(lstm_forward(x, params))
    assert out.shape == (batch, output_dim)
    assert bool(jnp.all(jnp.isfinite(out)))

    ref = lstm_reference(x, params)            # f32 reference (kernel uses bf16 matmuls)
    assert bool(jnp.allclose(out, ref, atol=2e-2, rtol=0.0)), (out, ref)
    print("KERNEL_OK")
</pallas_src>

<mosaic_0001>
module attributes {stable_mosaic.version = 11 : i64} {
  func.func @_fused_lstm_fc_kernel(%arg0: i32, %arg1: memref<64x16xbf16, #tpu.memory_space<vmem>>, %arg2: memref<16x512xbf16, #tpu.memory_space<vmem>>, %arg3: memref<128x512xbf16, #tpu.memory_space<vmem>>, %arg4: memref<1x512xf32, #tpu.memory_space<vmem>>, %arg5: memref<128x512xbf16, #tpu.memory_space<vmem>>, %arg6: memref<128x512xbf16, #tpu.memory_space<vmem>>, %arg7: memref<1x512xf32, #tpu.memory_space<vmem>>, %arg8: memref<128x4xbf16, #tpu.memory_space<vmem>>, %arg9: memref<1x4xf32, #tpu.memory_space<vmem>>, %arg10: memref<2x4xf32, #tpu.memory_space<vmem>>, %arg11: memref<64x512xf32, #tpu.memory_space<vmem>>, %arg12: memref<64x128xbf16, #tpu.memory_space<vmem>>) attributes {dimension_semantics = [#tpu.dimension_semantics<arbitrary>], iteration_bounds = array<i64: 1>, scalar_prefetch = 0 : i64, scratch_operands = 2 : i64, tpu.core_type = #tpu.core_type<tc>, window_params = [{pipeline_mode = #tpu.pipeline_mode<synchronous>, transform_indices = @transform_0, window_bounds = array<i64: 64, 16>}, {pipeline_mode = #tpu.pipeline_mode<synchronous>, transform_indices = @transform_1, window_bounds = array<i64: 16, 512>}, {pipeline_mode = #tpu.pipeline_mode<synchronous>, transform_indices = @transform_2, window_bounds = array<i64: 128, 512>}, {pipeline_mode = #tpu.pipeline_mode<synchronous>, transform_indices = @transform_3, window_bounds = array<i64: 1, 512>}, {pipeline_mode = #tpu.pipeline_mode<synchronous>, transform_indices = @transform_4, window_bounds = array<i64: 128, 512>}, {pipeline_mode = #tpu.pipeline_mode<synchronous>, transform_indices = @transform_5, window_bounds = array<i64: 128, 512>}, {pipeline_mode = #tpu.pipeline_mode<synchronous>, transform_indices = @transform_6, window_bounds = array<i64: 1, 512>}, {pipeline_mode = #tpu.pipeline_mode<synchronous>, transform_indices = @transform_7, window_bounds = array<i64: 128, 4>}, {pipeline_mode = #tpu.pipeline_mode<synchronous>, transform_indices = @transform_8, window_bounds = array<i64: 1, 4>}, {pipeline_mode = #tpu.pipeline_mode<synchronous>, transform_indices = @transform_9, window_bounds = array<i64: 2, 4>}]} {
    %c0 = arith.constant 0 : index
    %c0_0 = arith.constant 0 : index
    %0 = vector.load %arg1[%c0, %c0_0] : memref<64x16xbf16, #tpu.memory_space<vmem>>, vector<64x16xbf16>
    %c0_1 = arith.constant 0 : index
    %c0_2 = arith.constant 0 : index
    %1 = vector.load %arg2[%c0_1, %c0_2] : memref<16x512xbf16, #tpu.memory_space<vmem>>, vector<16x512xbf16>
    %cst = arith.constant dense<0.000000e+00> : vector<64x512xf32>
    %2 = tpu.matmul %0, %1, %cst {dimension_numbers = #tpu.dot_dimension_numbers<[1], [0], [0], [1], [0, 0, 1, 1], [], []>} : vector<64x16xbf16>, vector<16x512xbf16>, vector<64x512xf32> -> vector<64x512xf32>
    %c0_3 = arith.constant 0 : index
    %c0_4 = arith.constant 0 : index
    %3 = vector.load %arg4[%c0_3, %c0_4] : memref<1x512xf32, #tpu.memory_space<vmem>>, vector<1x512xf32>
    %4 = vector.broadcast %3 : vector<1x512xf32> to vector<64x512xf32>
    %5 = arith.addf %2, %4 : vector<64x512xf32>
    %c0_5 = arith.constant 0 : index
    %c0_6 = arith.constant 0 : index
    %6 = vector.load %arg11[%c0_5, %c0_6] : memref<64x512xf32, #tpu.memory_space<vmem>>, vector<64x512xf32>
    tpu.vector_store %arg11[%c0_5, %c0_6], %5 {strides = array<i32>} : memref<64x512xf32, #tpu.memory_space<vmem>>, vector<64x512xf32>,
    %cst_7 = arith.constant 0.000000e+00 : f32
    %7 = vector.broadcast %cst_7 : f32 to vector<8x128xf32>
    %c0_8 = arith.constant 0 : index
    %c0_9 = arith.constant 0 : index
    %8 = vector.load %arg11[%c0_8, %c0_9] : memref<64x512xf32, #tpu.memory_space<vmem>>, vector<8x512xf32>
    %9 = vector.extract_strided_slice %8 {offsets = [0, 0], sizes = [8, 128], strides = [1, 1]} : vector<8x512xf32> to vector<8x128xf32>
    %10 = arith.negf %9 : vector<8x128xf32>
    %11 = math.exp %10 : vector<8x128xf32>
    %cst_10 = arith.constant 1.000000e+00 : f32
    %12 = vector.broadcast %cst_10 : f32 to vector<8x128xf32>
    %13 = arith.addf %12, %11 : vector<8x128xf32>
    %14 = arith.divf %12, %13 : vector<8x128xf32>
    %15 = vector.extract_strided_slice %8 {offsets = [0, 128], sizes = [8, 128], strides = [1, 1]} : vector<8x512xf32> to vector<8x128xf32>
    %16 = arith.negf %15 : vector<8x128xf32>
    %17 = math.exp %16 : vector<8x128xf32>
    %cst_11 = arith.constant 1.000000e+00 : f32
    %18 = vector.broadcast %cst_11 : f32 to vector<8x128xf32>
    %19 = arith.addf %18, %17 : vector<8x128xf32>
    %20 = arith.divf %18, %19 : vector<8x128xf32>
    %21 = vector.extract_strided_slice %8 {offsets = [0, 256], sizes = [8, 128], strides = [1, 1]} : vector<8x512xf32> to vector<8x128xf32>
    %22 = math.tanh %21 : vector<8x128xf32>
    %23 = vector.extract_strided_slice %8 {offsets = [0, 384], sizes = [8, 128], strides = [1, 1]} : vector<8x512xf32> to vector<8x128xf32>
    %24 = arith.negf %23 : vector<8x128xf32>
    %25 = math.exp %24 : vector<8x128xf32>
    %cst_12 = arith.constant 1.000000e+00 : f32
    %26 = vector.broadcast %cst_12 : f32 to vector<8x128xf32>
    %27 = arith.addf %26, %25 : vector<8x128xf32>
    %28 = arith.divf %26, %27 : vector<8x128xf32>
    %29 = arith.mulf %20, %7 : vector<8x128xf32>
    %30 = arith.mulf %14, %22 : vector<8x128xf32>
    %31 = arith.addf %29, %30 : vector<8x128xf32>
    %32 = math.tanh %31 : vector<8x128xf32>
    %33 = arith.mulf %28, %32 : vector<8x128xf32>
    %34 = arith.truncf %33 : vector<8x128xf32> to vector<8x128xbf16>
    %c0_13 = arith.constant 0 : index
    %c0_14 = arith.constant 0 : index
    %35 = vector.load %arg12[%c0_13, %c0_14] : memref<64x128xbf16, #tpu.memory_space<vmem>>, vector<8x128xbf16>
    tpu.vector_store %arg12[%c0_13, %c0_14], %34 {strides = array<i32>} : memref<64x128xbf16, #tpu.memory_space<vmem>>, vector<8x128xbf16>,
    %c8 = arith.constant 8 : index
    %c0_15 = arith.constant 0 : index
    %36 = vector.load %arg11[%c8, %c0_15] : memref<64x512xf32, #tpu.memory_space<vmem>>, vector<8x512xf32>
    %37 = arith.truncf %33 : vector<8x128xf32> to vector<8x128xbf16>
    %c0_16 = arith.constant 0 : index
    %c0_17 = arith.constant 0 : index
    %38 = vector.load %arg3[%c0_16, %c0_17] : memref<128x512xbf16, #tpu.memory_space<vmem>>, vector<128x512xbf16>
    %cst_18 = arith.constant dense<0.000000e+00> : vector<8x512xf32>
    %39 = tpu.matmul %37, %38, %cst_18 {dimension_numbers = #tpu.dot_dimension_numbers<[1], [0], [0], [1], [0, 0, 1, 1], [], []>} : vector<8x128xbf16>, vector<128x512xbf16>, vector<8x512xf32> -> vector<8x512xf32>
    %40 = arith.addf %36, %39 : vector<8x512xf32>
    %41 = vector.extract_strided_slice %40 {offsets = [0, 0], sizes = [8, 128], strides = [1, 1]} : vector<8x512xf32> to vector<8x128xf32>
    %42 = arith.negf %41 : vector<8x128xf32>
    %43 = math.exp %42 : vector<8x128xf32>
    %cst_19 = arith.constant 1.000000e+00 : f32
    %44 = vector.broadcast %cst_19 : f32 to vector<8x128xf32>
    %45 = arith.addf %44, %43 : vector<8x128xf32>
    %46 = arith.divf %44, %45 : vector<8x128xf32>
    %47 = vector.extract_strided_slice %40 {offsets = [0, 128], sizes = [8, 128], strides = [1, 1]} : vector<8x512xf32> to vector<8x128xf32>
    %48 = arith.negf %47 : vector<8x128xf32>
    %49 = math.exp %48 : vector<8x128xf32>
    %cst_20 = arith.constant 1.000000e+00 : f32
    %50 = vector.broadcast %cst_20 : f32 to vector<8x128xf32>
    %51 = arith.addf %50, %49 : vector<8x128xf32>
    %52 = arith.divf %50, %51 : vector<8x128xf32>
    %53 = vector.extract_strided_slice %40 {offsets = [0, 256], sizes = [8, 128], strides = [1, 1]} : vector<8x512xf32> to vector<8x128xf32>
    %54 = math.tanh %53 : vector<8x128xf32>
    %55 = vector.extract_strided_slice %40 {offsets = [0, 384], sizes = [8, 128], strides = [1, 1]} : vector<8x512xf32> to vector<8x128xf32>
    %56 = arith.negf %55 : vector<8x128xf32>
    %57 = math.exp %56 : vector<8x128xf32>
    %cst_21 = arith.constant 1.000000e+00 : f32
    %58 = vector.broadcast %cst_21 : f32 to vector<8x128xf32>
    %59 = arith.addf %58, %57 : vector<8x128xf32>
    %60 = arith.divf %58, %59 : vector<8x128xf32>
    %61 = arith.mulf %52, %31 : vector<8x128xf32>
    %62 = arith.mulf %46, %54 : vector<8x128xf32>
    %63 = arith.addf %61, %62 : vector<8x128xf32>
    %64 = math.tanh %63 : vector<8x128xf32>
    %65 = arith.mulf %60, %64 : vector<8x128xf32>
    %66 = arith.truncf %65 : vector<8x128xf32> to vector<8x128xbf16>
    %c8_22 = arith.constant 8 : index
    %c0_23 = arith.constant 0 : index
    %67 = vector.load %arg12[%c8_22, %c0_23] : memref<64x128xbf16, #tpu.memory_space<vmem>>, vector<8x128xbf16>
    tpu.vector_store %arg12[%c8_22, %c0_23], %66 {strides = array<i32>} : memref<64x128xbf16, #tpu.memory_space<vmem>>, vector<8x128xbf16>,
    %c16 = arith.constant 16 : index
    %c0_24 = arith.constant 0 : index
    %68 = vector.load %arg11[%c16, %c0_24] : memref<64x512xf32, #tpu.memory_space<vmem>>, vector<8x512xf32>
    %69 = arith.truncf %65 : vector<8x128xf32> to vector<8x128xbf16>
    %c0_25 = arith.constant 0 : index
    %c0_26 = arith.constant 0 : index
    %70 = vector.load %arg3[%c0_25, %c0_26] : memref<128x512xbf16, #tpu.memory_space<vmem>>, vector<128x512xbf16>
    %cst_27 = arith.constant dense<0.000000e+00> : vector<8x512xf32>
    %71 = tpu.matmul %69, %70, %cst_27 {dimension_numbers = #tpu.dot_dimension_numbers<[1], [0], [0], [1], [0, 0, 1, 1], [], []>} : vector<8x128xbf16>, vector<128x512xbf16>, vector<8x512xf32> -> vector<8x512xf32>
    %72 = arith.addf %68, %71 : vector<8x512xf32>
    %73 = vector.extract_strided_slice %72 {offsets = [0, 0], sizes = [8, 128], strides = [1, 1]} : vector<8x512xf32> to vector<8x128xf32>
    %74 = arith.negf %73 : vector<8x128xf32>
    %75 = math.exp %74 : vector<8x128xf32>
    %cst_28 = arith.constant 1.000000e+00 : f32
    %76 = vector.broadcast %cst_28 : f32 to vector<8x128xf32>
    %77 = arith.addf %76, %75 : vector<8x128xf32>
    %78 = arith.divf %76, %77 : vector<8x128xf32>
    %79 = vector.extract_strided_slice %72 {offsets = [0, 128], sizes = [8, 128], strides = [1, 1]} : vector<8x512xf32> to vector<8x128xf32>
    %80 = arith.negf %79 : vector<8x128xf32>
    %81 = math.exp %80 : vector<8x128xf32>
    %cst_29 = arith.constant 1.000000e+00 : f32
    %82 = vector.broadcast %cst_29 : f32 to vector<8x128xf32>
    %83 = arith.addf %82, %81 : vector<8x128xf32>
    %84 = arith.divf %82, %83 : vector<8x128xf32>
    %85 = vector.extract_strided_slice %72 {offsets = [0, 256], sizes = [8, 128], strides = [1, 1]} : vector<8x512xf32> to vector<8x128xf32>
    %86 = math.tanh %85 : vector<8x128xf32>
    %87 = vector.extract_strided_slice %72 {offsets = [0, 384], sizes = [8, 128], strides = [1, 1]} : vector<8x512xf32> to vector<8x128xf32>
    %88 = arith.negf %87 : vector<8x128xf32>
    %89 = math.exp %88 : vector<8x128xf32>
    %cst_30 = arith.constant 1.000000e+00 : f32
    %90 = vector.broadcast %cst_30 : f32 to vector<8x128xf32>
    %91 = arith.addf %90, %89 : vector<8x128xf32>
    %92 = arith.divf %90, %91 : vector<8x128xf32>
    %93 = arith.mulf %84, %63 : vector<8x128xf32>
    %94 = arith.mulf %78, %86 : vector<8x128xf32>
    %95 = arith.addf %93, %94 : vector<8x128xf32>
    %96 = math.tanh %95 : vector<8x128xf32>
    %97 = arith.mulf %92, %96 : vector<8x128xf32>
    %98 = arith.truncf %97 : vector<8x128xf32> to vector<8x128xbf16>
    %c16_31 = arith.constant 16 : index
    %c0_32 = arith.constant 0 : index
    %99 = vector.load %arg12[%c16_31, %c0_32] : memref<64x128xbf16, #tpu.memory_space<vmem>>, vector<8x128xbf16>
    tpu.vector_store %arg12[%c16_31, %c0_32], %98 {strides = array<i32>} : memref<64x128xbf16, #tpu.memory_space<vmem>>, vector<8x128xbf16>,
    %c24 = arith.constant 24 : index
    %c0_33 = arith.constant 0 : index
    %100 = vector.load %arg11[%c24, %c0_33] : memref<64x512xf32, #tpu.memory_space<vmem>>, vector<8x512xf32>
    %101 = arith.truncf %97 : vector<8x128xf32> to vector<8x128xbf16>
    %c0_34 = arith.constant 0 : index
    %c0_35 = arith.constant 0 : index
    %102 = vector.load %arg3[%c0_34, %c0_35] : memref<128x512xbf16, #tpu.memory_space<vmem>>, vector<128x512xbf16>
    %cst_36 = arith.constant dense<0.000000e+00> : vector<8x512xf32>
    %103 = tpu.matmul %101, %102, %cst_36 {dimension_numbers = #tpu.dot_dimension_numbers<[1], [0], [0], [1], [0, 0, 1, 1], [], []>} : vector<8x128xbf16>, vector<128x512xbf16>, vector<8x512xf32> -> vector<8x512xf32>
    %104 = arith.addf %100, %103 : vector<8x512xf32>
    %105 = vector.extract_strided_slice %104 {offsets = [0, 0], sizes = [8, 128], strides = [1, 1]} : vector<8x512xf32> to vector<8x128xf32>
    %106 = arith.negf %105 : vector<8x128xf32>
    %107 = math.exp %106 : vector<8x128xf32>
    %cst_37 = arith.constant 1.000000e+00 : f32
    %108 = vector.broadcast %cst_37 : f32 to vector<8x128xf32>
    %109 = arith.addf %108, %107 : vector<8x128xf32>
    %110 = arith.divf %108, %109 : vector<8x128xf32>
    %111 = vector.extract_strided_slice %104 {offsets = [0, 128], sizes = [8, 128], strides = [1, 1]} : vector<8x512xf32> to vector<8x128xf32>
    %112 = arith.negf %111 : vector<8x128xf32>
    %113 = math.exp %112 : vector<8x128xf32>
    %cst_38 = arith.constant 1.000000e+00 : f32
    %114 = vector.broadcast %cst_38 : f32 to vector<8x128xf32>
    %115 = arith.addf %114, %113 : vector<8x128xf32>
    %116 = arith.divf %114, %115 : vector<8x128xf32>
    %117 = vector.extract_strided_slice %104 {offsets = [0, 256], sizes = [8, 128], strides = [1, 1]} : vector<8x512xf32> to vector<8x128xf32>
    %118 = math.tanh %117 : vector<8x128xf32>
    %119 = vector.extract_strided_slice %104 {offsets = [0, 384], sizes = [8, 128], strides = [1, 1]} : vector<8x512xf32> to vector<8x128xf32>
    %120 = arith.negf %119 : vector<8x128xf32>
    %121 = math.exp %120 : vector<8x128xf32>
    %cst_39 = arith.constant 1.000000e+00 : f32
    %122 = vector.broadcast %cst_39 : f32 to vector<8x128xf32>
    %123 = arith.addf %122, %121 : vector<8x128xf32>
    %124 = arith.divf %122, %123 : vector<8x128xf32>
    %125 = arith.mulf %116, %95 : vector<8x128xf32>
    %126 = arith.mulf %110, %118 : vector<8x128xf32>
    %127 = arith.addf %125, %126 : vector<8x128xf32>
    %128 = math.tanh %127 : vector<8x128xf32>
    %129 = arith.mulf %124, %128 : vector<8x128xf32>
    %130 = arith.truncf %129 : vector<8x128xf32> to vector<8x128xbf16>
    %c24_40 = arith.constant 24 : index
    %c0_41 = arith.constant 0 : index
    %131 = vector.load %arg12[%c24_40, %c0_41] : memref<64x128xbf16, #tpu.memory_space<vmem>>, vector<8x128xbf16>
    tpu.vector_store %arg12[%c24_40, %c0_41], %130 {strides = array<i32>} : memref<64x128xbf16, #tpu.memory_space<vmem>>, vector<8x128xbf16>,
    %c32 = arith.constant 32 : index
    %c0_42 = arith.constant 0 : index
    %132 = vector.load %arg11[%c32, %c0_42] : memref<64x512xf32, #tpu.memory_space<vmem>>, vector<8x512xf32>
    %133 = arith.truncf %129 : vector<8x128xf32> to vector<8x128xbf16>
    %c0_43 = arith.constant 0 : index
    %c0_44 = arith.constant 0 : index
    %134 = vector.load %arg3[%c0_43, %c0_44] : memref<128x512xbf16, #tpu.memory_space<vmem>>, vector<128x512xbf16>
    %cst_45 = arith.constant dense<0.000000e+00> : vector<8x512xf32>
    %135 = tpu.matmul %133, %134, %cst_45 {dimension_numbers = #tpu.dot_dimension_numbers<[1], [0], [0], [1], [0, 0, 1, 1], [], []>} : vector<8x128xbf16>, vector<128x512xbf16>, vector<8x512xf32> -> vector<8x512xf32>
    %136 = arith.addf %132, %135 : vector<8x512xf32>
    %137 = vector.extract_strided_slice %136 {offsets = [0, 0], sizes = [8, 128], strides = [1, 1]} : vector<8x512xf32> to vector<8x128xf32>
    %138 = arith.negf %137 : vector<8x128xf32>
    %139 = math.exp %138 : vector<8x128xf32>
    %cst_46 = arith.constant 1.000000e+00 : f32
    %140 = vector.broadcast %cst_46 : f32 to vector<8x128xf32>
    %141 = arith.addf %140, %139 : vector<8x128xf32>
    %142 = arith.divf %140, %141 : vector<8x128xf32>
    %143 = vector.extract_strided_slice %136 {offsets = [0, 128], sizes = [8, 128], strides = [1, 1]} : vector<8x512xf32> to vector<8x128xf32>
    %144 = arith.negf %143 : vector<8x128xf32>
    %145 = math.exp %144 : vector<8x128xf32>
    %cst_47 = arith.constant 1.000000e+00 : f32
    %146 = vector.broadcast %cst_47 : f32 to vector<8x128xf32>
    %147 = arith.addf %146, %145 : vector<8x128xf32>
    %148 = arith.divf %146, %147 : vector<8x128xf32>
    %149 = vector.extract_strided_slice %136 {offsets = [0, 256], sizes = [8, 128], strides = [1, 1]} : vector<8x512xf32> to vector<8x128xf32>
    %150 = math.tanh %149 : vector<8x128xf32>
    %151 = vector.extract_strided_slice %136 {offsets = [0, 384], sizes = [8, 128], strides = [1, 1]} : vector<8x512xf32> to vector<8x128xf32>
    %152 = arith.negf %151 : vector<8x128xf32>
    %153 = math.exp %152 : vector<8x128xf32>
    %cst_48 = arith.constant 1.000000e+00 : f32
    %154 = vector.broadcast %cst_48 : f32 to vector<8x128xf32>
    %155 = arith.addf %154, %153 : vector<8x128xf32>
    %156 = arith.divf %154, %155 : vector<8x128xf32>
    %157 = arith.mulf %148, %127 : vector<8x128xf32>
    %158 = arith.mulf %142, %150 : vector<8x128xf32>
    %159 = arith.addf %157, %158 : vector<8x128xf32>
    %160 = math.tanh %159 : vector<8x128xf32>
    %161 = arith.mulf %156, %160 : vector<8x128xf32>
    %162 = arith.truncf %161 : vector<8x128xf32> to vector<8x128xbf16>
    %c32_49 = arith.constant 32 : index
    %c0_50 = arith.constant 0 : index
    %163 = vector.load %arg12[%c32_49, %c0_50] : memref<64x128xbf16, #tpu.memory_space<vmem>>, vector<8x128xbf16>
    tpu.vector_store %arg12[%c32_49, %c0_50], %162 {strides = array<i32>} : memref<64x128xbf16, #tpu.memory_space<vmem>>, vector<8x128xbf16>,
    %c40 = arith.constant 40 : index
    %c0_51 = arith.constant 0 : index
    %164 = vector.load %arg11[%c40, %c0_51] : memref<64x512xf32, #tpu.memory_space<vmem>>, vector<8x512xf32>
    %165 = arith.truncf %161 : vector<8x128xf32> to vector<8x128xbf16>
    %c0_52 = arith.constant 0 : index
    %c0_53 = arith.constant 0 : index
    %166 = vector.load %arg3[%c0_52, %c0_53] : memref<128x512xbf16, #tpu.memory_space<vmem>>, vector<128x512xbf16>
    %cst_54 = arith.constant dense<0.000000e+00> : vector<8x512xf32>
    %167 = tpu.matmul %165, %166, %cst_54 {dimension_numbers = #tpu.dot_dimension_numbers<[1], [0], [0], [1], [0, 0, 1, 1], [], []>} : vector<8x128xbf16>, vector<128x512xbf16>, vector<8x512xf32> -> vector<8x512xf32>
    %168 = arith.addf %164, %167 : vector<8x512xf32>
    %169 = vector.extract_strided_slice %168 {offsets = [0, 0], sizes = [8, 128], strides = [1, 1]} : vector<8x512xf32> to vector<8x128xf32>
    %170 = arith.negf %169 : vector<8x128xf32>
    %171 = math.exp %170 : vector<8x128xf32>
    %cst_55 = arith.constant 1.000000e+00 : f32
    %172 = vector.broadcast %cst_55 : f32 to vector<8x128xf32>
    %173 = arith.addf %172, %171 : vector<8x128xf32>
    %174 = arith.divf %172, %173 : vector<8x128xf32>
    %175 = vector.extract_strided_slice %168 {offsets = [0, 128], sizes = [8, 128], strides = [1, 1]} : vector<8x512xf32> to vector<8x128xf32>
    %176 = arith.negf %175 : vector<8x128xf32>
    %177 = math.exp %176 : vector<8x128xf32>
    %cst_56 = arith.constant 1.000000e+00 : f32
    %178 = vector.broadcast %cst_56 : f32 to vector<8x128xf32>
    %179 = arith.addf %178, %177 : vector<8x128xf32>
    %180 = arith.divf %178, %179 : vector<8x128xf32>
    %181 = vector.extract_strided_slice %168 {offsets = [0, 256], sizes = [8, 128], strides = [1, 1]} : vector<8x512xf32> to vector<8x128xf32>
    %182 = math.tanh %181 : vector<8x128xf32>
    %183 = vector.extract_strided_slice %168 {offsets = [0, 384], sizes = [8, 128], strides = [1, 1]} : vector<8x512xf32> to vector<8x128xf32>
    %184 = arith.negf %183 : vector<8x128xf32>
    %185 = math.exp %184 : vector<8x128xf32>
    %cst_57 = arith.constant 1.000000e+00 : f32
    %186 = vector.broadcast %cst_57 : f32 to vector<8x128xf32>
    %187 = arith.addf %186, %185 : vector<8x128xf32>
    %188 = arith.divf %186, %187 : vector<8x128xf32>
    %189 = arith.mulf %180, %159 : vector<8x128xf32>
    %190 = arith.mulf %174, %182 : vector<8x128xf32>
    %191 = arith.addf %189, %190 : vector<8x128xf32>
    %192 = math.tanh %191 : vector<8x128xf32>
    %193 = arith.mulf %188, %192 : vector<8x128xf32>
    %194 = arith.truncf %193 : vector<8x128xf32> to vector<8x128xbf16>
    %c40_58 = arith.constant 40 : index
    %c0_59 = arith.constant 0 : index
    %195 = vector.load %arg12[%c40_58, %c0_59] : memref<64x128xbf16, #tpu.memory_space<vmem>>, vector<8x128xbf16>
    tpu.vector_store %arg12[%c40_58, %c0_59], %194 {strides = array<i32>} : memref<64x128xbf16, #tpu.memory_space<vmem>>, vector<8x128xbf16>,
    %c48 = arith.constant 48 : index
    %c0_60 = arith.constant 0 : index
    %196 = vector.load %arg11[%c48, %c0_60] : memref<64x512xf32, #tpu.memory_space<vmem>>, vector<8x512xf32>
    %197 = arith.truncf %193 : vector<8x128xf32> to vector<8x128xbf16>
    %c0_61 = arith.constant 0 : index
    %c0_62 = arith.constant 0 : index
    %198 = vector.load %arg3[%c0_61, %c0_62] : memref<128x512xbf16, #tpu.memory_space<vmem>>, vector<128x512xbf16>
    %cst_63 = arith.constant dense<0.000000e+00> : vector<8x512xf32>
    %199 = tpu.matmul %197, %198, %cst_63 {dimension_numbers = #tpu.dot_dimension_numbers<[1], [0], [0], [1], [0, 0, 1, 1], [], []>} : vector<8x128xbf16>, vector<128x512xbf16>, vector<8x512xf32> -> vector<8x512xf32>
    %200 = arith.addf %196, %199 : vector<8x512xf32>
    %201 = vector.extract_strided_slice %200 {offsets = [0, 0], sizes = [8, 128], strides = [1, 1]} : vector<8x512xf32> to vector<8x128xf32>
    %202 = arith.negf %201 : vector<8x128xf32>
    %203 = math.exp %202 : vector<8x128xf32>
    %cst_64 = arith.constant 1.000000e+00 : f32
    %204 = vector.broadcast %cst_64 : f32 to vector<8x128xf32>
    %205 = arith.addf %204, %203 : vector<8x128xf32>
    %206 = arith.divf %204, %205 : vector<8x128xf32>
    %207 = vector.extract_strided_slice %200 {offsets = [0, 128], sizes = [8, 128], strides = [1, 1]} : vector<8x512xf32> to vector<8x128xf32>
    %208 = arith.negf %207 : vector<8x128xf32>
    %209 = math.exp %208 : vector<8x128xf32>
    %cst_65 = arith.constant 1.000000e+00 : f32
    %210 = vector.broadcast %cst_65 : f32 to vector<8x128xf32>
    %211 = arith.addf %210, %209 : vector<8x128xf32>
    %212 = arith.divf %210, %211 : vector<8x128xf32>
    %213 = vector.extract_strided_slice %200 {offsets = [0, 256], sizes = [8, 128], strides = [1, 1]} : vector<8x512xf32> to vector<8x128xf32>
    %214 = math.tanh %213 : vector<8x128xf32>
    %215 = vector.extract_strided_slice %200 {offsets = [0, 384], sizes = [8, 128], strides = [1, 1]} : vector<8x512xf32> to vector<8x128xf32>
    %216 = arith.negf %215 : vector<8x128xf32>
    %217 = math.exp %216 : vector<8x128xf32>
    %cst_66 = arith.constant 1.000000e+00 : f32
    %218 = vector.broadcast %cst_66 : f32 to vector<8x128xf32>
    %219 = arith.addf %218, %217 : vector<8x128xf32>
    %220 = arith.divf %218, %219 : vector<8x128xf32>
    %221 = arith.mulf %212, %191 : vector<8x128xf32>
    %222 = arith.mulf %206, %214 : vector<8x128xf32>
    %223 = arith.addf %221, %222 : vector<8x128xf32>
    %224 = math.tanh %223 : vector<8x128xf32>
    %225 = arith.mulf %220, %224 : vector<8x128xf32>
    %226 = arith.truncf %225 : vector<8x128xf32> to vector<8x128xbf16>
    %c48_67 = arith.constant 48 : index
    %c0_68 = arith.constant 0 : index
    %227 = vector.load %arg12[%c48_67, %c0_68] : memref<64x128xbf16, #tpu.memory_space<vmem>>, vector<8x128xbf16>
    tpu.vector_store %arg12[%c48_67, %c0_68], %226 {strides = array<i32>} : memref<64x128xbf16, #tpu.memory_space<vmem>>, vector<8x128xbf16>,
    %c56 = arith.constant 56 : index
    %c0_69 = arith.constant 0 : index
    %228 = vector.load %arg11[%c56, %c0_69] : memref<64x512xf32, #tpu.memory_space<vmem>>, vector<8x512xf32>
    %229 = arith.truncf %225 : vector<8x128xf32> to vector<8x128xbf16>
    %c0_70 = arith.constant 0 : index
    %c0_71 = arith.constant 0 : index
    %230 = vector.load %arg3[%c0_70, %c0_71] : memref<128x512xbf16, #tpu.memory_space<vmem>>, vector<128x512xbf16>
    %cst_72 = arith.constant dense<0.000000e+00> : vector<8x512xf32>
    %231 = tpu.matmul %229, %230, %cst_72 {dimension_numbers = #tpu.dot_dimension_numbers<[1], [0], [0], [1], [0, 0, 1, 1], [], []>} : vector<8x128xbf16>, vector<128x512xbf16>, vector<8x512xf32> -> vector<8x512xf32>
    %232 = arith.addf %228, %231 : vector<8x512xf32>
    %233 = vector.extract_strided_slice %232 {offsets = [0, 0], sizes = [8, 128], strides = [1, 1]} : vector<8x512xf32> to vector<8x128xf32>
    %234 = arith.negf %233 : vector<8x128xf32>
    %235 = math.exp %234 : vector<8x128xf32>
    %cst_73 = arith.constant 1.000000e+00 : f32
    %236 = vector.broadcast %cst_73 : f32 to vector<8x128xf32>
    %237 = arith.addf %236, %235 : vector<8x128xf32>
    %238 = arith.divf %236, %237 : vector<8x128xf32>
    %239 = vector.extract_strided_slice %232 {offsets = [0, 128], sizes = [8, 128], strides = [1, 1]} : vector<8x512xf32> to vector<8x128xf32>
    %240 = arith.negf %239 : vector<8x128xf32>
    %241 = math.exp %240 : vector<8x128xf32>
    %cst_74 = arith.constant 1.000000e+00 : f32
    %242 = vector.broadcast %cst_74 : f32 to vector<8x128xf32>
    %243 = arith.addf %242, %241 : vector<8x128xf32>
    %244 = arith.divf %242, %243 : vector<8x128xf32>
    %245 = vector.extract_strided_slice %232 {offsets = [0, 256], sizes = [8, 128], strides = [1, 1]} : vector<8x512xf32> to vector<8x128xf32>
    %246 = math.tanh %245 : vector<8x128xf32>
    %247 = vector.extract_strided_slice %232 {offsets = [0, 384], sizes = [8, 128], strides = [1, 1]} : vector<8x512xf32> to vector<8x128xf32>
    %248 = arith.negf %247 : vector<8x128xf32>
    %249 = math.exp %248 : vector<8x128xf32>
    %cst_75 = arith.constant 1.000000e+00 : f32
    %250 = vector.broadcast %cst_75 : f32 to vector<8x128xf32>
    %251 = arith.addf %250, %249 : vector<8x128xf32>
    %252 = arith.divf %250, %251 : vector<8x128xf32>
    %253 = arith.mulf %244, %223 : vector<8x128xf32>
    %254 = arith.mulf %238, %246 : vector<8x128xf32>
    %255 = arith.addf %253, %254 : vector<8x128xf32>
    %256 = math.tanh %255 : vector<8x128xf32>
    %257 = arith.mulf %252, %256 : vector<8x128xf32>
    %258 = arith.truncf %257 : vector<8x128xf32> to vector<8x128xbf16>
    %c56_76 = arith.constant 56 : index
    %c0_77 = arith.constant 0 : index
    %259 = vector.load %arg12[%c56_76, %c0_77] : memref<64x128xbf16, #tpu.memory_space<vmem>>, vector<8x128xbf16>
    tpu.vector_store %arg12[%c56_76, %c0_77], %258 {strides = array<i32>} : memref<64x128xbf16, #tpu.memory_space<vmem>>, vector<8x128xbf16>,
    %c0_78 = arith.constant 0 : index
    %c0_79 = arith.constant 0 : index
    %260 = vector.load %arg12[%c0_78, %c0_79] : memref<64x128xbf16, #tpu.memory_space<vmem>>, vector<64x128xbf16>
    %c0_80 = arith.constant 0 : index
    %c0_81 = arith.constant 0 : index
    %261 = vector.load %arg5[%c0_80, %c0_81] : memref<128x512xbf16, #tpu.memory_space<vmem>>, vector<128x512xbf16>
    %cst_82 = arith.constant dense<0.000000e+00> : vector<64x512xf32>
    %262 = tpu.matmul %260, %261, %cst_82 {dimension_numbers = #tpu.dot_dimension_numbers<[1], [0], [0], [1], [0, 0, 1, 1], [], []>} : vector<64x128xbf16>, vector<128x512xbf16>, vector<64x512xf32> -> vector<64x512xf32>
    %c0_83 = arith.constant 0 : index
    %c0_84 = arith.constant 0 : index
    %263 = vector.load %arg7[%c0_83, %c0_84] : memref<1x512xf32, #tpu.memory_space<vmem>>, vector<1x512xf32>
    %264 = vector.broadcast %263 : vector<1x512xf32> to vector<64x512xf32>
    %265 = arith.addf %262, %264 : vector<64x512xf32>
    %c0_85 = arith.constant 0 : index
    %c0_86 = arith.constant 0 : index
    %266 = vector.load %arg11[%c0_85, %c0_86] : memref<64x512xf32, #tpu.memory_space<vmem>>, vector<64x512xf32>
    tpu.vector_store %arg11[%c0_85, %c0_86], %265 {strides = array<i32>} : memref<64x512xf32, #tpu.memory_space<vmem>>, vector<64x512xf32>,
    %cst_87 = arith.constant 0.000000e+00 : f32
    %267 = vector.broadcast %cst_87 : f32 to vector<8x128xf32>
    %c0_88 = arith.constant 0 : index
    %c0_89 = arith.constant 0 : index
    %268 = vector.load %arg11[%c0_88, %c0_89] : memref<64x512xf32, #tpu.memory_space<vmem>>, vector<8x512xf32>
    %269 = vector.extract_strided_slice %268 {offsets = [0, 0], sizes = [8, 128], strides = [1, 1]} : vector<8x512xf32> to vector<8x128xf32>
    %270 = arith.negf %269 : vector<8x128xf32>
    %271 = math.exp %270 : vector<8x128xf32>
    %cst_90 = arith.constant 1.000000e+00 : f32
    %272 = vector.broadcast %cst_90 : f32 to vector<8x128xf32>
    %273 = arith.addf %272, %271 : vector<8x128xf32>
    %274 = arith.divf %272, %273 : vector<8x128xf32>
    %275 = vector.extract_strided_slice %268 {offsets = [0, 128], sizes = [8, 128], strides = [1, 1]} : vector<8x512xf32> to vector<8x128xf32>
    %276 = arith.negf %275 : vector<8x128xf32>
    %277 = math.exp %276 : vector<8x128xf32>
    %cst_91 = arith.constant 1.000000e+00 : f32
    %278 = vector.broadcast %cst_91 : f32 to vector<8x128xf32>
    %279 = arith.addf %278, %277 : vector<8x128xf32>
    %280 = arith.divf %278, %279 : vector<8x128xf32>
    %281 = vector.extract_strided_slice %268 {offsets = [0, 256], sizes = [8, 128], strides = [1, 1]} : vector<8x512xf32> to vector<8x128xf32>
    %282 = math.tanh %281 : vector<8x128xf32>
    %283 = vector.extract_strided_slice %268 {offsets = [0, 384], sizes = [8, 128], strides = [1, 1]} : vector<8x512xf32> to vector<8x128xf32>
    %284 = arith.negf %283 : vector<8x128xf32>
    %285 = math.exp %284 : vector<8x128xf32>
    %cst_92 = arith.constant 1.000000e+00 : f32
    %286 = vector.broadcast %cst_92 : f32 to vector<8x128xf32>
    %287 = arith.addf %286, %285 : vector<8x128xf32>
    %288 = arith.divf %286, %287 : vector<8x128xf32>
    %289 = arith.mulf %280, %267 : vector<8x128xf32>
    %290 = arith.mulf %274, %282 : vector<8x128xf32>
    %291 = arith.addf %289, %290 : vector<8x128xf32>
    %292 = math.tanh %291 : vector<8x128xf32>
    %293 = arith.mulf %288, %292 : vector<8x128xf32>
    %c8_93 = arith.constant 8 : index
    %c0_94 = arith.constant 0 : index
    %294 = vector.load %arg11[%c8_93, %c0_94] : memref<64x512xf32, #tpu.memory_space<vmem>>, vector<8x512xf32>
    %295 = arith.truncf %293 : vector<8x128xf32> to vector<8x128xbf16>
    %c0_95 = arith.constant 0 : index
    %c0_96 = arith.constant 0 : index
    %296 = vector.load %arg6[%c0_95, %c0_96] : memref<128x512xbf16, #tpu.memory_space<vmem>>, vector<128x512xbf16>
    %cst_97 = arith.constant dense<0.000000e+00> : vector<8x512xf32>
    %297 = tpu.matmul %295, %296, %cst_97 {dimension_numbers = #tpu.dot_dimension_numbers<[1], [0], [0], [1], [0, 0, 1, 1], [], []>} : vector<8x128xbf16>, vector<128x512xbf16>, vector<8x512xf32> -> vector<8x512xf32>
    %298 = arith.addf %294, %297 : vector<8x512xf32>
    %299 = vector.extract_strided_slice %298 {offsets = [0, 0], sizes = [8, 128], strides = [1, 1]} : vector<8x512xf32> to vector<8x128xf32>
    %300 = arith.negf %299 : vector<8x128xf32>
    %301 = math.exp %300 : vector<8x128xf32>
    %cst_98 = arith.constant 1.000000e+00 : f32
    %302 = vector.broadcast %cst_98 : f32 to vector<8x128xf32>
    %303 = arith.addf %302, %301 : vector<8x128xf32>
    %304 = arith.divf %302, %303 : vector<8x128xf32>
    %305 = vector.extract_strided_slice %298 {offsets = [0, 128], sizes = [8, 128], strides = [1, 1]} : vector<8x512xf32> to vector<8x128xf32>
    %306 = arith.negf %305 : vector<8x128xf32>
    %307 = math.exp %306 : vector<8x128xf32>
    %cst_99 = arith.constant 1.000000e+00 : f32
    %308 = vector.broadcast %cst_99 : f32 to vector<8x128xf32>
    %309 = arith.addf %308, %307 : vector<8x128xf32>
    %310 = arith.divf %308, %309 : vector<8x128xf32>
    %311 = vector.extract_strided_slice %298 {offsets = [0, 256], sizes = [8, 128], strides = [1, 1]} : vector<8x512xf32> to vector<8x128xf32>
    %312 = math.tanh %311 : vector<8x128xf32>
    %313 = vector.extract_strided_slice %298 {offsets = [0, 384], sizes = [8, 128], strides = [1, 1]} : vector<8x512xf32> to vector<8x128xf32>
    %314 = arith.negf %313 : vector<8x128xf32>
    %315 = math.exp %314 : vector<8x128xf32>
    %cst_100 = arith.constant 1.000000e+00 : f32
    %316 = vector.broadcast %cst_100 : f32 to vector<8x128xf32>
    %317 = arith.addf %316, %315 : vector<8x128xf32>
    %318 = arith.divf %316, %317 : vector<8x128xf32>
    %319 = arith.mulf %310, %291 : vector<8x128xf32>
    %320 = arith.mulf %304, %312 : vector<8x128xf32>
    %321 = arith.addf %319, %320 : vector<8x128xf32>
    %322 = math.tanh %321 : vector<8x128xf32>
    %323 = arith.mulf %318, %322 : vector<8x128xf32>
    %c16_101 = arith.constant 16 : index
    %c0_102 = arith.constant 0 : index
    %324 = vector.load %arg11[%c16_101, %c0_102] : memref<64x512xf32, #tpu.memory_space<vmem>>, vector<8x512xf32>
    %325 = arith.truncf %323 : vector<8x128xf32> to vector<8x128xbf16>
    %c0_103 = arith.constant 0 : index
    %c0_104 = arith.constant 0 : index
    %326 = vector.load %arg6[%c0_103, %c0_104] : memref<128x512xbf16, #tpu.memory_space<vmem>>, vector<128x512xbf16>
    %cst_105 = arith.constant dense<0.000000e+00> : vector<8x512xf32>
    %327 = tpu.matmul %325, %326, %cst_105 {dimension_numbers = #tpu.dot_dimension_numbers<[1], [0], [0], [1], [0, 0, 1, 1], [], []>} : vector<8x128xbf16>, vector<128x512xbf16>, vector<8x512xf32> -> vector<8x512xf32>
    %328 = arith.addf %324, %327 : vector<8x512xf32>
    %329 = vector.extract_strided_slice %328 {offsets = [0, 0], sizes = [8, 128], strides = [1, 1]} : vector<8x512xf32> to vector<8x128xf32>
    %330 = arith.negf %329 : vector<8x128xf32>
    %331 = math.exp %330 : vector<8x128xf32>
    %cst_106 = arith.constant 1.000000e+00 : f32
    %332 = vector.broadcast %cst_106 : f32 to vector<8x128xf32>
    %333 = arith.addf %332, %331 : vector<8x128xf32>
    %334 = arith.divf %332, %333 : vector<8x128xf32>
    %335 = vector.extract_strided_slice %328 {offsets = [0, 128], sizes = [8, 128], strides = [1, 1]} : vector<8x512xf32> to vector<8x128xf32>
    %336 = arith.negf %335 : vector<8x128xf32>
    %337 = math.exp %336 : vector<8x128xf32>
    %cst_107 = arith.constant 1.000000e+00 : f32
    %338 = vector.broadcast %cst_107 : f32 to vector<8x128xf32>
    %339 = arith.addf %338, %337 : vector<8x128xf32>
    %340 = arith.divf %338, %339 : vector<8x128xf32>
    %341 = vector.extract_strided_slice %328 {offsets = [0, 256], sizes = [8, 128], strides = [1, 1]} : vector<8x512xf32> to vector<8x128xf32>
    %342 = math.tanh %341 : vector<8x128xf32>
    %343 = vector.extract_strided_slice %328 {offsets = [0, 384], sizes = [8, 128], strides = [1, 1]} : vector<8x512xf32> to vector<8x128xf32>
    %344 = arith.negf %343 : vector<8x128xf32>
    %345 = math.exp %344 : vector<8x128xf32>
    %cst_108 = arith.constant 1.000000e+00 : f32
    %346 = vector.broadcast %cst_108 : f32 to vector<8x128xf32>
    %347 = arith.addf %346, %345 : vector<8x128xf32>
    %348 = arith.divf %346, %347 : vector<8x128xf32>
    %349 = arith.mulf %340, %321 : vector<8x128xf32>
    %350 = arith.mulf %334, %342 : vector<8x128xf32>
    %351 = arith.addf %349, %350 : vector<8x128xf32>
    %352 = math.tanh %351 : vector<8x128xf32>
    %353 = arith.mulf %348, %352 : vector<8x128xf32>
    %c24_109 = arith.constant 24 : index
    %c0_110 = arith.constant 0 : index
    %354 = vector.load %arg11[%c24_109, %c0_110] : memref<64x512xf32, #tpu.memory_space<vmem>>, vector<8x512xf32>
    %355 = arith.truncf %353 : vector<8x128xf32> to vector<8x128xbf16>
    %c0_111 = arith.constant 0 : index
    %c0_112 = arith.constant 0 : index
    %356 = vector.load %arg6[%c0_111, %c0_112] : memref<128x512xbf16, #tpu.memory_space<vmem>>, vector<128x512xbf16>
    %cst_113 = arith.constant dense<0.000000e+00> : vector<8x512xf32>
    %357 = tpu.matmul %355, %356, %cst_113 {dimension_numbers = #tpu.dot_dimension_numbers<[1], [0], [0], [1], [0, 0, 1, 1], [], []>} : vector<8x128xbf16>, vector<128x512xbf16>, vector<8x512xf32> -> vector<8x512xf32>
    %358 = arith.addf %354, %357 : vector<8x512xf32>
    %359 = vector.extract_strided_slice %358 {offsets = [0, 0], sizes = [8, 128], strides = [1, 1]} : vector<8x512xf32> to vector<8x128xf32>
    %360 = arith.negf %359 : vector<8x128xf32>
    %361 = math.exp %360 : vector<8x128xf32>
    %cst_114 = arith.constant 1.000000e+00 : f32
    %362 = vector.broadcast %cst_114 : f32 to vector<8x128xf32>
    %363 = arith.addf %362, %361 : vector<8x128xf32>
    %364 = arith.divf %362, %363 : vector<8x128xf32>
    %365 = vector.extract_strided_slice %358 {offsets = [0, 128], sizes = [8, 128], strides = [1, 1]} : vector<8x512xf32> to vector<8x128xf32>
    %366 = arith.negf %365 : vector<8x128xf32>
    %367 = math.exp %366 : vector<8x128xf32>
    %cst_115 = arith.constant 1.000000e+00 : f32
    %368 = vector.broadcast %cst_115 : f32 to vector<8x128xf32>
    %369 = arith.addf %368, %367 : vector<8x128xf32>
    %370 = arith.divf %368, %369 : vector<8x128xf32>
    %371 = vector.extract_strided_slice %358 {offsets = [0, 256], sizes = [8, 128], strides = [1, 1]} : vector<8x512xf32> to vector<8x128xf32>
    %372 = math.tanh %371 : vector<8x128xf32>
    %373 = vector.extract_strided_slice %358 {offsets = [0, 384], sizes = [8, 128], strides = [1, 1]} : vector<8x512xf32> to vector<8x128xf32>
    %374 = arith.negf %373 : vector<8x128xf32>
    %375 = math.exp %374 : vector<8x128xf32>
    %cst_116 = arith.constant 1.000000e+00 : f32
    %376 = vector.broadcast %cst_116 : f32 to vector<8x128xf32>
    %377 = arith.addf %376, %375 : vector<8x128xf32>
    %378 = arith.divf %376, %377 : vector<8x128xf32>
    %379 = arith.mulf %370, %351 : vector<8x128xf32>
    %380 = arith.mulf %364, %372 : vector<8x128xf32>
    %381 = arith.addf %379, %380 : vector<8x128xf32>
    %382 = math.tanh %381 : vector<8x128xf32>
    %383 = arith.mulf %378, %382 : vector<8x128xf32>
    %c32_117 = arith.constant 32 : index
    %c0_118 = arith.constant 0 : index
    %384 = vector.load %arg11[%c32_117, %c0_118] : memref<64x512xf32, #tpu.memory_space<vmem>>, vector<8x512xf32>
    %385 = arith.truncf %383 : vector<8x128xf32> to vector<8x128xbf16>
    %c0_119 = arith.constant 0 : index
    %c0_120 = arith.constant 0 : index
    %386 = vector.load %arg6[%c0_119, %c0_120] : memref<128x512xbf16, #tpu.memory_space<vmem>>, vector<128x512xbf16>
    %cst_121 = arith.constant dense<0.000000e+00> : vector<8x512xf32>
    %387 = tpu.matmul %385, %386, %cst_121 {dimension_numbers = #tpu.dot_dimension_numbers<[1], [0], [0], [1], [0, 0, 1, 1], [], []>} : vector<8x128xbf16>, vector<128x512xbf16>, vector<8x512xf32> -> vector<8x512xf32>
    %388 = arith.addf %384, %387 : vector<8x512xf32>
    %389 = vector.extract_strided_slice %388 {offsets = [0, 0], sizes = [8, 128], strides = [1, 1]} : vector<8x512xf32> to vector<8x128xf32>
    %390 = arith.negf %389 : vector<8x128xf32>
    %391 = math.exp %390 : vector<8x128xf32>
    %cst_122 = arith.constant 1.000000e+00 : f32
    %392 = vector.broadcast %cst_122 : f32 to vector<8x128xf32>
    %393 = arith.addf %392, %391 : vector<8x128xf32>
    %394 = arith.divf %392, %393 : vector<8x128xf32>
    %395 = vector.extract_strided_slice %388 {offsets = [0, 128], sizes = [8, 128], strides = [1, 1]} : vector<8x512xf32> to vector<8x128xf32>
    %396 = arith.negf %395 : vector<8x128xf32>
    %397 = math.exp %396 : vector<8x128xf32>
    %cst_123 = arith.constant 1.000000e+00 : f32
    %398 = vector.broadcast %cst_123 : f32 to vector<8x128xf32>
    %399 = arith.addf %398, %397 : vector<8x128xf32>
    %400 = arith.divf %398, %399 : vector<8x128xf32>
    %401 = vector.extract_strided_slice %388 {offsets = [0, 256], sizes = [8, 128], strides = [1, 1]} : vector<8x512xf32> to vector<8x128xf32>
    %402 = math.tanh %401 : vector<8x128xf32>
    %403 = vector.extract_strided_slice %388 {offsets = [0, 384], sizes = [8, 128], strides = [1, 1]} : vector<8x512xf32> to vector<8x128xf32>
    %404 = arith.negf %403 : vector<8x128xf32>
    %405 = math.exp %404 : vector<8x128xf32>
    %cst_124 = arith.constant 1.000000e+00 : f32
    %406 = vector.broadcast %cst_124 : f32 to vector<8x128xf32>
    %407 = arith.addf %406, %405 : vector<8x128xf32>
    %408 = arith.divf %406, %407 : vector<8x128xf32>
    %409 = arith.mulf %400, %381 : vector<8x128xf32>
    %410 = arith.mulf %394, %402 : vector<8x128xf32>
    %411 = arith.addf %409, %410 : vector<8x128xf32>
    %412 = math.tanh %411 : vector<8x128xf32>
    %413 = arith.mulf %408, %412 : vector<8x128xf32>
    %c40_125 = arith.constant 40 : index
    %c0_126 = arith.constant 0 : index
    %414 = vector.load %arg11[%c40_125, %c0_126] : memref<64x512xf32, #tpu.memory_space<vmem>>, vector<8x512xf32>
    %415 = arith.truncf %413 : vector<8x128xf32> to vector<8x128xbf16>
    %c0_127 = arith.constant 0 : index
    %c0_128 = arith.constant 0 : index
    %416 = vector.load %arg6[%c0_127, %c0_128] : memref<128x512xbf16, #tpu.memory_space<vmem>>, vector<128x512xbf16>
    %cst_129 = arith.constant dense<0.000000e+00> : vector<8x512xf32>
    %417 = tpu.matmul %415, %416, %cst_129 {dimension_numbers = #tpu.dot_dimension_numbers<[1], [0], [0], [1], [0, 0, 1, 1], [], []>} : vector<8x128xbf16>, vector<128x512xbf16>, vector<8x512xf32> -> vector<8x512xf32>
    %418 = arith.addf %414, %417 : vector<8x512xf32>
    %419 = vector.extract_strided_slice %418 {offsets = [0, 0], sizes = [8, 128], strides = [1, 1]} : vector<8x512xf32> to vector<8x128xf32>
    %420 = arith.negf %419 : vector<8x128xf32>
    %421 = math.exp %420 : vector<8x128xf32>
    %cst_130 = arith.constant 1.000000e+00 : f32
    %422 = vector.broadcast %cst_130 : f32 to vector<8x128xf32>
    %423 = arith.addf %422, %421 : vector<8x128xf32>
    %424 = arith.divf %422, %423 : vector<8x128xf32>
    %425 = vector.extract_strided_slice %418 {offsets = [0, 128], sizes = [8, 128], strides = [1, 1]} : vector<8x512xf32> to vector<8x128xf32>
    %426 = arith.negf %425 : vector<8x128xf32>
    %427 = math.exp %426 : vector<8x128xf32>
    %cst_131 = arith.constant 1.000000e+00 : f32
    %428 = vector.broadcast %cst_131 : f32 to vector<8x128xf32>
    %429 = arith.addf %428, %427 : vector<8x128xf32>
    %430 = arith.divf %428, %429 : vector<8x128xf32>
    %431 = vector.extract_strided_slice %418 {offsets = [0, 256], sizes = [8, 128], strides = [1, 1]} : vector<8x512xf32> to vector<8x128xf32>
    %432 = math.tanh %431 : vector<8x128xf32>
    %433 = vector.extract_strided_slice %418 {offsets = [0, 384], sizes = [8, 128], strides = [1, 1]} : vector<8x512xf32> to vector<8x128xf32>
    %434 = arith.negf %433 : vector<8x128xf32>
    %435 = math.exp %434 : vector<8x128xf32>
    %cst_132 = arith.constant 1.000000e+00 : f32
    %436 = vector.broadcast %cst_132 : f32 to vector<8x128xf32>
    %437 = arith.addf %436, %435 : vector<8x128xf32>
    %438 = arith.divf %436, %437 : vector<8x128xf32>
    %439 = arith.mulf %430, %411 : vector<8x128xf32>
    %440 = arith.mulf %424, %432 : vector<8x128xf32>
    %441 = arith.addf %439, %440 : vector<8x128xf32>
    %442 = math.tanh %441 : vector<8x128xf32>
    %443 = arith.mulf %438, %442 : vector<8x128xf32>
    %c48_133 = arith.constant 48 : index
    %c0_134 = arith.constant 0 : index
    %444 = vector.load %arg11[%c48_133, %c0_134] : memref<64x512xf32, #tpu.memory_space<vmem>>, vector<8x512xf32>
    %445 = arith.truncf %443 : vector<8x128xf32> to vector<8x128xbf16>
    %c0_135 = arith.constant 0 : index
    %c0_136 = arith.constant 0 : index
    %446 = vector.load %arg6[%c0_135, %c0_136] : memref<128x512xbf16, #tpu.memory_space<vmem>>, vector<128x512xbf16>
    %cst_137 = arith.constant dense<0.000000e+00> : vector<8x512xf32>
    %447 = tpu.matmul %445, %446, %cst_137 {dimension_numbers = #tpu.dot_dimension_numbers<[1], [0], [0], [1], [0, 0, 1, 1], [], []>} : vector<8x128xbf16>, vector<128x512xbf16>, vector<8x512xf32> -> vector<8x512xf32>
    %448 = arith.addf %444, %447 : vector<8x512xf32>
    %449 = vector.extract_strided_slice %448 {offsets = [0, 0], sizes = [8, 128], strides = [1, 1]} : vector<8x512xf32> to vector<8x128xf32>
    %450 = arith.negf %449 : vector<8x128xf32>
    %451 = math.exp %450 : vector<8x128xf32>
    %cst_138 = arith.constant 1.000000e+00 : f32
    %452 = vector.broadcast %cst_138 : f32 to vector<8x128xf32>
    %453 = arith.addf %452, %451 : vector<8x128xf32>
    %454 = arith.divf %452, %453 : vector<8x128xf32>
    %455 = vector.extract_strided_slice %448 {offsets = [0, 128], sizes = [8, 128], strides = [1, 1]} : vector<8x512xf32> to vector<8x128xf32>
    %456 = arith.negf %455 : vector<8x128xf32>
    %457 = math.exp %456 : vector<8x128xf32>
    %cst_139 = arith.constant 1.000000e+00 : f32
    %458 = vector.broadcast %cst_139 : f32 to vector<8x128xf32>
    %459 = arith.addf %458, %457 : vector<8x128xf32>
    %460 = arith.divf %458, %459 : vector<8x128xf32>
    %461 = vector.extract_strided_slice %448 {offsets = [0, 256], sizes = [8, 128], strides = [1, 1]} : vector<8x512xf32> to vector<8x128xf32>
    %462 = math.tanh %461 : vector<8x128xf32>
    %463 = vector.extract_strided_slice %448 {offsets = [0, 384], sizes = [8, 128], strides = [1, 1]} : vector<8x512xf32> to vector<8x128xf32>
    %464 = arith.negf %463 : vector<8x128xf32>
    %465 = math.exp %464 : vector<8x128xf32>
    %cst_140 = arith.constant 1.000000e+00 : f32
    %466 = vector.broadcast %cst_140 : f32 to vector<8x128xf32>
    %467 = arith.addf %466, %465 : vector<8x128xf32>
    %468 = arith.divf %466, %467 : vector<8x128xf32>
    %469 = arith.mulf %460, %441 : vector<8x128xf32>
    %470 = arith.mulf %454, %462 : vector<8x128xf32>
    %471 = arith.addf %469, %470 : vector<8x128xf32>
    %472 = math.tanh %471 : vector<8x128xf32>
    %473 = arith.mulf %468, %472 : vector<8x128xf32>
    %c56_141 = arith.constant 56 : index
    %c0_142 = arith.constant 0 : index
    %474 = vector.load %arg11[%c56_141, %c0_142] : memref<64x512xf32, #tpu.memory_space<vmem>>, vector<8x512xf32>
    %475 = arith.truncf %473 : vector<8x128xf32> to vector<8x128xbf16>
    %c0_143 = arith.constant 0 : index
    %c0_144 = arith.constant 0 : index
    %476 = vector.load %arg6[%c0_143, %c0_144] : memref<128x512xbf16, #tpu.memory_space<vmem>>, vector<128x512xbf16>
    %cst_145 = arith.constant dense<0.000000e+00> : vector<8x512xf32>
    %477 = tpu.matmul %475, %476, %cst_145 {dimension_numbers = #tpu.dot_dimension_numbers<[1], [0], [0], [1], [0, 0, 1, 1], [], []>} : vector<8x128xbf16>, vector<128x512xbf16>, vector<8x512xf32> -> vector<8x512xf32>
    %478 = arith.addf %474, %477 : vector<8x512xf32>
    %479 = vector.extract_strided_slice %478 {offsets = [0, 0], sizes = [8, 128], strides = [1, 1]} : vector<8x512xf32> to vector<8x128xf32>
    %480 = arith.negf %479 : vector<8x128xf32>
    %481 = math.exp %480 : vector<8x128xf32>
    %cst_146 = arith.constant 1.000000e+00 : f32
    %482 = vector.broadcast %cst_146 : f32 to vector<8x128xf32>
    %483 = arith.addf %482, %481 : vector<8x128xf32>
    %484 = arith.divf %482, %483 : vector<8x128xf32>
    %485 = vector.extract_strided_slice %478 {offsets = [0, 128], sizes = [8, 128], strides = [1, 1]} : vector<8x512xf32> to vector<8x128xf32>
    %486 = arith.negf %485 : vector<8x128xf32>
    %487 = math.exp %486 : vector<8x128xf32>
    %cst_147 = arith.constant 1.000000e+00 : f32
    %488 = vector.broadcast %cst_147 : f32 to vector<8x128xf32>
    %489 = arith.addf %488, %487 : vector<8x128xf32>
    %490 = arith.divf %488, %489 : vector<8x128xf32>
    %491 = vector.extract_strided_slice %478 {offsets = [0, 256], sizes = [8, 128], strides = [1, 1]} : vector<8x512xf32> to vector<8x128xf32>
    %492 = math.tanh %491 : vector<8x128xf32>
    %493 = vector.extract_strided_slice %478 {offsets = [0, 384], sizes = [8, 128], strides = [1, 1]} : vector<8x512xf32> to vector<8x128xf32>
    %494 = arith.negf %493 : vector<8x128xf32>
    %495 = math.exp %494 : vector<8x128xf32>
    %cst_148 = arith.constant 1.000000e+00 : f32
    %496 = vector.broadcast %cst_148 : f32 to vector<8x128xf32>
    %497 = arith.addf %496, %495 : vector<8x128xf32>
    %498 = arith.divf %496, %497 : vector<8x128xf32>
    %499 = arith.mulf %490, %471 : vector<8x128xf32>
    %500 = arith.mulf %484, %492 : vector<8x128xf32>
    %501 = arith.addf %499, %500 : vector<8x128xf32>
    %502 = math.tanh %501 : vector<8x128xf32>
    %503 = arith.mulf %498, %502 : vector<8x128xf32>
    %504 = arith.truncf %503 : vector<8x128xf32> to vector<8x128xbf16>
    %c0_149 = arith.constant 0 : index
    %c0_150 = arith.constant 0 : index
    %505 = vector.load %arg8[%c0_149, %c0_150] : memref<128x4xbf16, #tpu.memory_space<vmem>>, vector<128x4xbf16>
    %cst_151 = arith.constant dense<0.000000e+00> : vector<8x4xf32>
    %506 = tpu.matmul %504, %505, %cst_151 {dimension_numbers = #tpu.dot_dimension_numbers<[1], [0], [0], [1], [0, 0, 1, 1], [], []>} : vector<8x128xbf16>, vector<128x4xbf16>, vector<8x4xf32> -> vector<8x4xf32>
    %c0_152 = arith.constant 0 : index
    %c0_153 = arith.constant 0 : index
    %507 = vector.load %arg9[%c0_152, %c0_153] : memref<1x4xf32, #tpu.memory_space<vmem>>, vector<1x4xf32>
    %508 = vector.broadcast %507 : vector<1x4xf32> to vector<8x4xf32>
    %509 = arith.addf %506, %508 : vector<8x4xf32>
    %510 = arith.negf %509 : vector<8x4xf32>
    %511 = math.exp %510 : vector<8x4xf32>
    %cst_154 = arith.constant 1.000000e+00 : f32
    %512 = vector.broadcast %cst_154 : f32 to vector<8x4xf32>
    %513 = arith.addf %512, %511 : vector<8x4xf32>
    %514 = arith.divf %512, %513 : vector<8x4xf32>
    %515 = vector.extract_strided_slice %514 {offsets = [0, 0], sizes = [2, 4], strides = [1, 1]} : vector<8x4xf32> to vector<2x4xf32>
    %c0_155 = arith.constant 0 : index
    %c0_156 = arith.constant 0 : index
    %516 = vector.load %arg10[%c0_155, %c0_156] : memref<2x4xf32, #tpu.memory_space<vmem>>, vector<2x4xf32>
    tpu.vector_store %arg10[%c0_155, %c0_156], %515 {strides = array<i32>} : memref<2x4xf32, #tpu.memory_space<vmem>>, vector<2x4xf32>,
    return
  }
  func.func @transform_0(%arg0: i32) -> (i32, i32) {
    %c0_i32 = arith.constant 0 : i32
    %c0_i32_0 = arith.constant 0 : i32
    %c0_i32_1 = arith.constant 0 : i32
    return %c0_i32, %c0_i32_0 : i32, i32
  }
  func.func @transform_1(%arg0: i32) -> (i32, i32) {
    %c0_i32 = arith.constant 0 : i32
    %c0_i32_0 = arith.constant 0 : i32
    %c0_i32_1 = arith.constant 0 : i32
    return %c0_i32, %c0_i32_0 : i32, i32
  }
  func.func @transform_2(%arg0: i32) -> (i32, i32) {
    %c0_i32 = arith.constant 0 : i32
    %c0_i32_0 = arith.constant 0 : i32
    %c0_i32_1 = arith.constant 0 : i32
    return %c0_i32, %c0_i32_0 : i32, i32
  }
  func.func @transform_3(%arg0: i32) -> (i32, i32) {
    %c0_i32 = arith.constant 0 : i32
    %c0_i32_0 = arith.constant 0 : i32
    %c0_i32_1 = arith.constant 0 : i32
    return %c0_i32, %c0_i32_0 : i32, i32
  }
  func.func @transform_4(%arg0: i32) -> (i32, i32) {
    %c0_i32 = arith.constant 0 : i32
    %c0_i32_0 = arith.constant 0 : i32
    %c0_i32_1 = arith.constant 0 : i32
    return %c0_i32, %c0_i32_0 : i32, i32
  }
  func.func @transform_5(%arg0: i32) -> (i32, i32) {
    %c0_i32 = arith.constant 0 : i32
    %c0_i32_0 = arith.constant 0 : i32
    %c0_i32_1 = arith.constant 0 : i32
    return %c0_i32, %c0_i32_0 : i32, i32
  }
  func.func @transform_6(%arg0: i32) -> (i32, i32) {
    %c0_i32 = arith.constant 0 : i32
    %c0_i32_0 = arith.constant 0 : i32
    %c0_i32_1 = arith.constant 0 : i32
    return %c0_i32, %c0_i32_0 : i32, i32
  }
  func.func @transform_7(%arg0: i32) -> (i32, i32) {
    %c0_i32 = arith.constant 0 : i32
    %c0_i32_0 = arith.constant 0 : i32
    %c0_i32_1 = arith.constant 0 : i32
    return %c0_i32, %c0_i32_0 : i32, i32
  }
  func.func @transform_8(%arg0: i32) -> (i32, i32) {
    %c0_i32 = arith.constant 0 : i32
    %c0_i32_0 = arith.constant 0 : i32
    %c0_i32_1 = arith.constant 0 : i32
    return %c0_i32, %c0_i32_0 : i32, i32
  }
  func.func @transform_9(%arg0: i32) -> (i32, i32) {
    %c0_i32 = arith.constant 0 : i32
    %c0_i32_0 = arith.constant 0 : i32
    %c0_i32_1 = arith.constant 0 : i32
    return %c0_i32, %c0_i32_0 : i32, i32
  }
}

</mosaic_0001>

<bundles_post_ra>
// kernel: lstm_forward.1
= control target key start
LH: loop header
LB: loop body
LE: loop exit
PB: predicated region body
PF: predicated region fallthrough
CT: control target
= control target key end

     0   :  { %v6576_v2 = vmov 0   ;;  %vm108_vm0 = vcmask 130048   ;;  %s6562_s0 = inlined_call_operand.vmem [shape: bf16[64,16], index: 0, kind: input, shape index: {}]   ;;  %s6563_s1 = inlined_call_operand.vmem [shape: bf16[16,512], index: 1, kind: input, shape index: {}]   ;;  %s6564_s2 = inlined_call_operand.vmem [shape: bf16[128,512], index: 2, kind: input, shape index: {}]   ;;  %s6565_s3 = inlined_call_operand.vmem [shape: f32[1,512], index: 3, kind: input, shape index: {}]   ;;  %s6566_s4 = inlined_call_operand.vmem [shape: bf16[128,512], index: 4, kind: input, shape index: {}]   ;;  %s6567_s5 = inlined_call_operand.vmem [shape: bf16[128,512], index: 5, kind: input, shape index: {}]   ;;  %s6568_s6 = inlined_call_operand.vmem [shape: f32[1,512], index: 6, kind: input, shape index: {}]   ;;  %s6569_s7 = inlined_call_operand.vmem [shape: bf16[128,4], index: 7, kind: input, shape index: {}]   ;;  %s6570_s8 = inlined_call_operand.vmem [shape: f32[1,4], index: 8, kind: input, shape index: {}]   ;;  %s6571_s9 = inlined_call_operand.hbm [shape: f32[2,4], index: 9, kind: output, shape index: {}]  }
   0x1   :  { %v4447_v0 = vld [vmem:[%s6563_s1 + $0x4] ss:$16 sps:$4 sm:$0xff]   ;;  %v4449_v1 = vld [vmem:[%s6563_s1] ss:$16 sps:$4 sm:$0xff]   ;;  %153 = vmatprep.mubr.bf16.mxu0 %v6576_v2  ;;  %226 = vmatprep.mubr.bf16.mxu1 %v6576_v2  ;;  %v4451_v4 = vld [vmem:[%s6563_s1 + $0xc] ss:$16 sps:$4 sm:$0xff]  }
   0x2   :  { %121 = vmatprep.subr.bf16.mxu0 %v4447_v0  ;;  %v4450_v3 = vld [vmem:[%s6562_s0] sm:$0xff]   ;;  %v4453_v5 = vld [vmem:[%s6563_s1 + $0x8] ss:$16 sps:$4 sm:$0xff]   ;;  %194 = vmatprep.subr.bf16.mxu1 %v4451_v4 }
   0x3   :  { %122 = vmatpush1.bf16.msra.mxu0 %v4449_v1  ;;  %195 = vmatpush1.bf16.msra.mxu1 %v4453_v5 }
   0x6   :  { %4060 = vmatmul.mubr.msk.bf16.vlgmr.msra.gmra.mrb[0].mxu0 %vm108_vm0, %v4450_v3  ;;  %4064 = vmatmul.mubr.msk.bf16.vlgmr.msra.gmra.mrb[0].mxu1 %vm108_vm0, %v4450_v3 }
   0x7   :  { %163 = vmatprep.mubr.bf16.mxu0 %v6576_v2  ;;  %236 = vmatprep.mubr.bf16.mxu1 %v6576_v2 }
   0x8   :  { %14 = vsyncpa [#allocation5], 0  ;;  %v5051_v6 = vld [vmem:[%s6564_s2 + $0x4] ss:$16 sps:$4 sm:$0xff]   ;;  %v5056_v7 = vld [vmem:[%s6564_s2 + $0xc] ss:$16 sps:$4 sm:$0xff]   ;;  %v48_v41 = vlaneseq }
   0x9   :  { %v5061_v8 = vld [vmem:[%s6564_s2] ss:$16 sps:$4 sm:$0xff]   ;;  %v5066_v9 = vld [vmem:[%s6564_s2 + $0x8] ss:$16 sps:$4 sm:$0xff]   ;;  %525 = vmatprep.subr.bf16.mxu0 %v5051_v6  ;;  %566 = vmatprep.subr.bf16.mxu1 %v5056_v7  ;;  %v5075_v10 = vld [vmem:[%s6564_s2 + $0x24] ss:$16 sps:$4 sm:$0xff]  }
   0xa   :  { %526 = vmatpush1.bf16.msra.mxu0 %v5061_v8  ;;  %567 = vmatpush1.bf16.msra.mxu1 %v5066_v9  ;;  %v5080_v11 = vld [vmem:[%s6564_s2 + $0x2c] ss:$16 sps:$4 sm:$0xff]   ;;  %v5085_v12 = vld [vmem:[%s6564_s2 + $0x20] ss:$16 sps:$4 sm:$0xff]   ;;  %v5090_v13 = vld [vmem:[%s6564_s2 + $0x28] ss:$16 sps:$4 sm:$0xff]  }
   0xb   :  { %v4466_v14 = vld [vmem:[%s6562_s0 + $0x8] sm:$0xff]   ;;  %527 = vmatprep.subr.bf16.mxu0 %v5075_v10  ;;  %568 = vmatprep.subr.bf16.mxu1 %v5080_v11  ;;  %v5103_v15 = vld [vmem:[%s6564_s2 + $0x44] ss:$16 sps:$4 sm:$0xff]   ;;  %v5114_v17 = vld [vmem:[%s6564_s2 + $0x40] ss:$16 sps:$4 sm:$0xff]   ;;  %v5263_v42 = vshrl.u32 %v48_v41, 7 }
   0xc   :  { %v5109_v16 = vld [vmem:[%s6564_s2 + $0x4c] ss:$16 sps:$4 sm:$0xff]   ;;  %v5119_v18 = vld [vmem:[%s6564_s2 + $0x48] ss:$16 sps:$4 sm:$0xff]   ;;  %v5130_v19 = vld [vmem:[%s6564_s2 + $0x64] ss:$16 sps:$4 sm:$0xff]  }
   0xd   :  { %v5135_v20 = vld [vmem:[%s6564_s2 + $0x6c] ss:$16 sps:$4 sm:$0xff]   ;;  %v5140_v21 = vld [vmem:[%s6564_s2 + $0x60] ss:$16 sps:$4 sm:$0xff]   ;;  %v5145_v22 = vld [vmem:[%s6564_s2 + $0x68] ss:$16 sps:$4 sm:$0xff]  }
   0xe   :  { %528 = vmatpush1.bf16.msra.mxu0 %v5085_v12  ;;  %569 = vmatpush1.bf16.msra.mxu1 %v5090_v13  ;;  %v4479_v23 = vld [vmem:[%s6562_s0 + $0x10] sm:$0xff]   ;;  %v5164_v25 = vld [vmem:[%s6564_s2 + $0x8c] ss:$16 sps:$4 sm:$0xff]   ;;  %v5174_v27 = vld [vmem:[%s6564_s2 + $0x88] ss:$16 sps:$4 sm:$0xff]   ;;  %6580 = vst [vmem:[#allocation7_spill] sm:$0xff] %v5263_v42 }
   0xf   :  { %4061 = vmatmul.mubr.msk.bf16.gmra.mrb[4].mxu0 %vm108_vm0, %v4466_v14  ;;  %4065 = vmatmul.mubr.msk.bf16.gmra.mrb[4].mxu1 %vm108_vm0, %v4466_v14  ;;  %v5158_v24 = vld [vmem:[%s6564_s2 + $0x84] ss:$16 sps:$4 sm:$0xff]   ;;  %v5169_v26 = vld [vmem:[%s6564_s2 + $0x80] ss:$16 sps:$4 sm:$0xff]   ;;  %v5195_v30 = vld [vmem:[%s6564_s2 + $0xa8] ss:$16 sps:$4 sm:$0xff]  }
  0x10   :  { %173 = vmatprep.mubr.bf16.mxu0 %v6576_v2  ;;  %246 = vmatprep.mubr.bf16.mxu1 %v6576_v2  ;;  %v5185_v28 = vld [vmem:[%s6564_s2 + $0xa0] ss:$16 sps:$4 sm:$0xff]   ;;  %v5190_v29 = vld [vmem:[%s6564_s2 + $0xa4] ss:$16 sps:$4 sm:$0xff]   ;;  %v5200_v31 = vld [vmem:[%s6564_s2 + $0xac] ss:$16 sps:$4 sm:$0xff]  }
  0x11   :  { %529 = vmatprep.subr.bf16.mxu0 %v5103_v15  ;;  %570 = vmatprep.subr.bf16.mxu1 %v5109_v16  ;;  %v4492_v32 = vld [vmem:[%s6562_s0 + $0x18] sm:$0xff]   ;;  %v5209_v33 = vld [vmem:[%s6564_s2 + $0xc4] ss:$16 sps:$4 sm:$0xff]   ;;  %v5222_v35 = vld [vmem:[%s6564_s2 + $0xc0] ss:$16 sps:$4 sm:$0xff]   ;;  %v6575_v43 = vsub.s32 0, %v5263_v42 }
  0x12   :  { %530 = vmatpush1.bf16.msra.mxu0 %v5114_v17  ;;  %571 = vmatpush1.bf16.msra.mxu1 %v5119_v18  ;;  %v5214_v34 = vld [vmem:[%s6564_s2 + $0xcc] ss:$16 sps:$4 sm:$0xff]   ;;  %v5227_v36 = vld [vmem:[%s6564_s2 + $0xc8] ss:$16 sps:$4 sm:$0xff]   ;;  %v5234_v37 = vld [vmem:[%s6564_s2 + $0xe4] ss:$16 sps:$4 sm:$0xff]  }
  0x13   :  { %531 = vmatprep.subr.bf16.mxu0 %v5130_v19  ;;  %572 = vmatprep.subr.bf16.mxu1 %v5135_v20  ;;  %v5239_v38 = vld [vmem:[%s6564_s2 + $0xec] ss:$16 sps:$4 sm:$0xff]   ;;  %v5250_v39 = vld [vmem:[%s6564_s2 + $0xe0] ss:$16 sps:$4 sm:$0xff]   ;;  %v5255_v40 = vld [vmem:[%s6564_s2 + $0xe8] ss:$16 sps:$4 sm:$0xff]  }
  0x14   :  { %v46_v44 = vld [vmem:[%s6565_s3] sm:$0xf]  ;;  %v6574_v45 = vsub.s32 1, %v5263_v42  ;;  %v6573_v48 = vsub.s32 3, %v5263_v42  ;;  %v6572_v59 = vsub.s32 2, %v5263_v42  ;;  %vm4975_vm1 = vmmov 0  }
  0x15   :  { %v5272_v46 = vrot.slane %v46_v44, %v6575_v43  ;;  %s4976_s16 = smov [#allocation4]   ;;  %vm4036_vm2 = vcmask 25600  }
  0x16   :  { %532 = vmatpush1.bf16.msra.mxu0 %v5140_v21  ;;  %573 = vmatpush1.bf16.msra.mxu1 %v5145_v22  ;;  %v5276_v47 = vrot.slane %v46_v44, %v6574_v45  ;;  %v5287_v57 = vrot.slane %v46_v44, %v6573_v48  ;;  %v5297_v0 = vrot.slane %v46_v44, %v6572_v59 }
  0x17   :  { %4062 = vmatmul.mubr.msk.bf16.gmra.mrb[8].mxu0 %vm108_vm0, %v4479_v23  ;;  %4066 = vmatmul.mubr.msk.bf16.gmra.mrb[8].mxu1 %vm108_vm0, %v4479_v23 }
  0x18   :  { %183 = vmatprep.mubr.bf16.mxu0 %v6576_v2  ;;  %256 = vmatprep.mubr.bf16.mxu1 %v6576_v2 }
  0x19   :  { %533 = vmatprep.subr.bf16.mxu0 %v5158_v24  ;;  %574 = vmatprep.subr.bf16.mxu1 %v5164_v25 }
  0x1a   :  { %534 = vmatpush1.bf16.msra.mxu0 %v5169_v26  ;;  %575 = vmatpush1.bf16.msra.mxu1 %v5174_v27 }
  0x1b   :  { %535 = vmatprep.subr.bf16.mxu0 %v5190_v29  ;;  %576 = vmatprep.subr.bf16.mxu1 %v5200_v31 }
  0x1e   :  { %536 = vmatpush1.bf16.msra.mxu0 %v5185_v28  ;;  %577 = vmatpush1.bf16.msra.mxu1 %v5195_v30 }
  0x1f   :  { %4063 = vmatmul.mubr.msk.bf16.gmra.mrb[12].mxu0 %vm108_vm0, %v4492_v32  ;;  %537 = vmatprep.subr.bf16.mxu0 %v5209_v33 }
  0x20   :  { %4067 = vmatmul.mubr.msk.bf16.gmra.mrb[12].mxu1 %vm108_vm0, %v4492_v32  ;;  %578 = vmatprep.subr.bf16.mxu1 %v5214_v34 }
  0x21   :  { %557 = vmatprep.mubr.bf16.mxu0 %v6576_v2  ;;  %598 = vmatprep.mubr.bf16.mxu1 %v6576_v2 }
  0x22   :  { %538 = vmatpush1.bf16.msra.mxu0 %v5222_v35  ;;  %579 = vmatpush1.bf16.msra.mxu1 %v5227_v36 }
  0x23   :  { %539 = vmatprep.subr.bf16.mxu0 %v5234_v37  ;;  %580 = vmatprep.subr.bf16.mxu1 %v5239_v38 }
  0x26   :  { %540 = vmatpush1.bf16.msra.mxu0 %v5250_v39  ;;  %581 = vmatpush1.bf16.msra.mxu1 %v5255_v40 }
  0x27   :  { %836 = vmatprep.subr.bf16.mxu0 %v5051_v6  ;;  %877 = vmatprep.subr.bf16.mxu1 %v5056_v7 }
  0xd9   :  { %v155_v49 = vpop.f32.mrb[0].mxu0  ;;  %v228_v56 = vpop.f32.mrb[0].mxu1 }
  0xda   :  { %v156_v50 = vadd.f32 %v155_v49, %v5272_v46  ;;  %v157_v51 = vpop.f32.mrb[1].mxu0  ;;  %v230_v60 = vpop.f32.mrb[1].mxu1  ;;  %v229_v3 = vadd.f32 %v228_v56, %v5297_v0 }
  0xdb   :  { %v158_v52 = vadd.f32 %v157_v51, %v5276_v47  ;;  %v5281_v53 = vpop.f32.mrb[2].mxu0  ;;  %v5290_v61 = vpop.f32.mrb[2].mxu1  ;;  %v231_v63 = vadd.f32 %v230_v60, %v5287_v57 }
  0xdc   :  { %v4068_v54 = vmul.f32 -1.442695, %v156_v50  ;;  %v5283_v55 = vpop.f32.mrb[3].mxu0  ;;  %v5292_v62 = vpop.f32.mrb[3].mxu1 }
  0xdd   :  { %v4069_v58 = vmul.f32 -1.442695, %v158_v52  ;;  %v4070_v1 = vmul.f32 -1.442695, %v231_v63 }
  0xde   :  { %4657 = vpow2.f32 %v4068_v54 }
  0xdf   :  { %4659 = vpow2.f32 %v4069_v58 }
  0xe0   :  { %4661 = vpow2.f32 %v4070_v1 }
  0xe1   :  { %4663 = vtanh.f32 %v229_v3 }
  0xe2   :  { %v5337_v1 = vpop.f32.mrb[4].mxu0  ;;  %v5339_v3 = vpop.f32.mrb[4].mxu1 }
  0xe8   :  { %v4658_v4 = vpop.eup %4657 }
  0xe9   :  { %v4660_v5 = vpop.eup %4659  ;;  %v306_v14 = vadd.f32 1.0, %v4658_v4  ;;  %v5341_v4 = vpop.f32.mrb[5].mxu0 }
  0xea   :  { %v312_v23 = vadd.f32 1.0, %v4660_v5  ;;  %v4662_v32 = vpop.eup %4661  ;;  %v5343_v5 = vpop.f32.mrb[5].mxu1 }
  0xeb   :  { %4665 = vrcp.f32 %v306_v14  ;;  %v4664_v41 = vpop.eup %4663  ;;  %v319_v50 = vadd.f32 1.0, %v4662_v32  ;;  %v5345_v14 = vpop.f32.mrb[6].mxu0 }
  0xec   :  { %4667 = vrcp.f32 %v312_v23  ;;  %v5347_v23 = vpop.f32.mrb[6].mxu1  ;;  %v5349_v32 = vpop.f32.mrb[7].mxu0 }
  0xed   :  { %4669 = vrcp.f32 %v319_v50  ;;  %6581 = vst [vmem:[#allocation8_spill] sm:$0xff] %v5347_v23  ;;  %6582 = vst [vmem:[#allocation9_spill] sm:$0xff] %v5349_v32 }
  0xf5   :  { %v4666_v49 = vpop.eup %4665 }
  0xf6   :  { %v4668_v51 = vpop.eup %4667  ;;  %v323_v52 = vmul.f32 %v4666_v49, %v4664_v41  ;;  %v5351_v41 = vpop.f32.mrb[7].mxu1 }
  0xf7   :  { %v322_v54 = vmul.f32 0.0, %v4668_v51  ;;  %v4670_v56 = vpop.eup %4669  ;;  %6583 = vst [vmem:[#allocation10_spill] sm:$0xff] %v5351_v41  ;;  %v5353_v49 = vpop.f32.mrb[8].mxu0 }
  0xf8   :  { %6584 = vst [vmem:[#allocation11_spill] sm:$0xff] %v5353_v49  ;;  %v5355_v50 = vpop.f32.mrb[8].mxu1  ;;  %v5357_v51 = vpop.f32.mrb[9].mxu0 }
  0xf9   :  { %v5300_v44 = vadd.f32 %v323_v52, %v322_v54  ;;  %6585 = vst [vmem:[#allocation12_spill] sm:$0xff] %v5355_v50  ;;  %6586 = vst [vmem:[#allocation13_spill] sm:$0xff] %v5357_v51  ;;  %v5359_v52 = vpop.f32.mrb[9].mxu1  ;;  %v5361_v54 = vpop.f32.mrb[10].mxu0 }
  0xfa   :  { %6587 = vst [vmem:[#allocation14_spill] sm:$0xff] %v5359_v52  ;;  %6588 = vst [vmem:[#allocation15_spill] sm:$0xff] %v5361_v54 }
  0xfb   :  { %4671 = vtanh.f32 %v5300_v44 }
 0x105   :  { %v4672_v58 = vpop.eup %4671 }
 0x106   :  { %v326_v60 = vmul.f32 %v4672_v58, %v4670_v56  ;;  %v5363_v56 = vpop.f32.mrb[10].mxu1  ;;  %v5365_v58 = vpop.f32.mrb[11].mxu0 }
 0x107   :  { %6589 = vst [vmem:[#allocation16_spill] sm:$0xff] %v5363_v56  ;;  %6590 = vst [vmem:[#allocation17_spill] sm:$0xff] %v5365_v58  ;;  %v160_v58 = vadd.f32 %v5281_v53, %v5272_v46 }
 0x108   :  { %v327_v63 = vpack.c.bf16 %v326_v60, %v326_v60  ;;  %v5367_v60 = vpop.f32.mrb[11].mxu1 }
 0x109   :  { %6591 = vst [vmem:[#allocation18_spill] sm:$0xff] %v5367_v60  ;;  %v5373_v48 = vpop.f32.mrb[12].mxu1 }
 0x10a   :  { %328 = vst [vmem:[#allocation3] sm:$0xf] %v327_v63  ;;  %558 = vmatmul.mubr.bf16.vlgmr.msra.gmra.mrb[16].mxu0 %v327_v63  ;;  %599 = vmatmul.mubr.bf16.vlgmr.msra.gmra.mrb[16].mxu1 %v327_v63  ;;  %v5369_v63 = vpop.f32.mrb[12].mxu0  ;;  %6594 = vst [vmem:[#allocation21_spill] sm:$0xff] %v5373_v48  ;;  %v5377_v43 = vpop.f32.mrb[13].mxu1 }
 0x10b   :  { %837 = vmatpush1.bf16.msra.mxu0 %v5061_v8  ;;  %878 = vmatpush1.bf16.msra.mxu1 %v5066_v9  ;;  %6592 = vst [vmem:[#allocation19_spill] sm:$0xff] %v5369_v63  ;;  %v5371_v59 = vpop.f32.mrb[13].mxu0  ;;  %6596 = vst [vmem:[#allocation23_spill] sm:$0xff] %v5377_v43  ;;  %v5381_v42 = vpop.f32.mrb[14].mxu1  ;;  %v233_v63 = vadd.f32 %v5290_v61, %v5297_v0 }
 0x10c   :  { %838 = vmatprep.subr.bf16.mxu0 %v5075_v10  ;;  %879 = vmatprep.subr.bf16.mxu1 %v5080_v11  ;;  %6593 = vst [vmem:[#allocation20_spill] sm:$0xff] %v5371_v59  ;;  %v5375_v45 = vpop.f32.mrb[14].mxu0  ;;  %6598 = vst [vmem:[#allocation25_spill] sm:$0xff] %v5381_v42  ;;  %v5383_v54 = vpop.f32.mrb[15].mxu1  ;;  %v162_v59 = vadd.f32 %v5283_v55, %v5276_v47 }
 0x10d   :  { %868 = vmatprep.mubr.bf16.mxu0 %v6576_v2  ;;  %909 = vmatprep.mubr.bf16.mxu1 %v6576_v2  ;;  %6595 = vst [vmem:[#allocation22_spill] sm:$0xff] %v5375_v45  ;;  %v5379_v2 = vpop.f32.mrb[15].mxu0  ;;  %6599 = vst [vmem:[#allocation26_spill] sm:$0xff] %v5383_v54  ;;  %v235_v45 = vadd.f32 %v5292_v62, %v5287_v57 }
 0x10e   :  { %6597 = vst [vmem:[#allocation24_spill] sm:$0xff] %v5379_v2 }
 0x10f   :  { %839 = vmatpush1.bf16.msra.mxu0 %v5085_v12  ;;  %880 = vmatpush1.bf16.msra.mxu1 %v5090_v13 }
 0x110   :  { %840 = vmatprep.subr.bf16.mxu0 %v5103_v15  ;;  %881 = vmatprep.subr.bf16.mxu1 %v5109_v16 }
 0x113   :  { %841 = vmatpush1.bf16.msra.mxu0 %v5114_v17  ;;  %882 = vmatpush1.bf16.msra.mxu1 %v5119_v18 }
 0x114   :  { %842 = vmatprep.subr.bf16.mxu0 %v5130_v19  ;;  %883 = vmatprep.subr.bf16.mxu1 %v5135_v20 }
 0x117   :  { %843 = vmatpush1.bf16.msra.mxu0 %v5140_v21  ;;  %884 = vmatpush1.bf16.msra.mxu1 %v5145_v22 }
 0x118   :  { %844 = vmatprep.subr.bf16.mxu0 %v5158_v24  ;;  %885 = vmatprep.subr.bf16.mxu1 %v5164_v25 }
 0x11b   :  { %845 = vmatpush1.bf16.msra.mxu0 %v5169_v26  ;;  %886 = vmatpush1.bf16.msra.mxu1 %v5174_v27 }
 0x11c   :  { %846 = vmatprep.subr.bf16.mxu0 %v5190_v29  ;;  %887 = vmatprep.subr.bf16.mxu1 %v5200_v31 }
 0x11f   :  { %847 = vmatpush1.bf16.msra.mxu0 %v5185_v28  ;;  %888 = vmatpush1.bf16.msra.mxu1 %v5195_v30 }
 0x120   :  { %848 = vmatprep.subr.bf16.mxu0 %v5209_v33  ;;  %889 = vmatprep.subr.bf16.mxu1 %v5214_v34 }
 0x123   :  { %849 = vmatpush1.bf16.msra.mxu0 %v5222_v35  ;;  %890 = vmatpush1.bf16.msra.mxu1 %v5227_v36 }
 0x124   :  { %850 = vmatprep.subr.bf16.mxu0 %v5234_v37  ;;  %891 = vmatprep.subr.bf16.mxu1 %v5239_v38 }
 0x127   :  { %851 = vmatpush1.bf16.msra.mxu0 %v5250_v39  ;;  %892 = vmatpush1.bf16.msra.mxu1 %v5255_v40 }
 0x128   :  { %1144 = vmatprep.subr.bf16.mxu0 %v5051_v6  ;;  %1185 = vmatprep.subr.bf16.mxu1 %v5056_v7 }
 0x1dd   :  { %v559_v48 = vpop.f32.mrb[16].mxu0  ;;  %v600_v43 = vpop.f32.mrb[16].mxu1 }
 0x1de   :  { %v607_v60 = vadd.f32 %v559_v48, %v160_v58  ;;  %v609_v2 = vadd.f32 %v600_v43, %v233_v63  ;;  %v561_v56 = vpop.f32.mrb[17].mxu0  ;;  %v602_v42 = vpop.f32.mrb[17].mxu1  ;;  %v239_v58 = vadd.f32 %v5339_v3, %v5297_v0  ;;  %v241_v63 = vadd.f32 %v5343_v5, %v5287_v57 }
 0x1df   :  { %v608_v52 = vadd.f32 %v561_v56, %v162_v59  ;;  %v610_v54 = vadd.f32 %v602_v42, %v235_v45  ;;  %v563_v51 = vpop.f32.mrb[18].mxu0  ;;  %v604_v50 = vpop.f32.mrb[18].mxu1  ;;  %v166_v56 = vadd.f32 %v5337_v1, %v5272_v46 }
 0x1e0   :  { %v4103_v53 = vmul.f32 -1.442695, %v607_v60  ;;  %v564_v49 = vpop.f32.mrb[19].mxu0  ;;  %v605_v41 = vpop.f32.mrb[19].mxu1  ;;  %v168_v60 = vadd.f32 %v5341_v4, %v5276_v47 }
 0x1e1   :  { %v4104_v61 = vmul.f32 -1.442695, %v608_v52  ;;  %v4105_v55 = vmul.f32 -1.442695, %v610_v54 }
 0x1e2   :  { %4673 = vpow2.f32 %v4103_v53 }
 0x1e3   :  { %4675 = vpow2.f32 %v4104_v61 }
 0x1e4   :  { %4677 = vpow2.f32 %v4105_v55 }
 0x1e5   :  { %4679 = vtanh.f32 %v609_v2 }
 0x1ec   :  { %v4674_v32 = vpop.eup %4673 }
 0x1ed   :  { %v4676_v23 = vpop.eup %4675  ;;  %v614_v62 = vadd.f32 1.0, %v4674_v32 }
 0x1ee   :  { %v620_v48 = vadd.f32 1.0, %v4676_v23  ;;  %v4678_v43 = vpop.eup %4677 }
 0x1ef   :  { %4681 = vrcp.f32 %v614_v62  ;;  %v4680_v59 = vpop.eup %4679  ;;  %v627_v51 = vadd.f32 1.0, %v4678_v43 }
 0x1f0   :  { %4683 = vrcp.f32 %v620_v48 }
 0x1f1   :  { %4685 = vrcp.f32 %v627_v51 }
 0x1f9   :  { %v4682_v42 = vpop.eup %4681 }
 0x1fa   :  { %v4684_v45 = vpop.eup %4683  ;;  %v631_v50 = vmul.f32 %v4682_v42, %v4680_v59 }
 0x1fb   :  { %v630_v41 = vmul.f32 %v4684_v45, %v5300_v44  ;;  %v4686_v52 = vpop.eup %4685  ;;  %v6600_v44 = vmov 0  }
 0x1fd   :  { %v5394_v49 = vadd.f32 %v631_v50, %v630_v41 }
 0x1ff   :  { %4687 = vtanh.f32 %v5394_v49 }
 0x209   :  { %v4688_v32 = vpop.eup %4687 }
 0x20a   :  { %v634_v54 = vmul.f32 %v4688_v32, %v4686_v52 }
 0x20c   :  { %v635_v2 = vpack.c.bf16 %v634_v54, %v634_v54 }
 0x20e   :  { %v637_v23 = vrot.slane %v635_v2, 4  ;;  %869 = vmatmul.mubr.bf16.vlgmr.msra.gmra.mrb[20].mxu0 %v635_v2  ;;  %910 = vmatmul.mubr.bf16.vlgmr.msra.gmra.mrb[20].mxu1 %v635_v2 }
 0x20f   :  { %1145 = vmatpush1.bf16.msra.mxu0 %v5061_v8  ;;  %1186 = vmatpush1.bf16.msra.mxu1 %v5066_v9 }
 0x210   :  { %639 = vst [vmem:[#allocation3] sm:$0xf0] %v637_v23  ;;  %1146 = vmatprep.subr.bf16.mxu0 %v5075_v10  ;;  %1187 = vmatprep.subr.bf16.mxu1 %v5080_v11 }
 0x211   :  { %1176 = vmatprep.mubr.bf16.mxu0 %v6600_v44  ;;  %1217 = vmatprep.mubr.bf16.mxu1 %v6600_v44 }
 0x213   :  { %1147 = vmatpush1.bf16.msra.mxu0 %v5085_v12  ;;  %1188 = vmatpush1.bf16.msra.mxu1 %v5090_v13 }
 0x214   :  { %1148 = vmatprep.subr.bf16.mxu0 %v5103_v15  ;;  %1189 = vmatprep.subr.bf16.mxu1 %v5109_v16 }
 0x217   :  { %1149 = vmatpush1.bf16.msra.mxu0 %v5114_v17  ;;  %1190 = vmatpush1.bf16.msra.mxu1 %v5119_v18 }
 0x218   :  { %1150 = vmatprep.subr.bf16.mxu0 %v5130_v19  ;;  %1191 = vmatprep.subr.bf16.mxu1 %v5135_v20 }
 0x21b   :  { %1151 = vmatpush1.bf16.msra.mxu0 %v5140_v21  ;;  %1192 = vmatpush1.bf16.msra.mxu1 %v5145_v22 }
 0x21c   :  { %1152 = vmatprep.subr.bf16.mxu0 %v5158_v24  ;;  %1193 = vmatprep.subr.bf16.mxu1 %v5164_v25 }
 0x21f   :  { %1153 = vmatpush1.bf16.msra.mxu0 %v5169_v26  ;;  %1194 = vmatpush1.bf16.msra.mxu1 %v5174_v27 }
 0x220   :  { %1154 = vmatprep.subr.bf16.mxu0 %v5190_v29  ;;  %1195 = vmatprep.subr.bf16.mxu1 %v5200_v31 }
 0x223   :  { %1155 = vmatpush1.bf16.msra.mxu0 %v5185_v28  ;;  %1196 = vmatpush1.bf16.msra.mxu1 %v5195_v30 }
 0x224   :  { %1156 = vmatprep.subr.bf16.mxu0 %v5209_v33  ;;  %1197 = vmatprep.subr.bf16.mxu1 %v5214_v34 }
 0x227   :  { %1157 = vmatpush1.bf16.msra.mxu0 %v5222_v35  ;;  %1198 = vmatpush1.bf16.msra.mxu1 %v5227_v36 }
 0x228   :  { %1158 = vmatprep.subr.bf16.mxu0 %v5234_v37  ;;  %1199 = vmatprep.subr.bf16.mxu1 %v5239_v38 }
 0x22b   :  { %1159 = vmatpush1.bf16.msra.mxu0 %v5250_v39  ;;  %1200 = vmatpush1.bf16.msra.mxu1 %v5255_v40 }
 0x22c   :  { %1455 = vmatprep.subr.bf16.mxu0 %v5051_v6  ;;  %1496 = vmatprep.subr.bf16.mxu1 %v5056_v7 }
 0x2e1   :  { %v870_v53 = vpop.f32.mrb[20].mxu0  ;;  %v911_v61 = vpop.f32.mrb[20].mxu1 }
 0x2e2   :  { %v918_v55 = vadd.f32 %v870_v53, %v166_v56  ;;  %v920_v62 = vadd.f32 %v911_v61, %v239_v58  ;;  %v872_v48 = vpop.f32.mrb[21].mxu0  ;;  %v913_v6 = vpop.f32.mrb[21].mxu1 }
 0x2e3   :  { %v919_v43 = vadd.f32 %v872_v48, %v168_v60  ;;  %v921_v7 = vadd.f32 %v913_v6, %v241_v63  ;;  %v874_v59 = vpop.f32.mrb[22].mxu0  ;;  %v915_v42 = vpop.f32.mrb[22].mxu1 }
 0x2e4   :  { %v4138_v1 = vmul.f32 -1.442695, %v918_v55  ;;  %v875_v45 = vpop.f32.mrb[23].mxu0  ;;  %v916_v50 = vpop.f32.mrb[23].mxu1 }
 0x2e5   :  { %v4139_v3 = vmul.f32 -1.442695, %v919_v43  ;;  %v4140_v4 = vmul.f32 -1.442695, %v921_v7  ;;  %v5492_v45 = vld [vmem:[%s6564_s2 + $0x4] ss:$16 sps:$4 sm:$0xff]  }
 0x2e6   :  { %4689 = vpow2.f32 %v4138_v1  ;;  %v5497_v50 = vld [vmem:[%s6564_s2 + $0xc] ss:$16 sps:$4 sm:$0xff]  }
 0x2e7   :  { %4691 = vpow2.f32 %v4139_v3  ;;  %v5502_v3 = vld [vmem:[%s6564_s2] ss:$16 sps:$4 sm:$0xff]  }
 0x2e8   :  { %4693 = vpow2.f32 %v4140_v4  ;;  %v5507_v4 = vld [vmem:[%s6564_s2 + $0x8] ss:$16 sps:$4 sm:$0xff]  }
 0x2e9   :  { %4695 = vtanh.f32 %v920_v62 }
 0x2f0   :  { %v4690_v51 = vpop.eup %4689 }
 0x2f1   :  { %v4692_v41 = vpop.eup %4691  ;;  %v925_v5 = vadd.f32 1.0, %v4690_v51  ;;  %v5516_v51 = vld [vmem:[%s6564_s2 + $0x24] ss:$16 sps:$4 sm:$0xff]  }
 0x2f2   :  { %v931_v52 = vadd.f32 1.0, %v4692_v41  ;;  %v4694_v32 = vpop.eup %4693  ;;  %v5521_v41 = vld [vmem:[%s6564_s2 + $0x2c] ss:$16 sps:$4 sm:$0xff]  }
 0x2f3   :  { %4697 = vrcp.f32 %v925_v5  ;;  %v4696_v54 = vpop.eup %4695  ;;  %v938_v58 = vadd.f32 1.0, %v4694_v32  ;;  %v5526_v5 = vld [vmem:[%s6564_s2 + $0x20] ss:$16 sps:$4 sm:$0xff]   ;;  %v5540_v32 = vld [vmem:[%s6564_s2 + $0x44] ss:$16 sps:$4 sm:$0xff]  }
 0x2f4   :  { %4699 = vrcp.f32 %v931_v52  ;;  %v5531_v52 = vld [vmem:[%s6564_s2 + $0x28] ss:$16 sps:$4 sm:$0xff]  }
 0x2f5   :  { %4701 = vrcp.f32 %v938_v58  ;;  %v5569_v58 = vld [vmem:[%s6564_s2 + $0x6c] ss:$16 sps:$4 sm:$0xff]  }
 0x2fd   :  { %v4698_v2 = vpop.eup %4697 }
 0x2fe   :  { %v4700_v23 = vpop.eup %4699  ;;  %v942_v56 = vmul.f32 %v4698_v2, %v4696_v54  ;;  %v5545_v54 = vld [vmem:[%s6564_s2 + $0x4c] ss:$16 sps:$4 sm:$0xff]   ;;  %v5550_v2 = vld [vmem:[%s6564_s2 + $0x40] ss:$16 sps:$4 sm:$0xff]  }
 0x2ff   :  { %v941_v60 = vmul.f32 %v4700_v23, %v5394_v49  ;;  %v4702_v53 = vpop.eup %4701  ;;  %v5555_v23 = vld [vmem:[%s6564_s2 + $0x48] ss:$16 sps:$4 sm:$0xff]  }
 0x301   :  { %v5440_v63 = vadd.f32 %v942_v56, %v941_v60  ;;  %v5564_v56 = vld [vmem:[%s6564_s2 + $0x64] ss:$16 sps:$4 sm:$0xff]   ;;  %v5574_v60 = vld [vmem:[%s6564_s2 + $0x60] ss:$16 sps:$4 sm:$0xff]  }
 0x303   :  { %4703 = vtanh.f32 %v5440_v63 }
 0x30d   :  { %v4704_v61 = vpop.eup %4703 }
 0x30e   :  { %v945_v55 = vmul.f32 %v4704_v61, %v4702_v53  ;;  %v5588_v53 = vld [vmem:[%s6564_s2 + $0x80] ss:$16 sps:$4 sm:$0xff]   ;;  %v5593_v61 = vld [vmem:[%s6564_s2 + $0x84] ss:$16 sps:$4 sm:$0xff]  }
 0x310   :  { %v946_v62 = vpack.c.bf16 %v945_v55, %v945_v55  ;;  %v5598_v55 = vld [vmem:[%s6564_s2 + $0x88] ss:$16 sps:$4 sm:$0xff]  }
 0x312   :  { %947 = vst [vmem:[#allocation3 + $0x8] sm:$0xf] %v946_v62  ;;  %1177 = vmatmul.mubr.bf16.vlgmr.msra.gmra.mrb[24].mxu0 %v946_v62  ;;  %1218 = vmatmul.mubr.bf16.vlgmr.msra.gmra.mrb[24].mxu1 %v946_v62  ;;  %v5603_v62 = vld [vmem:[%s6564_s2 + $0x8c] ss:$16 sps:$4 sm:$0xff]  }
 0x313   :  { %1456 = vmatpush1.bf16.msra.mxu0 %v5061_v8  ;;  %1497 = vmatpush1.bf16.msra.mxu1 %v5066_v9  ;;  %v170_v8 = vadd.f32 %v5345_v14, %v5272_v46  ;;  %v6601_v9 = vld [vmem:[#allocation8_spill] sm:$0xff] }
 0x314   :  { %1457 = vmatprep.subr.bf16.mxu0 %v5075_v10  ;;  %1498 = vmatprep.subr.bf16.mxu1 %v5080_v11  ;;  %v243_v10 = vadd.f32 %v6601_v9, %v5297_v0  ;;  %v6602_v11 = vld [vmem:[#allocation9_spill] sm:$0xff]  ;;  %v5614_v9 = vld [vmem:[%s6564_s2 + $0xac] ss:$16 sps:$4 sm:$0xff]  }
 0x315   :  { %1487 = vmatprep.mubr.bf16.mxu0 %v6600_v44  ;;  %1528 = vmatprep.mubr.bf16.mxu1 %v6600_v44 }
 0x317   :  { %1458 = vmatpush1.bf16.msra.mxu0 %v5085_v12  ;;  %1499 = vmatpush1.bf16.msra.mxu1 %v5090_v13  ;;  %v172_v12 = vadd.f32 %v6602_v11, %v5276_v47  ;;  %v6603_v13 = vld [vmem:[#allocation10_spill] sm:$0xff] }
 0x318   :  { %1459 = vmatprep.subr.bf16.mxu0 %v5103_v15  ;;  %1500 = vmatprep.subr.bf16.mxu1 %v5109_v16  ;;  %v245_v15 = vadd.f32 %v6603_v13, %v5287_v57  ;;  %v5628_v11 = vld [vmem:[%s6564_s2 + $0xa8] ss:$16 sps:$4 sm:$0xff]   ;;  %v5639_v13 = vld [vmem:[%s6564_s2 + $0xcc] ss:$16 sps:$4 sm:$0xff]  }
 0x31b   :  { %1460 = vmatpush1.bf16.msra.mxu0 %v5114_v17  ;;  %1501 = vmatpush1.bf16.msra.mxu1 %v5119_v18 }
 0x31c   :  { %1461 = vmatprep.subr.bf16.mxu0 %v5130_v19  ;;  %1502 = vmatprep.subr.bf16.mxu1 %v5135_v20 }
 0x31f   :  { %1462 = vmatpush1.bf16.msra.mxu0 %v5140_v21  ;;  %1503 = vmatpush1.bf16.msra.mxu1 %v5145_v22 }
 0x320   :  { %1463 = vmatprep.subr.bf16.mxu0 %v5158_v24  ;;  %1504 = vmatprep.subr.bf16.mxu1 %v5164_v25 }
 0x323   :  { %1464 = vmatpush1.bf16.msra.mxu0 %v5169_v26  ;;  %1505 = vmatpush1.bf16.msra.mxu1 %v5174_v27 }
 0x324   :  { %1465 = vmatprep.subr.bf16.mxu0 %v5190_v29  ;;  %1506 = vmatprep.subr.bf16.mxu1 %v5200_v31 }
 0x327   :  { %1466 = vmatpush1.bf16.msra.mxu0 %v5185_v28  ;;  %1507 = vmatpush1.bf16.msra.mxu1 %v5195_v30 }
 0x328   :  { %1467 = vmatprep.subr.bf16.mxu0 %v5209_v33  ;;  %1508 = vmatprep.subr.bf16.mxu1 %v5214_v34 }
 0x32b   :  { %1468 = vmatpush1.bf16.msra.mxu0 %v5222_v35  ;;  %1509 = vmatpush1.bf16.msra.mxu1 %v5227_v36 }
 0x32c   :  { %1469 = vmatprep.subr.bf16.mxu0 %v5234_v37  ;;  %1510 = vmatprep.subr.bf16.mxu1 %v5239_v38 }
 0x32f   :  { %1470 = vmatpush1.bf16.msra.mxu0 %v5250_v39  ;;  %1511 = vmatpush1.bf16.msra.mxu1 %v5255_v40 }
 0x330   :  { %1763 = vmatprep.subr.bf16.mxu0 %v5492_v45  ;;  %1804 = vmatprep.subr.bf16.mxu1 %v5497_v50 }
 0x3e5   :  { %v1178_v16 = vpop.f32.mrb[24].mxu0  ;;  %v1219_v17 = vpop.f32.mrb[24].mxu1 }
 0x3e6   :  { %v1226_v18 = vadd.f32 %v1178_v16, %v170_v8  ;;  %v1228_v19 = vadd.f32 %v1219_v17, %v243_v10  ;;  %v1180_v20 = vpop.f32.mrb[25].mxu0  ;;  %v1221_v21 = vpop.f32.mrb[25].mxu1  ;;  %v5608_v8 = vld [vmem:[%s6564_s2 + $0xa4] ss:$16 sps:$4 sm:$0xff]   ;;  %v5621_v10 = vld [vmem:[%s6564_s2 + $0xa0] ss:$16 sps:$4 sm:$0xff]  }
 0x3e7   :  { %v1227_v22 = vadd.f32 %v1180_v20, %v172_v12  ;;  %v1229_v24 = vadd.f32 %v1221_v21, %v245_v15  ;;  %v1182_v25 = vpop.f32.mrb[26].mxu0  ;;  %v1223_v26 = vpop.f32.mrb[26].mxu1  ;;  %v5633_v12 = vld [vmem:[%s6564_s2 + $0xc4] ss:$16 sps:$4 sm:$0xff]   ;;  %v5645_v15 = vld [vmem:[%s6564_s2 + $0xc0] ss:$16 sps:$4 sm:$0xff]  }
 0x3e8   :  { %v4173_v27 = vmul.f32 -1.442695, %v1226_v18  ;;  %v1183_v28 = vpop.f32.mrb[27].mxu0  ;;  %v1224_v29 = vpop.f32.mrb[27].mxu1  ;;  %v5652_v16 = vld [vmem:[%s6564_s2 + $0xc8] ss:$16 sps:$4 sm:$0xff]  }
 0x3e9   :  { %v4174_v30 = vmul.f32 -1.442695, %v1227_v22  ;;  %v4175_v31 = vmul.f32 -1.442695, %v1229_v24  ;;  %v5657_v17 = vld [vmem:[%s6564_s2 + $0xe4] ss:$16 sps:$4 sm:$0xff]  }
 0x3ea   :  { %4705 = vpow2.f32 %v4173_v27  ;;  %v5663_v18 = vld [vmem:[%s6564_s2 + $0xec] ss:$16 sps:$4 sm:$0xff]   ;;  %v5676_v20 = vld [vmem:[%s6564_s2 + $0xe8] ss:$16 sps:$4 sm:$0xff]  }
 0x3eb   :  { %4707 = vpow2.f32 %v4174_v30  ;;  %v6604_v21 = vld [vmem:[#allocation11_spill] sm:$0xff]  ;;  %v6605_v24 = vld [vmem:[#allocation12_spill] sm:$0xff]  ;;  %v6606_v26 = vld [vmem:[#allocation13_spill] sm:$0xff] }
 0x3ec   :  { %4709 = vpow2.f32 %v4175_v31  ;;  %v176_v22 = vadd.f32 %v6604_v21, %v5272_v46  ;;  %v249_v25 = vadd.f32 %v6605_v24, %v5297_v0  ;;  %v178_v27 = vadd.f32 %v6606_v26, %v5276_v47  ;;  %v6607_v28 = vld [vmem:[#allocation14_spill] sm:$0xff] }
 0x3ed   :  { %4711 = vtanh.f32 %v1228_v19  ;;  %v5669_v19 = vld [vmem:[%s6564_s2 + $0xe0] ss:$16 sps:$4 sm:$0xff]   ;;  %v251_v29 = vadd.f32 %v6607_v28, %v5287_v57 }
 0x3f4   :  { %v4706_v33 = vpop.eup %4705 }
 0x3f5   :  { %v4708_v34 = vpop.eup %4707  ;;  %v1233_v35 = vadd.f32 1.0, %v4706_v33 }
 0x3f6   :  { %v1239_v36 = vadd.f32 1.0, %v4708_v34  ;;  %v4710_v37 = vpop.eup %4709 }
 0x3f7   :  { %4713 = vrcp.f32 %v1233_v35  ;;  %v4712_v38 = vpop.eup %4711  ;;  %v1246_v49 = vadd.f32 1.0, %v4710_v37 }
 0x3f8   :  { %4715 = vrcp.f32 %v1239_v36 }
 0x3f9   :  { %4717 = vrcp.f32 %v1246_v49 }
 0x401   :  { %v4714_v39 = vpop.eup %4713 }
 0x402   :  { %v4716_v40 = vpop.eup %4715  ;;  %v1250_v14 = vmul.f32 %v4714_v39, %v4712_v38 }
 0x403   :  { %v1249_v48 = vmul.f32 %v4716_v40, %v5440_v63  ;;  %v4718_v43 = vpop.eup %4717  ;;  %v5579_v63 = vld [vmem:[%s6564_s2 + $0x68] ss:$16 sps:$4 sm:$0xff]  }
 0x405   :  { %v5484_v6 = vadd.f32 %v1250_v14, %v1249_v48 }
 0x407   :  { %4719 = vtanh.f32 %v5484_v6 }
 0x411   :  { %v4720_v7 = vpop.eup %4719 }
 0x412   :  { %v1253_v59 = vmul.f32 %v4720_v7, %v4718_v43 }
 0x414   :  { %v1254_v42 = vpack.c.bf16 %v1253_v59, %v1253_v59 }
 0x416   :  { %v1256_v1 = vrot.slane %v1254_v42, 4  ;;  %1488 = vmatmul.mubr.bf16.vlgmr.msra.gmra.mrb[28].mxu0 %v1254_v42  ;;  %1529 = vmatmul.mubr.bf16.vlgmr.msra.gmra.mrb[28].mxu1 %v1254_v42 }
 0x417   :  { %1795 = vmatprep.mubr.bf16.mxu0 %v6600_v44  ;;  %1836 = vmatprep.mubr.bf16.mxu1 %v6600_v44 }
 0x418   :  { %1258 = vst [vmem:[#allocation3 + $0x8] sm:$0xf0] %v1256_v1  ;;  %1764 = vmatpush1.bf16.msra.mxu0 %v5502_v3  ;;  %1805 = vmatpush1.bf16.msra.mxu1 %v5507_v4 }
 0x419   :  { %1765 = vmatprep.subr.bf16.mxu0 %v5516_v51  ;;  %1806 = vmatprep.subr.bf16.mxu1 %v5521_v41 }
 0x41c   :  { %1766 = vmatpush1.bf16.msra.mxu0 %v5526_v5  ;;  %1807 = vmatpush1.bf16.msra.mxu1 %v5531_v52 }
 0x41d   :  { %1767 = vmatprep.subr.bf16.mxu0 %v5540_v32  ;;  %1808 = vmatprep.subr.bf16.mxu1 %v5545_v54 }
 0x420   :  { %1768 = vmatpush1.bf16.msra.mxu0 %v5550_v2  ;;  %1809 = vmatpush1.bf16.msra.mxu1 %v5555_v23 }
 0x421   :  { %1769 = vmatprep.subr.bf16.mxu0 %v5564_v56  ;;  %1810 = vmatprep.subr.bf16.mxu1 %v5569_v58 }
 0x424   :  { %1770 = vmatpush1.bf16.msra.mxu0 %v5574_v60  ;;  %1811 = vmatpush1.bf16.msra.mxu1 %v5579_v63 }
 0x425   :  { %1771 = vmatprep.subr.bf16.mxu0 %v5593_v61  ;;  %1812 = vmatprep.subr.bf16.mxu1 %v5603_v62 }
 0x428   :  { %1772 = vmatpush1.bf16.msra.mxu0 %v5588_v53  ;;  %1813 = vmatpush1.bf16.msra.mxu1 %v5598_v55 }
 0x429   :  { %1773 = vmatprep.subr.bf16.mxu0 %v5608_v8  ;;  %1814 = vmatprep.subr.bf16.mxu1 %v5614_v9 }
 0x42c   :  { %1774 = vmatpush1.bf16.msra.mxu0 %v5621_v10  ;;  %1815 = vmatpush1.bf16.msra.mxu1 %v5628_v11 }
 0x42d   :  { %1775 = vmatprep.subr.bf16.mxu0 %v5633_v12  ;;  %1816 = vmatprep.subr.bf16.mxu1 %v5639_v13 }
 0x430   :  { %1776 = vmatpush1.bf16.msra.mxu0 %v5645_v15  ;;  %1817 = vmatpush1.bf16.msra.mxu1 %v5652_v16 }
 0x431   :  { %1777 = vmatprep.subr.bf16.mxu0 %v5657_v17  ;;  %1818 = vmatprep.subr.bf16.mxu1 %v5663_v18 }
 0x434   :  { %1778 = vmatpush1.bf16.msra.mxu0 %v5669_v19  ;;  %1819 = vmatpush1.bf16.msra.mxu1 %v5676_v20 }
 0x435   :  { %2074 = vmatprep.subr.bf16.mxu0 %v5492_v45  ;;  %2115 = vmatprep.subr.bf16.mxu1 %v5497_v50 }
 0x4e9   :  { %v1489_v30 = vpop.f32.mrb[28].mxu0  ;;  %v1530_v31 = vpop.f32.mrb[28].mxu1 }
 0x4ea   :  { %v1537_v33 = vadd.f32 %v1489_v30, %v176_v22  ;;  %v1539_v34 = vadd.f32 %v1530_v31, %v249_v25  ;;  %v1491_v35 = vpop.f32.mrb[29].mxu0  ;;  %v1532_v36 = vpop.f32.mrb[29].mxu1 }
 0x4eb   :  { %v1538_v37 = vadd.f32 %v1491_v35, %v178_v27  ;;  %v1540_v38 = vadd.f32 %v1532_v36, %v251_v29  ;;  %v1493_v39 = vpop.f32.mrb[30].mxu0  ;;  %v1534_v40 = vpop.f32.mrb[30].mxu1 }
 0x4ec   :  { %v4208_v14 = vmul.f32 -1.442695, %v1537_v33  ;;  %v1494_v49 = vpop.f32.mrb[31].mxu0  ;;  %v1535_v48 = vpop.f32.mrb[31].mxu1  ;;  %v6610_v39 = vld [vmem:[#allocation17_spill] sm:$0xff] }
 0x4ed   :  { %v4209_v43 = vmul.f32 -1.442695, %v1538_v37  ;;  %v4210_v7 = vmul.f32 -1.442695, %v1540_v38  ;;  %v6609_v37 = vld [vmem:[#allocation16_spill] sm:$0xff]  ;;  %v182_v40 = vadd.f32 %v6610_v39, %v5276_v47 }
 0x4ee   :  { %4721 = vpow2.f32 %v4208_v14  ;;  %v253_v38 = vadd.f32 %v6609_v37, %v5297_v0  ;;  %v6611_v14 = vld [vmem:[#allocation18_spill] sm:$0xff] }
 0x4ef   :  { %4723 = vpow2.f32 %v4209_v43  ;;  %v255_v49 = vadd.f32 %v6611_v14, %v5287_v57 }
 0x4f0   :  { %4725 = vpow2.f32 %v4210_v7 }
 0x4f1   :  { %4727 = vtanh.f32 %v1539_v34 }
 0x4f8   :  { %v4722_v59 = vpop.eup %4721 }
 0x4f9   :  { %v4724_v42 = vpop.eup %4723  ;;  %v1544_v1 = vadd.f32 1.0, %v4722_v59 }
 0x4fa   :  { %v1550_v21 = vadd.f32 1.0, %v4724_v42  ;;  %v4726_v22 = vpop.eup %4725 }
 0x4fb   :  { %4729 = vrcp.f32 %v1544_v1  ;;  %v4728_v24 = vpop.eup %4727  ;;  %v1557_v28 = vadd.f32 1.0, %v4726_v22 }
 0x4fc   :  { %4731 = vrcp.f32 %v1550_v21 }
 0x4fd   :  { %4733 = vrcp.f32 %v1557_v28 }
 0x505   :  { %v4730_v25 = vpop.eup %4729 }
 0x506   :  { %v4732_v26 = vpop.eup %4731  ;;  %v1561_v27 = vmul.f32 %v4730_v25, %v4728_v24 }
 0x507   :  { %v1560_v29 = vmul.f32 %v4732_v26, %v5484_v6  ;;  %v4734_v31 = vpop.eup %4733  ;;  %v6608_v6 = vld [vmem:[#allocation15_spill] sm:$0xff] }
 0x508   :  { %v180_v36 = vadd.f32 %v6608_v6, %v5272_v46 }
 0x509   :  { %v5692_v30 = vadd.f32 %v1561_v27, %v1560_v29 }
 0x50b   :  { %4735 = vtanh.f32 %v5692_v30 }
 0x515   :  { %v4736_v33 = vpop.eup %4735 }
 0x516   :  { %v1564_v35 = vmul.f32 %v4736_v33, %v4734_v31 }
 0x518   :  { %v1565_v34 = vpack.c.bf16 %v1564_v35, %v1564_v35 }
 0x51a   :  { %1566 = vst [vmem:[#allocation3 + $0x10] sm:$0xf] %v1565_v34  ;;  %1796 = vmatmul.mubr.bf16.vlgmr.msra.gmra.mrb[32].mxu0 %v1565_v34  ;;  %1837 = vmatmul.mubr.bf16.vlgmr.msra.gmra.mrb[32].mxu1 %v1565_v34 }
 0x51b   :  { %2075 = vmatpush1.bf16.msra.mxu0 %v5502_v3  ;;  %2116 = vmatpush1.bf16.msra.mxu1 %v5507_v4 }
 0x51c   :  { %2076 = vmatprep.subr.bf16.mxu0 %v5516_v51  ;;  %2117 = vmatprep.subr.bf16.mxu1 %v5521_v41 }
 0x51d   :  { %2106 = vmatprep.mubr.bf16.mxu0 %v6600_v44  ;;  %2147 = vmatprep.mubr.bf16.mxu1 %v6600_v44 }
 0x51f   :  { %2077 = vmatpush1.bf16.msra.mxu0 %v5526_v5  ;;  %2118 = vmatpush1.bf16.msra.mxu1 %v5531_v52 }
 0x520   :  { %2078 = vmatprep.subr.bf16.mxu0 %v5540_v32  ;;  %2119 = vmatprep.subr.bf16.mxu1 %v5545_v54 }
 0x523   :  { %2079 = vmatpush1.bf16.msra.mxu0 %v5550_v2  ;;  %2120 = vmatpush1.bf16.msra.mxu1 %v5555_v23 }
 0x524   :  { %2080 = vmatprep.subr.bf16.mxu0 %v5564_v56  ;;  %2121 = vmatprep.subr.bf16.mxu1 %v5569_v58 }
 0x527   :  { %2081 = vmatpush1.bf16.msra.mxu0 %v5574_v60  ;;  %2122 = vmatpush1.bf16.msra.mxu1 %v5579_v63 }
 0x528   :  { %2082 = vmatprep.subr.bf16.mxu0 %v5593_v61  ;;  %2123 = vmatprep.subr.bf16.mxu1 %v5603_v62 }
 0x52b   :  { %2083 = vmatpush1.bf16.msra.mxu0 %v5588_v53  ;;  %2124 = vmatpush1.bf16.msra.mxu1 %v5598_v55 }
 0x52c   :  { %2084 = vmatprep.subr.bf16.mxu0 %v5608_v8  ;;  %2125 = vmatprep.subr.bf16.mxu1 %v5614_v9 }
 0x52f   :  { %2085 = vmatpush1.bf16.msra.mxu0 %v5621_v10  ;;  %2126 = vmatpush1.bf16.msra.mxu1 %v5628_v11 }
 0x530   :  { %2086 = vmatprep.subr.bf16.mxu0 %v5633_v12  ;;  %2127 = vmatprep.subr.bf16.mxu1 %v5639_v13 }
 0x533   :  { %2087 = vmatpush1.bf16.msra.mxu0 %v5645_v15  ;;  %2128 = vmatpush1.bf16.msra.mxu1 %v5652_v16 }
 0x534   :  { %2088 = vmatprep.subr.bf16.mxu0 %v5657_v17  ;;  %2129 = vmatprep.subr.bf16.mxu1 %v5663_v18 }
 0x537   :  { %2089 = vmatpush1.bf16.msra.mxu0 %v5669_v19  ;;  %2130 = vmatpush1.bf16.msra.mxu1 %v5676_v20 }
 0x538   :  { %2382 = vmatprep.subr.bf16.mxu0 %v5492_v45  ;;  %2423 = vmatprep.subr.bf16.mxu1 %v5497_v50 }
 0x5ed   :  { %v1797_v48 = vpop.f32.mrb[32].mxu0  ;;  %v1838_v43 = vpop.f32.mrb[32].mxu1 }
 0x5ee   :  { %v1845_v7 = vadd.f32 %v1797_v48, %v180_v36  ;;  %v1847_v59 = vadd.f32 %v1838_v43, %v253_v38  ;;  %v1799_v42 = vpop.f32.mrb[33].mxu0  ;;  %v1840_v45 = vpop.f32.mrb[33].mxu1 }
 0x5ef   :  { %v1846_v1 = vadd.f32 %v1799_v42, %v182_v40  ;;  %v1848_v50 = vadd.f32 %v1840_v45, %v255_v49  ;;  %v1801_v21 = vpop.f32.mrb[34].mxu0  ;;  %v1842_v22 = vpop.f32.mrb[34].mxu1 }
 0x5f0   :  { %v4243_v24 = vmul.f32 -1.442695, %v1845_v7  ;;  %v1802_v25 = vpop.f32.mrb[35].mxu0  ;;  %v1843_v26 = vpop.f32.mrb[35].mxu1 }
 0x5f1   :  { %v4244_v27 = vmul.f32 -1.442695, %v1846_v1  ;;  %v4245_v28 = vmul.f32 -1.442695, %v1848_v50 }
 0x5f2   :  { %4737 = vpow2.f32 %v4243_v24 }
 0x5f3   :  { %4739 = vpow2.f32 %v4244_v27  ;;  %v4553_v27 = vld [vmem:[%s6566_s4] ss:$16 sps:$4 sm:$0xff]  }
 0x5f4   :  { %4741 = vpow2.f32 %v4245_v28  ;;  %v4556_v28 = vld [vmem:[%s6566_s4 + $0x8] ss:$16 sps:$4 sm:$0xff]  }
 0x5f5   :  { %4743 = vtanh.f32 %v1847_v59 }
 0x5fc   :  { %v4738_v29 = vpop.eup %4737 }
 0x5fd   :  { %v4740_v31 = vpop.eup %4739  ;;  %v1852_v33 = vadd.f32 1.0, %v4738_v29 }
 0x5fe   :  { %v1858_v35 = vadd.f32 1.0, %v4740_v31  ;;  %v4742_v34 = vpop.eup %4741  ;;  %v4561_v31 = vld [vmem:[%s6566_s4 + $0x24] ss:$16 sps:$4 sm:$0xff]  }
 0x5ff   :  { %4745 = vrcp.f32 %v1852_v33  ;;  %v4744_v6 = vpop.eup %4743  ;;  %v1865_v39 = vadd.f32 1.0, %v4742_v34  ;;  %v4564_v33 = vld [vmem:[%s6566_s4 + $0x2c] ss:$16 sps:$4 sm:$0xff]   ;;  %v4562_v34 = vld [vmem:[%s6566_s4 + $0x28] ss:$16 sps:$4 sm:$0xff]  }
 0x600   :  { %4747 = vrcp.f32 %v1858_v35  ;;  %v4559_v35 = vld [vmem:[%s6566_s4 + $0x20] ss:$16 sps:$4 sm:$0xff]  }
 0x601   :  { %4749 = vrcp.f32 %v1865_v39  ;;  %v4573_v39 = vld [vmem:[%s6566_s4 + $0x64] ss:$16 sps:$4 sm:$0xff]  }
 0x609   :  { %v4746_v36 = vpop.eup %4745 }
 0x60a   :  { %v4748_v37 = vpop.eup %4747  ;;  %v1869_v38 = vmul.f32 %v4746_v36, %v4744_v6  ;;  %v4567_v6 = vld [vmem:[%s6566_s4 + $0x44] ss:$16 sps:$4 sm:$0xff]   ;;  %v4570_v36 = vld [vmem:[%s6566_s4 + $0x4c] ss:$16 sps:$4 sm:$0xff]  }
 0x60b   :  { %v1868_v40 = vmul.f32 %v4748_v37, %v5692_v30  ;;  %v4750_v49 = vpop.eup %4749  ;;  %v4565_v37 = vld [vmem:[%s6566_s4 + $0x40] ss:$16 sps:$4 sm:$0xff]  }
 0x60d   :  { %v5738_v14 = vadd.f32 %v1869_v38, %v1868_v40  ;;  %v4568_v38 = vld [vmem:[%s6566_s4 + $0x48] ss:$16 sps:$4 sm:$0xff]   ;;  %v4576_v40 = vld [vmem:[%s6566_s4 + $0x6c] ss:$16 sps:$4 sm:$0xff]  }
 0x60f   :  { %4751 = vtanh.f32 %v5738_v14 }
 0x619   :  { %v4752_v48 = vpop.eup %4751 }
 0x61a   :  { %v1872_v43 = vmul.f32 %v4752_v48, %v4750_v49  ;;  %v4574_v49 = vld [vmem:[%s6566_s4 + $0x68] ss:$16 sps:$4 sm:$0xff]   ;;  %v4579_v48 = vld [vmem:[%s6566_s4 + $0x84] ss:$16 sps:$4 sm:$0xff]  }
 0x61c   :  { %v1873_v7 = vpack.c.bf16 %v1872_v43, %v1872_v43  ;;  %v4582_v43 = vld [vmem:[%s6566_s4 + $0x8c] ss:$16 sps:$4 sm:$0xff]  }
 0x61e   :  { %v1875_v59 = vrot.slane %v1873_v7, 4  ;;  %2107 = vmatmul.mubr.bf16.vlgmr.msra.gmra.mrb[36].mxu0 %v1873_v7  ;;  %2148 = vmatmul.mubr.bf16.vlgmr.msra.gmra.mrb[36].mxu1 %v1873_v7  ;;  %v4577_v7 = vld [vmem:[%s6566_s4 + $0x80] ss:$16 sps:$4 sm:$0xff]  }
 0x61f   :  { %2383 = vmatpush1.bf16.msra.mxu0 %v5502_v3  ;;  %2424 = vmatpush1.bf16.msra.mxu1 %v5507_v4  ;;  %v4555_v3 = vld [vmem:[%s6566_s4 + $0x4] ss:$16 sps:$4 sm:$0xff]   ;;  %v4558_v4 = vld [vmem:[%s6566_s4 + $0xc] ss:$16 sps:$4 sm:$0xff]  }
 0x620   :  { %1877 = vst [vmem:[#allocation3 + $0x10] sm:$0xf0] %v1875_v59  ;;  %2384 = vmatprep.subr.bf16.mxu0 %v5516_v51  ;;  %2425 = vmatprep.subr.bf16.mxu1 %v5521_v41  ;;  %v6612_v51 = vld [vmem:[#allocation19_spill] sm:$0xff] }
 0x621   :  { %2414 = vmatprep.mubr.bf16.mxu0 %v6600_v44  ;;  %2455 = vmatprep.mubr.bf16.mxu1 %v6600_v44  ;;  %v186_v41 = vadd.f32 %v6612_v51, %v5272_v46  ;;  %v4580_v59 = vld [vmem:[%s6566_s4 + $0x88] ss:$16 sps:$4 sm:$0xff]   ;;  %v4583_v51 = vld [vmem:[%s6566_s4 + $0xa0] ss:$16 sps:$4 sm:$0xff]  }
 0x623   :  { %2385 = vmatpush1.bf16.msra.mxu0 %v5526_v5  ;;  %2426 = vmatpush1.bf16.msra.mxu1 %v5531_v52  ;;  %v6613_v5 = vld [vmem:[#allocation21_spill] sm:$0xff] }
 0x624   :  { %2386 = vmatprep.subr.bf16.mxu0 %v5540_v32  ;;  %2427 = vmatprep.subr.bf16.mxu1 %v5545_v54  ;;  %v259_v52 = vadd.f32 %v6613_v5, %v5297_v0  ;;  %v6614_v32 = vld [vmem:[#allocation20_spill] sm:$0xff]  ;;  %v4591_v5 = vld [vmem:[%s6566_s4 + $0xc4] ss:$16 sps:$4 sm:$0xff]  }
 0x625   :  { %v188_v54 = vadd.f32 %v6614_v32, %v5276_v47  ;;  %v4589_v32 = vld [vmem:[%s6566_s4 + $0xc0] ss:$16 sps:$4 sm:$0xff]  }
 0x627   :  { %2387 = vmatpush1.bf16.msra.mxu0 %v5550_v2  ;;  %2428 = vmatpush1.bf16.msra.mxu1 %v5555_v23  ;;  %v6615_v2 = vld [vmem:[#allocation23_spill] sm:$0xff] }
 0x628   :  { %2388 = vmatprep.subr.bf16.mxu0 %v5564_v56  ;;  %2429 = vmatprep.subr.bf16.mxu1 %v5569_v58  ;;  %v261_v23 = vadd.f32 %v6615_v2, %v5287_v57  ;;  %v4597_v2 = vld [vmem:[%s6566_s4 + $0xe4] ss:$16 sps:$4 sm:$0xff]  }
 0x62b   :  { %2389 = vmatpush1.bf16.msra.mxu0 %v5574_v60  ;;  %2430 = vmatpush1.bf16.msra.mxu1 %v5579_v63 }
 0x62c   :  { %2390 = vmatprep.subr.bf16.mxu0 %v5593_v61  ;;  %2431 = vmatprep.subr.bf16.mxu1 %v5603_v62 }
 0x62f   :  { %2391 = vmatpush1.bf16.msra.mxu0 %v5588_v53  ;;  %2432 = vmatpush1.bf16.msra.mxu1 %v5598_v55 }
 0x630   :  { %2392 = vmatprep.subr.bf16.mxu0 %v5608_v8  ;;  %2433 = vmatprep.subr.bf16.mxu1 %v5614_v9 }
 0x633   :  { %2393 = vmatpush1.bf16.msra.mxu0 %v5621_v10  ;;  %2434 = vmatpush1.bf16.msra.mxu1 %v5628_v11 }
 0x634   :  { %2394 = vmatprep.subr.bf16.mxu0 %v5633_v12  ;;  %2435 = vmatprep.subr.bf16.mxu1 %v5639_v13 }
 0x637   :  { %2395 = vmatpush1.bf16.msra.mxu0 %v5645_v15  ;;  %2436 = vmatpush1.bf16.msra.mxu1 %v5652_v16 }
 0x638   :  { %2396 = vmatprep.subr.bf16.mxu0 %v5657_v17  ;;  %2437 = vmatprep.subr.bf16.mxu1 %v5663_v18 }
 0x63b   :  { %2397 = vmatpush1.bf16.msra.mxu0 %v5669_v19  ;;  %2438 = vmatpush1.bf16.msra.mxu1 %v5676_v20 }
 0x63c   :  { %2715 = vmatprep.subr.bf16.mxu0 %v4555_v3  ;;  %2788 = vmatprep.subr.bf16.mxu1 %v4558_v4  ;;  %v4585_v3 = vld [vmem:[%s6566_s4 + $0xa4] ss:$16 sps:$4 sm:$0xff]   ;;  %v4588_v4 = vld [vmem:[%s6566_s4 + $0xac] ss:$16 sps:$4 sm:$0xff]  }
 0x6f1   :  { %v2108_v56 = vpop.f32.mrb[36].mxu0  ;;  %v2149_v58 = vpop.f32.mrb[36].mxu1 }
 0x6f2   :  { %v2156_v60 = vadd.f32 %v2108_v56, %v186_v41  ;;  %v2158_v63 = vadd.f32 %v2149_v58, %v259_v52  ;;  %v2110_v53 = vpop.f32.mrb[37].mxu0  ;;  %v2151_v61 = vpop.f32.mrb[37].mxu1  ;;  %v4586_v41 = vld [vmem:[%s6566_s4 + $0xa8] ss:$16 sps:$4 sm:$0xff]   ;;  %v4594_v52 = vld [vmem:[%s6566_s4 + $0xcc] ss:$16 sps:$4 sm:$0xff]  }
 0x6f3   :  { %v2157_v55 = vadd.f32 %v2110_v53, %v188_v54  ;;  %v2159_v62 = vadd.f32 %v2151_v61, %v261_v23  ;;  %v2112_v8 = vpop.f32.mrb[38].mxu0  ;;  %v2153_v9 = vpop.f32.mrb[38].mxu1  ;;  %v4592_v54 = vld [vmem:[%s6566_s4 + $0xc8] ss:$16 sps:$4 sm:$0xff]   ;;  %v4600_v23 = vld [vmem:[%s6566_s4 + $0xec] ss:$16 sps:$4 sm:$0xff]  }
 0x6f4   :  { %v4278_v10 = vmul.f32 -1.442695, %v2156_v60  ;;  %v2113_v11 = vpop.f32.mrb[39].mxu0  ;;  %v2154_v12 = vpop.f32.mrb[39].mxu1  ;;  %v4595_v56 = vld [vmem:[%s6566_s4 + $0xe0] ss:$16 sps:$4 sm:$0xff]  }
 0x6f5   :  { %v4279_v13 = vmul.f32 -1.442695, %v2157_v55  ;;  %v4280_v15 = vmul.f32 -1.442695, %v2159_v62  ;;  %v4598_v58 = vld [vmem:[%s6566_s4 + $0xe8] ss:$16 sps:$4 sm:$0xff]  }
 0x6f6   :  { %4753 = vpow2.f32 %v4278_v10  ;;  %v2497_v60 = vld [vmem:[#allocation3] sm:$0xff]  ;;  %v2499_v53 = vld [vmem:[#allocation3 + $0x10] sm:$0xff]  ;;  %v5897_v55 = vld [vmem:[%s6567_s5 + $0xc] ss:$16 sps:$4 sm:$0xff]  }
 0x6f7   :  { %4755 = vpow2.f32 %v4279_v13  ;;  %v5892_v61 = vld [vmem:[%s6567_s5 + $0x4] ss:$16 sps:$4 sm:$0xff]   ;;  %v5902_v62 = vld [vmem:[%s6567_s5] ss:$16 sps:$4 sm:$0xff]   ;;  %v5907_v8 = vld [vmem:[%s6567_s5 + $0x8] ss:$16 sps:$4 sm:$0xff]  }
 0x6f8   :  { %4757 = vpow2.f32 %v4280_v15  ;;  %v5916_v9 = vld [vmem:[%s6567_s5 + $0x24] ss:$16 sps:$4 sm:$0xff]   ;;  %v5921_v10 = vld [vmem:[%s6567_s5 + $0x2c] ss:$16 sps:$4 sm:$0xff]   ;;  %v5926_v11 = vld [vmem:[%s6567_s5 + $0x20] ss:$16 sps:$4 sm:$0xff]  }
 0x6f9   :  { %4759 = vtanh.f32 %v2158_v63  ;;  %v2498_v63 = vld [vmem:[#allocation3 + $0x8] sm:$0xff]  ;;  %v5940_v13 = vld [vmem:[%s6567_s5 + $0x44] ss:$16 sps:$4 sm:$0xff]  }
 0x6fa   :  { %v5931_v12 = vld [vmem:[%s6567_s5 + $0x28] ss:$16 sps:$4 sm:$0xff]   ;;  %v5945_v15 = vld [vmem:[%s6567_s5 + $0x4c] ss:$16 sps:$4 sm:$0xff]  }
 0x700   :  { %v4754_v16 = vpop.eup %4753 }
 0x701   :  { %v4756_v17 = vpop.eup %4755  ;;  %v2163_v18 = vadd.f32 1.0, %v4754_v16  ;;  %v5950_v16 = vld [vmem:[%s6567_s5 + $0x40] ss:$16 sps:$4 sm:$0xff]  }
 0x702   :  { %v2169_v19 = vadd.f32 1.0, %v4756_v17  ;;  %v4758_v20 = vpop.eup %4757  ;;  %v5955_v17 = vld [vmem:[%s6567_s5 + $0x48] ss:$16 sps:$4 sm:$0xff]  }
 0x703   :  { %4761 = vrcp.f32 %v2163_v18  ;;  %v4760_v30 = vpop.eup %4759  ;;  %v2176_v50 = vadd.f32 1.0, %v4758_v20  ;;  %v5964_v18 = vld [vmem:[%s6567_s5 + $0x64] ss:$16 sps:$4 sm:$0xff]   ;;  %v5974_v20 = vld [vmem:[%s6567_s5 + $0x60] ss:$16 sps:$4 sm:$0xff]  }
 0x704   :  { %4763 = vrcp.f32 %v2169_v19  ;;  %v5969_v19 = vld [vmem:[%s6567_s5 + $0x6c] ss:$16 sps:$4 sm:$0xff]  }
 0x705   :  { %4765 = vrcp.f32 %v2176_v50  ;;  %v6003_v50 = vld [vmem:[%s6567_s5 + $0x88] ss:$16 sps:$4 sm:$0xff]  }
 0x70d   :  { %v4762_v42 = vpop.eup %4761 }
 0x70e   :  { %v4764_v45 = vpop.eup %4763  ;;  %v2180_v1 = vmul.f32 %v4762_v42, %v4760_v30  ;;  %v5979_v30 = vld [vmem:[%s6567_s5 + $0x68] ss:$16 sps:$4 sm:$0xff]   ;;  %v5988_v42 = vld [vmem:[%s6567_s5 + $0x84] ss:$16 sps:$4 sm:$0xff]  }
 0x70f   :  { %v2179_v21 = vmul.f32 %v4764_v45, %v5738_v14  ;;  %v4766_v24 = vpop.eup %4765  ;;  %v4571_v14 = vld [vmem:[%s6566_s4 + $0x60] ss:$16 sps:$4 sm:$0xff]   ;;  %v5993_v45 = vld [vmem:[%s6567_s5 + $0x8c] ss:$16 sps:$4 sm:$0xff]  }
 0x711   :  { %v5788_v22 = vadd.f32 %v2180_v1, %v2179_v21  ;;  %v5998_v1 = vld [vmem:[%s6567_s5 + $0x80] ss:$16 sps:$4 sm:$0xff]   ;;  %v6010_v21 = vld [vmem:[%s6567_s5 + $0xa4] ss:$16 sps:$4 sm:$0xff]  }
 0x713   :  { %4767 = vtanh.f32 %v5788_v22 }
 0x71d   :  { %v4768_v25 = vpop.eup %4767 }
 0x71e   :  { %v2183_v26 = vmul.f32 %v4768_v25, %v4766_v24  ;;  %v6015_v24 = vld [vmem:[%s6567_s5 + $0xac] ss:$16 sps:$4 sm:$0xff]   ;;  %v6022_v25 = vld [vmem:[%s6567_s5 + $0xa0] ss:$16 sps:$4 sm:$0xff]  }
 0x720   :  { %v2184_v29 = vpack.c.bf16 %v2183_v26, %v2183_v26  ;;  %v6027_v26 = vld [vmem:[%s6567_s5 + $0xa8] ss:$16 sps:$4 sm:$0xff]  }
 0x722   :  { %2185 = vst [vmem:[#allocation3 + $0x18] sm:$0xf] %v2184_v29  ;;  %2415 = vmatmul.mubr.bf16.vlgmr.msra.gmra.mrb[40].mxu0 %v2184_v29  ;;  %2456 = vmatmul.mubr.bf16.vlgmr.msra.gmra.mrb[40].mxu1 %v2184_v29  ;;  %v6046_v29 = vld [vmem:[%s6567_s5 + $0xc0] ss:$16 sps:$4 sm:$0xff]  }
 0x723   :  { %2716 = vmatpush1.bf16.msra.mxu0 %v4553_v27  ;;  %2789 = vmatpush1.bf16.msra.mxu1 %v4556_v28  ;;  %v6034_v27 = vld [vmem:[%s6567_s5 + $0xc4] ss:$16 sps:$4 sm:$0xff]   ;;  %v6039_v28 = vld [vmem:[%s6567_s5 + $0xcc] ss:$16 sps:$4 sm:$0xff]  }
 0x724   :  { %2717 = vmatprep.subr.bf16.mxu0 %v4561_v31  ;;  %2790 = vmatprep.subr.bf16.mxu1 %v4564_v33  ;;  %v6051_v31 = vld [vmem:[%s6567_s5 + $0xc8] ss:$16 sps:$4 sm:$0xff]   ;;  %v6058_v33 = vld [vmem:[%s6567_s5 + $0xe4] ss:$16 sps:$4 sm:$0xff]  }
 0x725   :  { %2747 = vmatprep.mubr.bf16.mxu0 %v6600_v44  ;;  %2820 = vmatprep.mubr.bf16.mxu1 %v6600_v44 }
 0x727   :  { %2718 = vmatpush1.bf16.msra.mxu0 %v4559_v35  ;;  %2791 = vmatpush1.bf16.msra.mxu1 %v4562_v34  ;;  %v6063_v35 = vld [vmem:[%s6567_s5 + $0xec] ss:$16 sps:$4 sm:$0xff]   ;;  %v6070_v34 = vld [vmem:[%s6567_s5 + $0xe0] ss:$16 sps:$4 sm:$0xff]  }
 0x728   :  { %2719 = vmatprep.subr.bf16.mxu0 %v4567_v6  ;;  %2792 = vmatprep.subr.bf16.mxu1 %v4570_v36  ;;  %v6075_v6 = vld [vmem:[%s6567_s5 + $0xe8] ss:$16 sps:$4 sm:$0xff]  }
 0x729   :  { %v6616_v36 = vld [vmem:[#allocation22_spill] sm:$0xff] }
 0x72b   :  { %2720 = vmatpush1.bf16.msra.mxu0 %v4565_v37  ;;  %2793 = vmatpush1.bf16.msra.mxu1 %v4568_v38  ;;  %v190_v37 = vadd.f32 %v6616_v36, %v5272_v46  ;;  %v6617_v38 = vld [vmem:[#allocation25_spill] sm:$0xff] }
 0x72c   :  { %2721 = vmatprep.subr.bf16.mxu0 %v4573_v39  ;;  %2794 = vmatprep.subr.bf16.mxu1 %v4576_v40  ;;  %v263_v39 = vadd.f32 %v6617_v38, %v5297_v0  ;;  %v6618_v40 = vld [vmem:[#allocation24_spill] sm:$0xff] }
 0x72f   :  { %2722 = vmatpush1.bf16.msra.mxu0 %v4571_v14  ;;  %2795 = vmatpush1.bf16.msra.mxu1 %v4574_v49  ;;  %v192_v14 = vadd.f32 %v6618_v40, %v5276_v47  ;;  %v6619_v49 = vld [vmem:[#allocation26_spill] sm:$0xff]  ;;  %v6620_v40 = vld [vmem:[#allocation7_spill] sm:$0xff] }
 0x730   :  { %2723 = vmatprep.subr.bf16.mxu0 %v4579_v48  ;;  %2796 = vmatprep.subr.bf16.mxu1 %v4582_v43  ;;  %v265_v48 = vadd.f32 %v6619_v49, %v5287_v57 }
 0x733   :  { %2724 = vmatpush1.bf16.msra.mxu0 %v4577_v7  ;;  %2797 = vmatpush1.bf16.msra.mxu1 %v4580_v59 }
 0x734   :  { %2725 = vmatprep.subr.bf16.mxu0 %v4585_v3  ;;  %2798 = vmatprep.subr.bf16.mxu1 %v4588_v4 }
 0x737   :  { %2726 = vmatpush1.bf16.msra.mxu0 %v4583_v51  ;;  %2799 = vmatpush1.bf16.msra.mxu1 %v4586_v41 }
 0x738   :  { %2727 = vmatprep.subr.bf16.mxu0 %v4591_v5  ;;  %2800 = vmatprep.subr.bf16.mxu1 %v4594_v52 }
 0x73b   :  { %2728 = vmatpush1.bf16.msra.mxu0 %v4589_v32  ;;  %2801 = vmatpush1.bf16.msra.mxu1 %v4592_v54 }
 0x73c   :  { %2729 = vmatprep.subr.bf16.mxu0 %v4597_v2  ;;  %2802 = vmatprep.subr.bf16.mxu1 %v4600_v23 }
 0x73f   :  { %2730 = vmatpush1.bf16.msra.mxu0 %v4595_v56  ;;  %2803 = vmatpush1.bf16.msra.mxu1 %v4598_v58 }
 0x740   :  { %3118 = vmatprep.subr.bf16.mxu0 %v5892_v61  ;;  %3159 = vmatprep.subr.bf16.mxu1 %v5897_v55 }
 0x742   :  { %2748 = vmatmul.mubr.bf16.vlgmr.msra.gmra.mrb[44].mxu0 %v2497_v60  ;;  %2821 = vmatmul.mubr.bf16.vlgmr.msra.gmra.mrb[44].mxu1 %v2497_v60 }
 0x743   :  { %2757 = vmatprep.mubr.bf16.mxu0 %v6600_v44  ;;  %2830 = vmatprep.mubr.bf16.mxu1 %v6600_v44 }
 0x744   :  { %3119 = vmatpush1.bf16.msra.mxu0 %v5902_v62  ;;  %3160 = vmatpush1.bf16.msra.mxu1 %v5907_v8 }
 0x745   :  { %3120 = vmatprep.subr.bf16.mxu0 %v5916_v9  ;;  %3161 = vmatprep.subr.bf16.mxu1 %v5921_v10 }
 0x748   :  { %3121 = vmatpush1.bf16.msra.mxu0 %v5926_v11  ;;  %3162 = vmatpush1.bf16.msra.mxu1 %v5931_v12 }
 0x749   :  { %3122 = vmatprep.subr.bf16.mxu0 %v5940_v13  ;;  %3163 = vmatprep.subr.bf16.mxu1 %v5945_v15 }
 0x74a   :  { %2758 = vmatmul.mubr.bf16.gmra.mrb[48].mxu0 %v2498_v63  ;;  %2831 = vmatmul.mubr.bf16.gmra.mrb[48].mxu1 %v2498_v63  ;;  %v2533_v63 = vld [vmem:[%s6568_s6] sm:$0xf]  ;;  %s4044_s6 = sshll.u32 %s4976_s16, 4  ;;  %s4045_s6 = int_to_ptr.vmem [resolvable:$true] %s4044_s6 }
 0x74b   :  { %2767 = vmatprep.mubr.bf16.mxu0 %v6600_v44  ;;  %2840 = vmatprep.mubr.bf16.mxu1 %v6600_v44  ;;  %s4949_s17 = scalar_lea.vmem %s4045_s6, 32  ;;  %p4954_p1 = scmp.lt.s32.totalorder %s4045_s6, %s4045_s6 }
 0x74c   :  { %3123 = vmatpush1.bf16.msra.mxu0 %v5950_v16  ;;  %3164 = vmatpush1.bf16.msra.mxu1 %v5955_v17  ;;  %p4950_p0 = scmp.ne.s32.totalorder %s4045_s6, %s4949_s17  ;;  %p4955_p2 = scmp.lt.s32.totalorder %s4949_s17, %s4949_s17 }
 0x74d   :  { %3124 = vmatprep.subr.bf16.mxu0 %v5964_v18  ;;  %3165 = vmatprep.subr.bf16.mxu1 %v5969_v19 }
 0x74e   :  { %p4956_p3 = por %p4955_p2, %p4954_p1 }
 0x750   :  { %3125 = vmatpush1.bf16.msra.mxu0 %v5974_v20  ;;  %3166 = vmatpush1.bf16.msra.mxu1 %v5979_v30  ;;  %p4957_p4 = pnand %p4956_p3, %p4950_p0 }
 0x751   :  { %3126 = vmatprep.subr.bf16.mxu0 %v5988_v42  ;;  %3167 = vmatprep.subr.bf16.mxu1 %v5993_v45 }
 0x752   :  { %2768 = vmatmul.mubr.bf16.gmra.mrb[52].mxu0 %v2499_v53  ;;  %2841 = vmatmul.mubr.bf16.gmra.mrb[52].mxu1 %v2499_v53 }
 0x753   :  { %2777 = vmatprep.mubr.bf16.mxu0 %v6600_v44  ;;  %2850 = vmatprep.mubr.bf16.mxu1 %v6600_v44 }
 0x754   :  { %3127 = vmatpush1.bf16.msra.mxu0 %v5998_v1  ;;  %3168 = vmatpush1.bf16.msra.mxu1 %v6003_v50 }
 0x755   :  { %3128 = vmatprep.subr.bf16.mxu0 %v6010_v21  ;;  %3169 = vmatprep.subr.bf16.mxu1 %v6015_v24 }
 0x758   :  { %3129 = vmatpush1.bf16.msra.mxu0 %v6022_v25  ;;  %3170 = vmatpush1.bf16.msra.mxu1 %v6027_v26 }
 0x759   :  { %3130 = vmatprep.subr.bf16.mxu0 %v6034_v27  ;;  %3171 = vmatprep.subr.bf16.mxu1 %v6039_v28 }
 0x75c   :  { %3131 = vmatpush1.bf16.msra.mxu0 %v6046_v29  ;;  %3172 = vmatpush1.bf16.msra.mxu1 %v6051_v31 }
 0x75d   :  { %3132 = vmatprep.subr.bf16.mxu0 %v6058_v33  ;;  %3173 = vmatprep.subr.bf16.mxu1 %v6063_v35 }
 0x760   :  { %3133 = vmatpush1.bf16.msra.mxu0 %v6070_v34  ;;  %3174 = vmatpush1.bf16.msra.mxu1 %v6075_v6 }
 0x761   :  { %3233 = vmatprep.subr.bf16.mxu0 %v5892_v61  ;;  %3274 = vmatprep.subr.bf16.mxu1 %v5897_v55 }
 0x7f5   :  { %v2416_v43 = vpop.f32.mrb[40].mxu0  ;;  %v2457_v7 = vpop.f32.mrb[40].mxu1 }
 0x7f6   :  { %v2464_v59 = vadd.f32 %v2416_v43, %v190_v37  ;;  %v2466_v3 = vadd.f32 %v2457_v7, %v263_v39  ;;  %v2418_v4 = vpop.f32.mrb[41].mxu0  ;;  %v2459_v51 = vpop.f32.mrb[41].mxu1  ;;  %v6622_v43 = vsub.s32 1, %v6620_v40 }
 0x7f7   :  { %v2465_v41 = vadd.f32 %v2418_v4, %v192_v14  ;;  %v2467_v5 = vadd.f32 %v2459_v51, %v265_v48  ;;  %v2420_v52 = vpop.f32.mrb[42].mxu0  ;;  %v2461_v32 = vpop.f32.mrb[42].mxu1  ;;  %v6621_v14 = vsub.s32 0, %v6620_v40 }
 0x7f8   :  { %v4313_v46 = vmul.f32 -1.442695, %v2464_v59  ;;  %v2421_v54 = vpop.f32.mrb[43].mxu0  ;;  %v2462_v2 = vpop.f32.mrb[43].mxu1  ;;  %v6101_v7 = vrot.slane %v2533_v63, %v6622_v43 }
 0x7f9   :  { %v4314_v0 = vmul.f32 -1.442695, %v2465_v41  ;;  %v4315_v47 = vmul.f32 -1.442695, %v2467_v5  ;;  %v6096_v49 = vrot.slane %v2533_v63, %v6621_v14 }
 0x7fa   :  { %4769 = vpow2.f32 %v4313_v46 }
 0x7fb   :  { %4771 = vpow2.f32 %v4314_v0 }
 0x7fc   :  { %4773 = vpow2.f32 %v4315_v47  ;;  %v6623_v47 = vsub.s32 3, %v6620_v40 }
 0x7fd   :  { %4775 = vtanh.f32 %v2466_v3 }
 0x804   :  { %v4770_v23 = vpop.eup %4769 }
 0x805   :  { %v4772_v56 = vpop.eup %4771  ;;  %v2471_v57 = vadd.f32 1.0, %v4770_v23  ;;  %v6115_v23 = vrot.slane %v2533_v63, %v6623_v47 }
 0x806   :  { %v2477_v58 = vadd.f32 1.0, %v4772_v56  ;;  %v4774_v60 = vpop.eup %4773 }
 0x807   :  { %4777 = vrcp.f32 %v2471_v57  ;;  %v4776_v53 = vpop.eup %4775  ;;  %v2484_v39 = vadd.f32 1.0, %v4774_v60  ;;  %v6624_v60 = vsub.s32 2, %v6620_v40 }
 0x808   :  { %4779 = vrcp.f32 %v2477_v58 }
 0x809   :  { %4781 = vrcp.f32 %v2484_v39 }
 0x811   :  { %v4778_v36 = vpop.eup %4777 }
 0x812   :  { %v4780_v37 = vpop.eup %4779  ;;  %v2488_v38 = vmul.f32 %v4778_v36, %v4776_v53  ;;  %v6124_v53 = vrot.slane %v2533_v63, %v6624_v60 }
 0x813   :  { %v2487_v48 = vmul.f32 %v4780_v37, %v5788_v22  ;;  %v4782_v14 = vpop.eup %4781 }
 0x815   :  { %v2489_v59 = vadd.f32 %v2488_v38, %v2487_v48  ;;  %v2749_v3 = vpop.f32.mrb[44].mxu0  ;;  %v2822_v4 = vpop.f32.mrb[44].mxu1 }
 0x816   :  { %v2750_v51 = vadd.f32 %v2749_v3, %v6096_v49  ;;  %v2751_v41 = vpop.f32.mrb[45].mxu0  ;;  %v2824_v5 = vpop.f32.mrb[45].mxu1  ;;  %v2823_v40 = vadd.f32 %v2822_v4, %v6124_v53 }
 0x817   :  { %4783 = vtanh.f32 %v2489_v59  ;;  %v2752_v52 = vadd.f32 %v2751_v41, %v6101_v7  ;;  %v6105_v32 = vpop.f32.mrb[46].mxu0  ;;  %v6107_v46 = vpop.f32.mrb[46].mxu1  ;;  %v2825_v56 = vadd.f32 %v2824_v5, %v6115_v23 }
 0x818   :  { %v4348_v22 = vmul.f32 -1.442695, %v2750_v51  ;;  %v6109_v54 = vpop.f32.mrb[47].mxu0  ;;  %v6111_v2 = vpop.f32.mrb[47].mxu1 }
 0x819   :  { %v4349_v0 = vmul.f32 -1.442695, %v2752_v52  ;;  %v4350_v3 = vmul.f32 -1.442695, %v2825_v56 }
 0x81a   :  { %4785 = vpow2.f32 %v4348_v22 }
 0x81b   :  { %4787 = vpow2.f32 %v4349_v0 }
 0x81c   :  { %4789 = vpow2.f32 %v4350_v3 }
 0x81d   :  { %v6118_v57 = vpop.f32.mrb[48].mxu0  ;;  %v6120_v58 = vpop.f32.mrb[48].mxu1  ;;  %4791 = vtanh.f32 %v2823_v40 }
 0x81e   :  { %v6126_v36 = vpop.f32.mrb[49].mxu0  ;;  %v6128_v37 = vpop.f32.mrb[49].mxu1 }
 0x81f   :  { %v6130_v38 = vpop.f32.mrb[50].mxu0  ;;  %v6132_v39 = vpop.f32.mrb[50].mxu1 }
 0x820   :  { %6625 = vst [vmem:[#allocation8_spill] sm:$0xff] %v6130_v38  ;;  %6626 = vst [vmem:[#allocation9_spill] sm:$0xff] %v6132_v39  ;;  %v6134_v48 = vpop.f32.mrb[51].mxu0  ;;  %v6136_v43 = vpop.f32.mrb[51].mxu1 }
 0x821   :  { %6627 = vst [vmem:[#allocation10_spill] sm:$0xff] %v6134_v48  ;;  %6628 = vst [vmem:[#allocation11_spill] sm:$0xff] %v6136_v43  ;;  %v4784_v59 = vpop.eup %4783 }
 0x822   :  { %v2491_v51 = vmul.f32 %v4784_v59, %v4782_v14 }
 0x824   :  { %v4786_v63 = vpop.eup %4785  ;;  %v2492_v41 = vpack.c.bf16 %v2491_v51, %v2491_v51 }
 0x825   :  { %v4788_v5 = vpop.eup %4787  ;;  %v2900_v52 = vadd.f32 1.0, %v4786_v63  ;;  %v6139_v22 = vpop.f32.mrb[52].mxu0 }
 0x826   :  { %6629 = vst [vmem:[#allocation12_spill] sm:$0xff] %v6139_v22  ;;  %v6141_v0 = vpop.f32.mrb[52].mxu1  ;;  %v2494_v47 = vrot.slane %v2492_v41, 4  ;;  %v2906_v60 = vadd.f32 1.0, %v4788_v5  ;;  %v6143_v48 = vpop.f32.mrb[53].mxu0 }
 0x827   :  { %6630 = vst [vmem:[#allocation13_spill] sm:$0xff] %v6141_v0  ;;  %6631 = vst [vmem:[#allocation14_spill] sm:$0xff] %v6143_v48  ;;  %v6145_v43 = vpop.f32.mrb[53].mxu1  ;;  %4793 = vrcp.f32 %v2900_v52  ;;  %v6147_v56 = vpop.f32.mrb[54].mxu0 }
 0x828   :  { %6632 = vst [vmem:[#allocation15_spill] sm:$0xff] %v6145_v43  ;;  %6633 = vst [vmem:[#allocation16_spill] sm:$0xff] %v6147_v56  ;;  %v6149_v4 = vpop.f32.mrb[54].mxu1  ;;  %4795 = vrcp.f32 %v2906_v60  ;;  %v6151_v14 = vpop.f32.mrb[55].mxu0 }
 0x829   :  { %6634 = vst [vmem:[#allocation17_spill] sm:$0xff] %v6149_v4  ;;  %2496 = vst [vmem:[#allocation3 + $0x18] sm:$0xf0] %v2494_v47  ;;  %v6153_v59 = vpop.f32.mrb[55].mxu1  ;;  %v4790_v3 = vpop.eup %4789 }
 0x82a   :  { %6635 = vst [vmem:[#allocation18_spill] sm:$0xff] %v6151_v14  ;;  %6636 = vst [vmem:[#allocation19_spill] sm:$0xff] %v6153_v59  ;;  %v4792_v63 = vpop.eup %4791  ;;  %v2913_v52 = vadd.f32 1.0, %v4790_v3 }
 0x82c   :  { %4797 = vrcp.f32 %v2913_v52  ;;  %v2756_v52 = vadd.f32 %v6109_v54, %v6101_v7 }
 0x830   :  { %v2500_v51 = vld [vmem:[#allocation3 + $0x18] sm:$0xff] }
 0x831   :  { %2778 = vmatmul.mubr.bf16.gmra.mrb[56].mxu0 %v2500_v51  ;;  %2851 = vmatmul.mubr.bf16.gmra.mrb[56].mxu1 %v2500_v51  ;;  %v4794_v40 = vpop.eup %4793 }
 0x832   :  { %3150 = vmatprep.mubr.bf16.mxu0 %v6600_v44  ;;  %3191 = vmatprep.mubr.bf16.mxu1 %v6600_v44  ;;  %v4796_v41 = vpop.eup %4795  ;;  %v2917_v5 = vmul.f32 %v4794_v40, %v4792_v63 }
 0x833   :  { %v2916_v4 = vmul.f32 0.0, %v4796_v41  ;;  %v2754_v41 = vadd.f32 %v6105_v32, %v6096_v49 }
 0x835   :  { %v6157_v47 = vadd.f32 %v2917_v5, %v2916_v4  ;;  %v2827_v5 = vadd.f32 %v6107_v46, %v6124_v53 }
 0x836   :  { %v4798_v60 = vpop.eup %4797 }
 0x837   :  { %4799 = vtanh.f32 %v6157_v47 }
 0x841   :  { %v4800_v59 = vpop.eup %4799 }
 0x842   :  { %v2920_v14 = vmul.f32 %v4800_v59, %v4798_v60  ;;  %v2829_v60 = vadd.f32 %v6111_v2, %v6115_v23 }
 0x844   :  { %v2925_v56 = vpack.c.bf16 %v2920_v14, %v2920_v14 }
 0x846   :  { %3151 = vmatmul.mubr.bf16.vlgmr.msra.gmra.mrb[60].mxu0 %v2925_v56  ;;  %3192 = vmatmul.mubr.bf16.vlgmr.msra.gmra.mrb[60].mxu1 %v2925_v56 }
 0x847   :  { %3234 = vmatpush1.bf16.msra.mxu0 %v5902_v62  ;;  %3275 = vmatpush1.bf16.msra.mxu1 %v5907_v8 }
 0x848   :  { %3235 = vmatprep.subr.bf16.mxu0 %v5916_v9  ;;  %3276 = vmatprep.subr.bf16.mxu1 %v5921_v10 }
 0x849   :  { %3265 = vmatprep.mubr.bf16.mxu0 %v6600_v44  ;;  %3306 = vmatprep.mubr.bf16.mxu1 %v6600_v44 }
 0x84b   :  { %3236 = vmatpush1.bf16.msra.mxu0 %v5926_v11  ;;  %3277 = vmatpush1.bf16.msra.mxu1 %v5931_v12 }
 0x84c   :  { %3237 = vmatprep.subr.bf16.mxu0 %v5940_v13  ;;  %3278 = vmatprep.subr.bf16.mxu1 %v5945_v15 }
 0x84f   :  { %3238 = vmatpush1.bf16.msra.mxu0 %v5950_v16  ;;  %3279 = vmatpush1.bf16.msra.mxu1 %v5955_v17 }
 0x850   :  { %3239 = vmatprep.subr.bf16.mxu0 %v5964_v18  ;;  %3280 = vmatprep.subr.bf16.mxu1 %v5969_v19 }
 0x853   :  { %3240 = vmatpush1.bf16.msra.mxu0 %v5974_v20  ;;  %3281 = vmatpush1.bf16.msra.mxu1 %v5979_v30 }
 0x854   :  { %3241 = vmatprep.subr.bf16.mxu0 %v5988_v42  ;;  %3282 = vmatprep.subr.bf16.mxu1 %v5993_v45 }
 0x857   :  { %3242 = vmatpush1.bf16.msra.mxu0 %v5998_v1  ;;  %3283 = vmatpush1.bf16.msra.mxu1 %v6003_v50 }
 0x858   :  { %3243 = vmatprep.subr.bf16.mxu0 %v6010_v21  ;;  %3284 = vmatprep.subr.bf16.mxu1 %v6015_v24 }
 0x85b   :  { %3244 = vmatpush1.bf16.msra.mxu0 %v6022_v25  ;;  %3285 = vmatpush1.bf16.msra.mxu1 %v6027_v26 }
 0x85c   :  { %3245 = vmatprep.subr.bf16.mxu0 %v6034_v27  ;;  %3286 = vmatprep.subr.bf16.mxu1 %v6039_v28 }
 0x85f   :  { %3246 = vmatpush1.bf16.msra.mxu0 %v6046_v29  ;;  %3287 = vmatpush1.bf16.msra.mxu1 %v6051_v31 }
 0x860   :  { %3247 = vmatprep.subr.bf16.mxu0 %v6058_v33  ;;  %3288 = vmatprep.subr.bf16.mxu1 %v6063_v35 }
 0x863   :  { %3248 = vmatpush1.bf16.msra.mxu0 %v6070_v34  ;;  %3289 = vmatpush1.bf16.msra.mxu1 %v6075_v6 }
 0x864   :  { %3348 = vmatprep.subr.bf16.mxu0 %v5892_v61  ;;  %3389 = vmatprep.subr.bf16.mxu1 %v5897_v55 }
 0x904   :  { %v6194_v56 = vpop.f32.mrb[56].mxu0  ;;  %v6196_v4 = vpop.f32.mrb[56].mxu1 }
 0x905   :  { %6637 = vst [vmem:[#allocation21_spill] sm:$0xff] %v6194_v56  ;;  %6638 = vst [vmem:[#allocation20_spill] sm:$0xff] %v6196_v4  ;;  %v6198_v14 = vpop.f32.mrb[57].mxu0  ;;  %v6200_v59 = vpop.f32.mrb[57].mxu1 }
 0x906   :  { %6639 = vst [vmem:[#allocation23_spill] sm:$0xff] %v6198_v14  ;;  %6640 = vst [vmem:[#allocation22_spill] sm:$0xff] %v6200_v59  ;;  %v6202_v3 = vpop.f32.mrb[58].mxu0  ;;  %v6204_v51 = vpop.f32.mrb[58].mxu1 }
 0x907   :  { %6641 = vst [vmem:[#allocation25_spill] sm:$0xff] %v6202_v3  ;;  %6642 = vst [vmem:[#allocation24_spill] sm:$0xff] %v6204_v51  ;;  %v6206_v63 = vpop.f32.mrb[59].mxu0  ;;  %v6208_v40 = vpop.f32.mrb[59].mxu1 }
 0x908   :  { %6643 = vst [vmem:[#allocation26_spill] sm:$0xff] %v6206_v63  ;;  %6644 = vst [vmem:[#allocation7_spill] sm:$0xff] %v6208_v40 }
 0x919   :  { %v3152_v59 = vpop.f32.mrb[60].mxu0  ;;  %v3193_v3 = vpop.f32.mrb[60].mxu1 }
 0x91a   :  { %v3200_v14 = vadd.f32 %v3152_v59, %v2754_v41  ;;  %v3202_v51 = vadd.f32 %v3193_v3, %v2827_v5  ;;  %v3154_v4 = vpop.f32.mrb[61].mxu0  ;;  %v3195_v63 = vpop.f32.mrb[61].mxu1  ;;  %v2762_v41 = vadd.f32 %v6126_v36, %v6101_v7  ;;  %v2835_v5 = vadd.f32 %v6128_v37, %v6115_v23 }
 0x91b   :  { %v3201_v56 = vadd.f32 %v3154_v4, %v2756_v52  ;;  %v3203_v40 = vadd.f32 %v3195_v63, %v2829_v60  ;;  %v3156_v43 = vpop.f32.mrb[62].mxu0  ;;  %v3197_v48 = vpop.f32.mrb[62].mxu1 }
 0x91c   :  { %v4383_v32 = vmul.f32 -1.442695, %v3200_v14  ;;  %v3157_v0 = vpop.f32.mrb[63].mxu0  ;;  %v3198_v22 = vpop.f32.mrb[63].mxu1 }
 0x91d   :  { %v4384_v46 = vmul.f32 -1.442695, %v3201_v56  ;;  %v4385_v54 = vmul.f32 -1.442695, %v3203_v40 }
 0x91e   :  { %4801 = vpow2.f32 %v4383_v32 }
 0x91f   :  { %4803 = vpow2.f32 %v4384_v46 }
 0x920   :  { %4805 = vpow2.f32 %v4385_v54 }
 0x921   :  { %4807 = vtanh.f32 %v3202_v51 }
 0x928   :  { %v4802_v39 = vpop.eup %4801 }
 0x929   :  { %v4804_v38 = vpop.eup %4803  ;;  %v3207_v2 = vadd.f32 1.0, %v4802_v39 }
 0x92a   :  { %v3213_v59 = vadd.f32 1.0, %v4804_v38  ;;  %v4806_v3 = vpop.eup %4805  ;;  %v2760_v38 = vadd.f32 %v6118_v57, %v6096_v49 }
 0x92b   :  { %4809 = vrcp.f32 %v3207_v2  ;;  %v4808_v4 = vpop.eup %4807  ;;  %v3220_v14 = vadd.f32 1.0, %v4806_v3 }
 0x92c   :  { %4811 = vrcp.f32 %v3213_v59 }
 0x92d   :  { %4813 = vrcp.f32 %v3220_v14 }
 0x935   :  { %v4810_v63 = vpop.eup %4809 }
 0x936   :  { %v4812_v43 = vpop.eup %4811  ;;  %v3224_v48 = vmul.f32 %v4810_v63, %v4808_v4 }
 0x937   :  { %v3223_v22 = vmul.f32 %v4812_v43, %v6157_v47  ;;  %v4814_v56 = vpop.eup %4813  ;;  %v2833_v47 = vadd.f32 %v6120_v58, %v6124_v53 }
 0x939   :  { %v6219_v0 = vadd.f32 %v3224_v48, %v3223_v22 }
 0x93b   :  { %4815 = vtanh.f32 %v6219_v0 }
 0x945   :  { %v4816_v39 = vpop.eup %4815 }
 0x946   :  { %v3227_v40 = vmul.f32 %v4816_v39, %v4814_v56 }
 0x948   :  { %v3232_v51 = vpack.c.bf16 %v3227_v40, %v3227_v40 }
 0x94a   :  { %3266 = vmatmul.mubr.bf16.vlgmr.msra.gmra.mrb[64].mxu0 %v3232_v51  ;;  %3307 = vmatmul.mubr.bf16.vlgmr.msra.gmra.mrb[64].mxu1 %v3232_v51 }
 0x94b   :  { %3349 = vmatpush1.bf16.msra.mxu0 %v5902_v62  ;;  %3390 = vmatpush1.bf16.msra.mxu1 %v5907_v8 }
 0x94c   :  { %3350 = vmatprep.subr.bf16.mxu0 %v5916_v9  ;;  %3391 = vmatprep.subr.bf16.mxu1 %v5921_v10 }
 0x94d   :  { %3380 = vmatprep.mubr.bf16.mxu0 %v6600_v44  ;;  %3421 = vmatprep.mubr.bf16.mxu1 %v6600_v44 }
 0x94f   :  { %3351 = vmatpush1.bf16.msra.mxu0 %v5926_v11  ;;  %3392 = vmatpush1.bf16.msra.mxu1 %v5931_v12 }
 0x950   :  { %3352 = vmatprep.subr.bf16.mxu0 %v5940_v13  ;;  %3393 = vmatprep.subr.bf16.mxu1 %v5945_v15 }
 0x953   :  { %3353 = vmatpush1.bf16.msra.mxu0 %v5950_v16  ;;  %3394 = vmatpush1.bf16.msra.mxu1 %v5955_v17 }
 0x954   :  { %3354 = vmatprep.subr.bf16.mxu0 %v5964_v18  ;;  %3395 = vmatprep.subr.bf16.mxu1 %v5969_v19 }
 0x957   :  { %3355 = vmatpush1.bf16.msra.mxu0 %v5974_v20  ;;  %3396 = vmatpush1.bf16.msra.mxu1 %v5979_v30 }
 0x958   :  { %3356 = vmatprep.subr.bf16.mxu0 %v5988_v42  ;;  %3397 = vmatprep.subr.bf16.mxu1 %v5993_v45 }
 0x95b   :  { %3357 = vmatpush1.bf16.msra.mxu0 %v5998_v1  ;;  %3398 = vmatpush1.bf16.msra.mxu1 %v6003_v50 }
 0x95c   :  { %3358 = vmatprep.subr.bf16.mxu0 %v6010_v21  ;;  %3399 = vmatprep.subr.bf16.mxu1 %v6015_v24 }
 0x95f   :  { %3359 = vmatpush1.bf16.msra.mxu0 %v6022_v25  ;;  %3400 = vmatpush1.bf16.msra.mxu1 %v6027_v26 }
 0x960   :  { %3360 = vmatprep.subr.bf16.mxu0 %v6034_v27  ;;  %3401 = vmatprep.subr.bf16.mxu1 %v6039_v28 }
 0x963   :  { %3361 = vmatpush1.bf16.msra.mxu0 %v6046_v29  ;;  %3402 = vmatpush1.bf16.msra.mxu1 %v6051_v31 }
 0x964   :  { %3362 = vmatprep.subr.bf16.mxu0 %v6058_v33  ;;  %3403 = vmatprep.subr.bf16.mxu1 %v6063_v35 }
 0x967   :  { %3363 = vmatpush1.bf16.msra.mxu0 %v6070_v34  ;;  %3404 = vmatpush1.bf16.msra.mxu1 %v6075_v6 }
 0x968   :  { %3463 = vmatprep.subr.bf16.mxu0 %v5892_v61  ;;  %3504 = vmatprep.subr.bf16.mxu1 %v5897_v55 }
 0xa1d   :  { %v3267_v52 = vpop.f32.mrb[64].mxu0  ;;  %v3308_v60 = vpop.f32.mrb[64].mxu1 }
 0xa1e   :  { %v3315_v32 = vadd.f32 %v3267_v52, %v2760_v38  ;;  %v3317_v46 = vadd.f32 %v3308_v60, %v2833_v47  ;;  %v3269_v54 = vpop.f32.mrb[65].mxu0  ;;  %v3310_v2 = vpop.f32.mrb[65].mxu1 }
 0xa1f   :  { %v3316_v59 = vadd.f32 %v3269_v54, %v2762_v41  ;;  %v3318_v3 = vadd.f32 %v3310_v2, %v2835_v5  ;;  %v3271_v4 = vpop.f32.mrb[66].mxu0  ;;  %v3312_v63 = vpop.f32.mrb[66].mxu1 }
 0xa20   :  { %v4386_v57 = vmul.f32 -1.442695, %v3315_v32  ;;  %v3272_v43 = vpop.f32.mrb[67].mxu0  ;;  %v3313_v48 = vpop.f32.mrb[67].mxu1  ;;  %v6647_v4 = vld [vmem:[#allocation10_spill] sm:$0xff] }
 0xa21   :  { %v4387_v58 = vmul.f32 -1.442695, %v3316_v59  ;;  %v4388_v36 = vmul.f32 -1.442695, %v3318_v3  ;;  %v6646_v59 = vld [vmem:[#allocation9_spill] sm:$0xff]  ;;  %v2766_v63 = vadd.f32 %v6647_v4, %v6101_v7 }
 0xa22   :  { %4817 = vpow2.f32 %v4386_v57  ;;  %v2837_v3 = vadd.f32 %v6646_v59, %v6124_v53  ;;  %v6648_v57 = vld [vmem:[#allocation11_spill] sm:$0xff] }
 0xa23   :  { %4819 = vpow2.f32 %v4387_v58  ;;  %v2839_v43 = vadd.f32 %v6648_v57, %v6115_v23 }
 0xa24   :  { %4821 = vpow2.f32 %v4388_v36 }
 0xa25   :  { %4823 = vtanh.f32 %v3317_v46 }
 0xa2c   :  { %v4818_v14 = vpop.eup %4817 }
 0xa2d   :  { %v4820_v22 = vpop.eup %4819  ;;  %v3322_v37 = vadd.f32 1.0, %v4818_v14 }
 0xa2e   :  { %v3328_v56 = vadd.f32 1.0, %v4820_v22  ;;  %v4822_v39 = vpop.eup %4821 }
 0xa2f   :  { %4825 = vrcp.f32 %v3322_v37  ;;  %v4824_v40 = vpop.eup %4823  ;;  %v3335_v41 = vadd.f32 1.0, %v4822_v39 }
 0xa30   :  { %4827 = vrcp.f32 %v3328_v56 }
 0xa31   :  { %4829 = vrcp.f32 %v3335_v41 }
 0xa39   :  { %v4826_v51 = vpop.eup %4825 }
 0xa3a   :  { %v4828_v38 = vpop.eup %4827  ;;  %v3339_v47 = vmul.f32 %v4826_v51, %v4824_v40 }
 0xa3b   :  { %v3338_v5 = vmul.f32 %v4828_v38, %v6219_v0  ;;  %v4830_v60 = vpop.eup %4829  ;;  %v6645_v0 = vld [vmem:[#allocation8_spill] sm:$0xff] }
 0xa3c   :  { %v2764_v2 = vadd.f32 %v6645_v0, %v6096_v49 }
 0xa3d   :  { %v6265_v52 = vadd.f32 %v3339_v47, %v3338_v5 }
 0xa3f   :  { %4831 = vtanh.f32 %v6265_v52 }
 0xa49   :  { %v4832_v32 = vpop.eup %4831 }
 0xa4a   :  { %v3342_v54 = vmul.f32 %v4832_v32, %v4830_v60 }
 0xa4c   :  { %v3347_v46 = vpack.c.bf16 %v3342_v54, %v3342_v54 }
 0xa4e   :  { %3381 = vmatmul.mubr.bf16.vlgmr.msra.gmra.mrb[68].mxu0 %v3347_v46  ;;  %3422 = vmatmul.mubr.bf16.vlgmr.msra.gmra.mrb[68].mxu1 %v3347_v46 }
 0xa4f   :  { %3464 = vmatpush1.bf16.msra.mxu0 %v5902_v62  ;;  %3505 = vmatpush1.bf16.msra.mxu1 %v5907_v8 }
 0xa50   :  { %3465 = vmatprep.subr.bf16.mxu0 %v5916_v9  ;;  %3506 = vmatprep.subr.bf16.mxu1 %v5921_v10 }
 0xa51   :  { %3495 = vmatprep.mubr.bf16.mxu0 %v6600_v44  ;;  %3536 = vmatprep.mubr.bf16.mxu1 %v6600_v44 }
 0xa53   :  { %3466 = vmatpush1.bf16.msra.mxu0 %v5926_v11  ;;  %3507 = vmatpush1.bf16.msra.mxu1 %v5931_v12 }
 0xa54   :  { %3467 = vmatprep.subr.bf16.mxu0 %v5940_v13  ;;  %3508 = vmatprep.subr.bf16.mxu1 %v5945_v15 }
 0xa57   :  { %3468 = vmatpush1.bf16.msra.mxu0 %v5950_v16  ;;  %3509 = vmatpush1.bf16.msra.mxu1 %v5955_v17 }
 0xa58   :  { %3469 = vmatprep.subr.bf16.mxu0 %v5964_v18  ;;  %3510 = vmatprep.subr.bf16.mxu1 %v5969_v19 }
 0xa5b   :  { %3470 = vmatpush1.bf16.msra.mxu0 %v5974_v20  ;;  %3511 = vmatpush1.bf16.msra.mxu1 %v5979_v30 }
 0xa5c   :  { %3471 = vmatprep.subr.bf16.mxu0 %v5988_v42  ;;  %3512 = vmatprep.subr.bf16.mxu1 %v5993_v45 }
 0xa5f   :  { %3472 = vmatpush1.bf16.msra.mxu0 %v5998_v1  ;;  %3513 = vmatpush1.bf16.msra.mxu1 %v6003_v50 }
 0xa60   :  { %3473 = vmatprep.subr.bf16.mxu0 %v6010_v21  ;;  %3514 = vmatprep.subr.bf16.mxu1 %v6015_v24 }
 0xa63   :  { %3474 = vmatpush1.bf16.msra.mxu0 %v6022_v25  ;;  %3515 = vmatpush1.bf16.msra.mxu1 %v6027_v26 }
 0xa64   :  { %3475 = vmatprep.subr.bf16.mxu0 %v6034_v27  ;;  %3516 = vmatprep.subr.bf16.mxu1 %v6039_v28 }
 0xa67   :  { %3476 = vmatpush1.bf16.msra.mxu0 %v6046_v29  ;;  %3517 = vmatpush1.bf16.msra.mxu1 %v6051_v31 }
 0xa68   :  { %3477 = vmatprep.subr.bf16.mxu0 %v6058_v33  ;;  %3518 = vmatprep.subr.bf16.mxu1 %v6063_v35 }
 0xa6b   :  { %3478 = vmatpush1.bf16.msra.mxu0 %v6070_v34  ;;  %3519 = vmatpush1.bf16.msra.mxu1 %v6075_v6 }
 0xa6c   :  { %3578 = vmatprep.subr.bf16.mxu0 %v5892_v61  ;;  %3619 = vmatprep.subr.bf16.mxu1 %v5897_v55 }
 0xb21   :  { %v3382_v48 = vpop.f32.mrb[68].mxu0  ;;  %v3423_v58 = vpop.f32.mrb[68].mxu1 }
 0xb22   :  { %v3430_v36 = vadd.f32 %v3382_v48, %v2764_v2  ;;  %v3432_v14 = vadd.f32 %v3423_v58, %v2837_v3  ;;  %v3384_v22 = vpop.f32.mrb[69].mxu0  ;;  %v3425_v37 = vpop.f32.mrb[69].mxu1 }
 0xb23   :  { %v3431_v56 = vadd.f32 %v3384_v22, %v2766_v63  ;;  %v3433_v39 = vadd.f32 %v3425_v37, %v2839_v43  ;;  %v3386_v40 = vpop.f32.mrb[70].mxu0  ;;  %v3427_v51 = vpop.f32.mrb[70].mxu1 }
 0xb24   :  { %v4389_v38 = vmul.f32 -1.442695, %v3430_v36  ;;  %v3387_v47 = vpop.f32.mrb[71].mxu0  ;;  %v3428_v41 = vpop.f32.mrb[71].mxu1  ;;  %v6651_v40 = vld [vmem:[#allocation14_spill] sm:$0xff] }
 0xb25   :  { %v4390_v5 = vmul.f32 -1.442695, %v3431_v56  ;;  %v4391_v60 = vmul.f32 -1.442695, %v3433_v39  ;;  %v6650_v56 = vld [vmem:[#allocation13_spill] sm:$0xff]  ;;  %v2772_v51 = vadd.f32 %v6651_v40, %v6101_v7 }
 0xb26   :  { %4833 = vpow2.f32 %v4389_v38  ;;  %v2843_v39 = vadd.f32 %v6650_v56, %v6124_v53  ;;  %v6652_v38 = vld [vmem:[#allocation15_spill] sm:$0xff] }
 0xb27   :  { %4835 = vpow2.f32 %v4390_v5  ;;  %v2845_v47 = vadd.f32 %v6652_v38, %v6115_v23 }
 0xb28   :  { %4837 = vpow2.f32 %v4391_v60 }
 0xb29   :  { %4839 = vtanh.f32 %v3432_v14 }
 0xb30   :  { %v4834_v32 = vpop.eup %4833 }
 0xb31   :  { %v4836_v54 = vpop.eup %4835  ;;  %v3437_v46 = vadd.f32 1.0, %v4834_v32 }
 0xb32   :  { %v3443_v0 = vadd.f32 1.0, %v4836_v54  ;;  %v4838_v2 = vpop.eup %4837 }
 0xb33   :  { %4841 = vrcp.f32 %v3437_v46  ;;  %v4840_v59 = vpop.eup %4839  ;;  %v3450_v57 = vadd.f32 1.0, %v4838_v2 }
 0xb34   :  { %4843 = vrcp.f32 %v3443_v0 }
 0xb35   :  { %4845 = vrcp.f32 %v3450_v57 }
 0xb3d   :  { %v4842_v3 = vpop.eup %4841 }
 0xb3e   :  { %v4844_v4 = vpop.eup %4843  ;;  %v3454_v63 = vmul.f32 %v4842_v3, %v4840_v59 }
 0xb3f   :  { %v3453_v43 = vmul.f32 %v4844_v4, %v6265_v52  ;;  %v4846_v58 = vpop.eup %4845  ;;  %v6649_v52 = vld [vmem:[#allocation12_spill] sm:$0xff] }
 0xb40   :  { %v2770_v37 = vadd.f32 %v6649_v52, %v6096_v49 }
 0xb41   :  { %v6311_v48 = vadd.f32 %v3454_v63, %v3453_v43 }
 0xb43   :  { %4847 = vtanh.f32 %v6311_v48 }
 0xb4d   :  { %v4848_v36 = vpop.eup %4847 }
 0xb4e   :  { %v3457_v22 = vmul.f32 %v4848_v36, %v4846_v58 }
 0xb50   :  { %v3462_v14 = vpack.c.bf16 %v3457_v22, %v3457_v22 }
 0xb52   :  { %3496 = vmatmul.mubr.bf16.vlgmr.msra.gmra.mrb[72].mxu0 %v3462_v14  ;;  %3537 = vmatmul.mubr.bf16.vlgmr.msra.gmra.mrb[72].mxu1 %v3462_v14 }
 0xb53   :  { %3579 = vmatpush1.bf16.msra.mxu0 %v5902_v62  ;;  %3620 = vmatpush1.bf16.msra.mxu1 %v5907_v8 }
 0xb54   :  { %3580 = vmatprep.subr.bf16.mxu0 %v5916_v9  ;;  %3621 = vmatprep.subr.bf16.mxu1 %v5921_v10 }
 0xb55   :  { %3610 = vmatprep.mubr.bf16.mxu0 %v6600_v44  ;;  %3651 = vmatprep.mubr.bf16.mxu1 %v6600_v44 }
 0xb57   :  { %3581 = vmatpush1.bf16.msra.mxu0 %v5926_v11  ;;  %3622 = vmatpush1.bf16.msra.mxu1 %v5931_v12 }
 0xb58   :  { %3582 = vmatprep.subr.bf16.mxu0 %v5940_v13  ;;  %3623 = vmatprep.subr.bf16.mxu1 %v5945_v15 }
 0xb5b   :  { %3583 = vmatpush1.bf16.msra.mxu0 %v5950_v16  ;;  %3624 = vmatpush1.bf16.msra.mxu1 %v5955_v17 }
 0xb5c   :  { %3584 = vmatprep.subr.bf16.mxu0 %v5964_v18  ;;  %3625 = vmatprep.subr.bf16.mxu1 %v5969_v19 }
 0xb5f   :  { %3585 = vmatpush1.bf16.msra.mxu0 %v5974_v20  ;;  %3626 = vmatpush1.bf16.msra.mxu1 %v5979_v30 }
 0xb60   :  { %3586 = vmatprep.subr.bf16.mxu0 %v5988_v42  ;;  %3627 = vmatprep.subr.bf16.mxu1 %v5993_v45 }
 0xb63   :  { %3587 = vmatpush1.bf16.msra.mxu0 %v5998_v1  ;;  %3628 = vmatpush1.bf16.msra.mxu1 %v6003_v50 }
 0xb64   :  { %3588 = vmatprep.subr.bf16.mxu0 %v6010_v21  ;;  %3629 = vmatprep.subr.bf16.mxu1 %v6015_v24 }
 0xb67   :  { %3589 = vmatpush1.bf16.msra.mxu0 %v6022_v25  ;;  %3630 = vmatpush1.bf16.msra.mxu1 %v6027_v26 }
 0xb68   :  { %3590 = vmatprep.subr.bf16.mxu0 %v6034_v27  ;;  %3631 = vmatprep.subr.bf16.mxu1 %v6039_v28 }
 0xb6b   :  { %3591 = vmatpush1.bf16.msra.mxu0 %v6046_v29  ;;  %3632 = vmatpush1.bf16.msra.mxu1 %v6051_v31 }
 0xb6c   :  { %3592 = vmatprep.subr.bf16.mxu0 %v6058_v33  ;;  %3633 = vmatprep.subr.bf16.mxu1 %v6063_v35 }
 0xb6f   :  { %3593 = vmatpush1.bf16.msra.mxu0 %v6070_v34  ;;  %3634 = vmatpush1.bf16.msra.mxu1 %v6075_v6 }
 0xb70   :  { %3693 = vmatprep.subr.bf16.mxu0 %v5892_v61  ;;  %3734 = vmatprep.subr.bf16.mxu1 %v5897_v55 }
 0xc25   :  { %v3497_v41 = vpop.f32.mrb[72].mxu0  ;;  %v3538_v5 = vpop.f32.mrb[72].mxu1 }
 0xc26   :  { %v3545_v60 = vadd.f32 %v3497_v41, %v2770_v37  ;;  %v3547_v32 = vadd.f32 %v3538_v5, %v2843_v39  ;;  %v3499_v54 = vpop.f32.mrb[73].mxu0  ;;  %v3540_v61 = vpop.f32.mrb[73].mxu1 }
 0xc27   :  { %v3546_v46 = vadd.f32 %v3499_v54, %v2772_v51  ;;  %v3548_v55 = vadd.f32 %v3540_v61, %v2845_v47  ;;  %v3501_v0 = vpop.f32.mrb[74].mxu0  ;;  %v3542_v2 = vpop.f32.mrb[74].mxu1 }
 0xc28   :  { %v4392_v59 = vmul.f32 -1.442695, %v3545_v60  ;;  %v3502_v3 = vpop.f32.mrb[75].mxu0  ;;  %v3543_v4 = vpop.f32.mrb[75].mxu1 }
 0xc29   :  { %v4393_v63 = vmul.f32 -1.442695, %v3546_v46  ;;  %v4394_v57 = vmul.f32 -1.442695, %v3548_v55 }
 0xc2a   :  { %4849 = vpow2.f32 %v4392_v59 }
 0xc2b   :  { %4851 = vpow2.f32 %v4393_v63  ;;  %v4919_v63 = vld [vmem:[%s6567_s5] ss:$16 sps:$4 sm:$0xff]  }
 0xc2c   :  { %4853 = vpow2.f32 %v4394_v57  ;;  %v4920_v57 = vld [vmem:[%s6567_s5 + $0x8] ss:$16 sps:$4 sm:$0xff]  }
 0xc2d   :  { %4855 = vtanh.f32 %v3547_v32 }
 0xc34   :  { %v4850_v43 = vpop.eup %4849 }
 0xc35   :  { %v4852_v58 = vpop.eup %4851  ;;  %v3552_v36 = vadd.f32 1.0, %v4850_v43  ;;  %v4921_v43 = vld [vmem:[%s6567_s5 + $0x24] ss:$16 sps:$4 sm:$0xff]  }
 0xc36   :  { %v3558_v22 = vadd.f32 1.0, %v4852_v58  ;;  %v4854_v14 = vpop.eup %4853  ;;  %v4922_v58 = vld [vmem:[%s6567_s5 + $0x2c] ss:$16 sps:$4 sm:$0xff]  }
 0xc37   :  { %4857 = vrcp.f32 %v3552_v36  ;;  %v4856_v52 = vpop.eup %4855  ;;  %v3565_v40 = vadd.f32 1.0, %v4854_v14  ;;  %v4923_v36 = vld [vmem:[%s6567_s5 + $0x20] ss:$16 sps:$4 sm:$0xff]   ;;  %v4925_v14 = vld [vmem:[%s6567_s5 + $0x44] ss:$16 sps:$4 sm:$0xff]  }
 0xc38   :  { %4859 = vrcp.f32 %v3558_v22  ;;  %v4924_v22 = vld [vmem:[%s6567_s5 + $0x28] ss:$16 sps:$4 sm:$0xff]  }
 0xc39   :  { %4861 = vrcp.f32 %v3565_v40  ;;  %v4931_v40 = vld [vmem:[%s6567_s5 + $0x60] ss:$16 sps:$4 sm:$0xff]  }
 0xc41   :  { %v4858_v37 = vpop.eup %4857 }
 0xc42   :  { %v4860_v56 = vpop.eup %4859  ;;  %v3569_v39 = vmul.f32 %v4858_v37, %v4856_v52  ;;  %v4926_v52 = vld [vmem:[%s6567_s5 + $0x4c] ss:$16 sps:$4 sm:$0xff]   ;;  %v4928_v37 = vld [vmem:[%s6567_s5 + $0x48] ss:$16 sps:$4 sm:$0xff]  }
 0xc43   :  { %v3568_v51 = vmul.f32 %v4860_v56, %v6311_v48  ;;  %v4862_v47 = vpop.eup %4861  ;;  %v4929_v56 = vld [vmem:[%s6567_s5 + $0x64] ss:$16 sps:$4 sm:$0xff]  }
 0xc45   :  { %v6357_v38 = vadd.f32 %v3569_v39, %v3568_v51  ;;  %v4930_v39 = vld [vmem:[%s6567_s5 + $0x6c] ss:$16 sps:$4 sm:$0xff]   ;;  %v4932_v51 = vld [vmem:[%s6567_s5 + $0x68] ss:$16 sps:$4 sm:$0xff]  }
 0xc47   :  { %4863 = vtanh.f32 %v6357_v38 }
 0xc51   :  { %v4864_v41 = vpop.eup %4863 }
 0xc52   :  { %v3572_v5 = vmul.f32 %v4864_v41, %v4862_v47  ;;  %v4934_v47 = vld [vmem:[%s6567_s5 + $0x8c] ss:$16 sps:$4 sm:$0xff]   ;;  %v4935_v41 = vld [vmem:[%s6567_s5 + $0x80] ss:$16 sps:$4 sm:$0xff]  }
 0xc54   :  { %v3577_v60 = vpack.c.bf16 %v3572_v5, %v3572_v5  ;;  %v4936_v5 = vld [vmem:[%s6567_s5 + $0x88] ss:$16 sps:$4 sm:$0xff]  }
 0xc56   :  { %3611 = vmatmul.mubr.bf16.vlgmr.msra.gmra.mrb[76].mxu0 %v3577_v60  ;;  %3652 = vmatmul.mubr.bf16.vlgmr.msra.gmra.mrb[76].mxu1 %v3577_v60  ;;  %v4937_v60 = vld [vmem:[%s6567_s5 + $0xa4] ss:$16 sps:$4 sm:$0xff]  }
 0xc57   :  { %3694 = vmatpush1.bf16.msra.mxu0 %v5902_v62  ;;  %3735 = vmatpush1.bf16.msra.mxu1 %v5907_v8  ;;  %v4917_v62 = vld [vmem:[%s6567_s5 + $0x4] ss:$16 sps:$4 sm:$0xff]   ;;  %v4918_v8 = vld [vmem:[%s6567_s5 + $0xc] ss:$16 sps:$4 sm:$0xff]  }
 0xc58   :  { %3695 = vmatprep.subr.bf16.mxu0 %v5916_v9  ;;  %3736 = vmatprep.subr.bf16.mxu1 %v5921_v10  ;;  %v6653_v9 = vld [vmem:[#allocation16_spill] sm:$0xff] }
 0xc59   :  { %3725 = vmatprep.mubr.bf16.mxu0 %v6600_v44  ;;  %3766 = vmatprep.mubr.bf16.mxu1 %v6600_v44  ;;  %v2774_v10 = vadd.f32 %v6653_v9, %v6096_v49  ;;  %v4940_v9 = vld [vmem:[%s6567_s5 + $0xa8] ss:$16 sps:$4 sm:$0xff]  }
 0xc5b   :  { %3696 = vmatpush1.bf16.msra.mxu0 %v5926_v11  ;;  %3737 = vmatpush1.bf16.msra.mxu1 %v5931_v12  ;;  %v6654_v11 = vld [vmem:[#allocation17_spill] sm:$0xff] }
 0xc5c   :  { %3697 = vmatprep.subr.bf16.mxu0 %v5940_v13  ;;  %3738 = vmatprep.subr.bf16.mxu1 %v5945_v15  ;;  %v2847_v12 = vadd.f32 %v6654_v11, %v6124_v53  ;;  %v6655_v13 = vld [vmem:[#allocation18_spill] sm:$0xff] }
 0xc5d   :  { %v2776_v15 = vadd.f32 %v6655_v13, %v6101_v7  ;;  %v4942_v11 = vld [vmem:[%s6567_s5 + $0xcc] ss:$16 sps:$4 sm:$0xff]   ;;  %v4944_v13 = vld [vmem:[%s6567_s5 + $0xc8] ss:$16 sps:$4 sm:$0xff]  }
 0xc5f   :  { %3698 = vmatpush1.bf16.msra.mxu0 %v5950_v16  ;;  %3739 = vmatpush1.bf16.msra.mxu1 %v5955_v17  ;;  %v6656_v16 = vld [vmem:[#allocation19_spill] sm:$0xff] }
 0xc60   :  { %3699 = vmatprep.subr.bf16.mxu0 %v5964_v18  ;;  %3740 = vmatprep.subr.bf16.mxu1 %v5969_v19  ;;  %v2849_v17 = vadd.f32 %v6656_v16, %v6115_v23  ;;  %v4946_v16 = vld [vmem:[%s6567_s5 + $0xec] ss:$16 sps:$4 sm:$0xff]  }
 0xc63   :  { %3700 = vmatpush1.bf16.msra.mxu0 %v5974_v20  ;;  %3741 = vmatpush1.bf16.msra.mxu1 %v5979_v30 }
 0xc64   :  { %3701 = vmatprep.subr.bf16.mxu0 %v5988_v42  ;;  %3742 = vmatprep.subr.bf16.mxu1 %v5993_v45 }
 0xc67   :  { %3702 = vmatpush1.bf16.msra.mxu0 %v5998_v1  ;;  %3743 = vmatpush1.bf16.msra.mxu1 %v6003_v50 }
 0xc68   :  { %3703 = vmatprep.subr.bf16.mxu0 %v6010_v21  ;;  %3744 = vmatprep.subr.bf16.mxu1 %v6015_v24 }
 0xc6b   :  { %3704 = vmatpush1.bf16.msra.mxu0 %v6022_v25  ;;  %3745 = vmatpush1.bf16.msra.mxu1 %v6027_v26 }
 0xc6c   :  { %3705 = vmatprep.subr.bf16.mxu0 %v6034_v27  ;;  %3746 = vmatprep.subr.bf16.mxu1 %v6039_v28 }
 0xc6f   :  { %3706 = vmatpush1.bf16.msra.mxu0 %v6046_v29  ;;  %3747 = vmatpush1.bf16.msra.mxu1 %v6051_v31 }
 0xc70   :  { %3707 = vmatprep.subr.bf16.mxu0 %v6058_v33  ;;  %3748 = vmatprep.subr.bf16.mxu1 %v6063_v35 }
 0xc73   :  { %3708 = vmatpush1.bf16.msra.mxu0 %v6070_v34  ;;  %3749 = vmatpush1.bf16.msra.mxu1 %v6075_v6 }
 0xc74   :  { %3808 = vmatprep.subr.bf16.mxu0 %v4917_v62  ;;  %3849 = vmatprep.subr.bf16.mxu1 %v4918_v8  ;;  %v4938_v62 = vld [vmem:[%s6567_s5 + $0xac] ss:$16 sps:$4 sm:$0xff]   ;;  %v4939_v8 = vld [vmem:[%s6567_s5 + $0xa0] ss:$16 sps:$4 sm:$0xff]  }
 0xd29   :  { %v3612_v18 = vpop.f32.mrb[76].mxu0  ;;  %v3653_v19 = vpop.f32.mrb[76].mxu1 }
 0xd2a   :  { %v3660_v20 = vadd.f32 %v3612_v18, %v2774_v10  ;;  %v3662_v30 = vadd.f32 %v3653_v19, %v2847_v12  ;;  %v3614_v42 = vpop.f32.mrb[77].mxu0  ;;  %v3655_v45 = vpop.f32.mrb[77].mxu1  ;;  %v4941_v10 = vld [vmem:[%s6567_s5 + $0xc4] ss:$16 sps:$4 sm:$0xff]   ;;  %v4943_v12 = vld [vmem:[%s6567_s5 + $0xc0] ss:$16 sps:$4 sm:$0xff]  }
 0xd2b   :  { %v3661_v1 = vadd.f32 %v3614_v42, %v2776_v15  ;;  %v3663_v50 = vadd.f32 %v3655_v45, %v2849_v17  ;;  %v3616_v21 = vpop.f32.mrb[78].mxu0  ;;  %v3657_v24 = vpop.f32.mrb[78].mxu1  ;;  %v4945_v15 = vld [vmem:[%s6567_s5 + $0xe4] ss:$16 sps:$4 sm:$0xff]   ;;  %v4947_v17 = vld [vmem:[%s6567_s5 + $0xe0] ss:$16 sps:$4 sm:$0xff]  }
 0xd2c   :  { %v4395_v25 = vmul.f32 -1.442695, %v3660_v20  ;;  %v3617_v26 = vpop.f32.mrb[79].mxu0  ;;  %v3658_v27 = vpop.f32.mrb[79].mxu1  ;;  %v4948_v18 = vld [vmem:[%s6567_s5 + $0xe8] ss:$16 sps:$4 sm:$0xff]  }
 0xd2d   :  { %v4396_v28 = vmul.f32 -1.442695, %v3661_v1  ;;  %v4397_v29 = vmul.f32 -1.442695, %v3663_v50  ;;  %v6657_v19 = vld [vmem:[#allocation21_spill] sm:$0xff]  ;;  %v6659_v45 = vld [vmem:[#allocation23_spill] sm:$0xff] }
 0xd2e   :  { %4865 = vpow2.f32 %v4395_v25  ;;  %v2780_v20 = vadd.f32 %v6657_v19, %v6096_v49  ;;  %v2782_v1 = vadd.f32 %v6659_v45, %v6101_v7  ;;  %v6660_v50 = vld [vmem:[#allocation22_spill] sm:$0xff] }
 0xd2f   :  { %4867 = vpow2.f32 %v4396_v28  ;;  %v2855_v21 = vadd.f32 %v6660_v50, %v6115_v23 }
 0xd30   :  { %4869 = vpow2.f32 %v4397_v29 }
 0xd31   :  { %4871 = vtanh.f32 %v3662_v30  ;;  %v6658_v30 = vld [vmem:[#allocation20_spill] sm:$0xff] }
 0xd32   :  { %v2853_v42 = vadd.f32 %v6658_v30, %v6124_v53 }
 0xd38   :  { %v4866_v31 = vpop.eup %4865 }
 0xd39   :  { %v4868_v33 = vpop.eup %4867  ;;  %v3667_v35 = vadd.f32 1.0, %v4866_v31 }
 0xd3a   :  { %v3673_v34 = vadd.f32 1.0, %v4868_v33  ;;  %v4870_v6 = vpop.eup %4869 }
 0xd3b   :  { %4873 = vrcp.f32 %v3667_v35  ;;  %v4872_v48 = vpop.eup %4871  ;;  %v3680_v46 = vadd.f32 1.0, %v4870_v6 }
 0xd3c   :  { %4875 = vrcp.f32 %v3673_v34 }
 0xd3d   :  { %4877 = vrcp.f32 %v3680_v46 }
 0xd45   :  { %v4874_v32 = vpop.eup %4873 }
 0xd46   :  { %v4876_v54 = vpop.eup %4875  ;;  %v3684_v61 = vmul.f32 %v4874_v32, %v4872_v48 }
 0xd47   :  { %v3683_v55 = vmul.f32 %v4876_v54, %v6357_v38  ;;  %v4878_v2 = vpop.eup %4877  ;;  %v4933_v38 = vld [vmem:[%s6567_s5 + $0x84] ss:$16 sps:$4 sm:$0xff]  }
 0xd49   :  { %v6407_v0 = vadd.f32 %v3684_v61, %v3683_v55 }
 0xd4b   :  { %4879 = vtanh.f32 %v6407_v0 }
 0xd55   :  { %v4880_v59 = vpop.eup %4879 }
 0xd56   :  { %v3687_v3 = vmul.f32 %v4880_v59, %v4878_v2 }
 0xd58   :  { %v3692_v4 = vpack.c.bf16 %v3687_v3, %v3687_v3 }
 0xd5a   :  { %3726 = vmatmul.mubr.bf16.vlgmr.msra.gmra.mrb[80].mxu0 %v3692_v4  ;;  %3767 = vmatmul.mubr.bf16.vlgmr.msra.gmra.mrb[80].mxu1 %v3692_v4 }
 0xd5b   :  { %3809 = vmatpush1.bf16.msra.mxu0 %v4919_v63  ;;  %3850 = vmatpush1.bf16.msra.mxu1 %v4920_v57 }
 0xd5c   :  { %3810 = vmatprep.subr.bf16.mxu0 %v4921_v43  ;;  %3851 = vmatprep.subr.bf16.mxu1 %v4922_v58 }
 0xd5d   :  { %3840 = vmatprep.mubr.bf16.mxu0 %v6600_v44  ;;  %3881 = vmatprep.mubr.bf16.mxu1 %v6600_v44  ;;  %v4927_v44 = vld [vmem:[%s6567_s5 + $0x40] ss:$16 sps:$4 sm:$0xff]  }
 0xd5f   :  { %3811 = vmatpush1.bf16.msra.mxu0 %v4923_v36  ;;  %3852 = vmatpush1.bf16.msra.mxu1 %v4924_v22 }
 0xd60   :  { %3812 = vmatprep.subr.bf16.mxu0 %v4925_v14  ;;  %3853 = vmatprep.subr.bf16.mxu1 %v4926_v52 }
 0xd63   :  { %3813 = vmatpush1.bf16.msra.mxu0 %v4927_v44  ;;  %3854 = vmatpush1.bf16.msra.mxu1 %v4928_v37 }
 0xd64   :  { %3814 = vmatprep.subr.bf16.mxu0 %v4929_v56  ;;  %3855 = vmatprep.subr.bf16.mxu1 %v4930_v39  ;;  %v4649_v56 = vld [vmem:[%s6569_s7] sm:$0xff]   ;;  %v4974_v39 = vmov 0.0  }
 0xd67   :  { %3815 = vmatpush1.bf16.msra.mxu0 %v4931_v40  ;;  %3856 = vmatpush1.bf16.msra.mxu1 %v4932_v51  ;;  %v4651_v40 = vld [vmem:[%s6569_s7 + $0x10] sm:$0xff]   ;;  %v4652_v51 = vld [vmem:[%s6569_s7 + $0x18] sm:$0xff]  }
 0xd68   :  { %3816 = vmatprep.subr.bf16.mxu0 %v4933_v38  ;;  %3857 = vmatprep.subr.bf16.mxu1 %v4934_v47  ;;  %v4653_v38 = vld [vmem:[%s6569_s7 + $0x20] sm:$0xff]   ;;  %v4654_v47 = vld [vmem:[%s6569_s7 + $0x28] sm:$0xff]  }
 0xd6b   :  { %3817 = vmatpush1.bf16.msra.mxu0 %v4935_v41  ;;  %3858 = vmatpush1.bf16.msra.mxu1 %v4936_v5  ;;  %v4655_v41 = vld [vmem:[%s6569_s7 + $0x30] sm:$0xff]   ;;  %v4656_v5 = vld [vmem:[%s6569_s7 + $0x38] sm:$0xff]  }
 0xd6c   :  { %3818 = vmatprep.subr.bf16.mxu0 %v4937_v60  ;;  %3859 = vmatprep.subr.bf16.mxu1 %v4938_v62  ;;  %v6661_v60 = vld [vmem:[#allocation25_spill] sm:$0xff] }
 0xd6d   :  { %v2784_v62 = vadd.f32 %v6661_v60, %v6096_v49 }
 0xd6f   :  { %3819 = vmatpush1.bf16.msra.mxu0 %v4939_v8  ;;  %3860 = vmatpush1.bf16.msra.mxu1 %v4940_v9  ;;  %v6662_v8 = vld [vmem:[#allocation24_spill] sm:$0xff] }
 0xd70   :  { %3820 = vmatprep.subr.bf16.mxu0 %v4941_v10  ;;  %3861 = vmatprep.subr.bf16.mxu1 %v4942_v11  ;;  %v2857_v9 = vadd.f32 %v6662_v8, %v6124_v53  ;;  %v6663_v10 = vld [vmem:[#allocation26_spill] sm:$0xff] }
 0xd71   :  { %v2786_v11 = vadd.f32 %v6663_v10, %v6101_v7 }
 0xd73   :  { %3821 = vmatpush1.bf16.msra.mxu0 %v4943_v12  ;;  %3862 = vmatpush1.bf16.msra.mxu1 %v4944_v13  ;;  %v6664_v12 = vld [vmem:[#allocation7_spill] sm:$0xff] }
 0xd74   :  { %3822 = vmatprep.subr.bf16.mxu0 %v4945_v15  ;;  %3863 = vmatprep.subr.bf16.mxu1 %v4946_v16  ;;  %v2859_v13 = vadd.f32 %v6664_v12, %v6115_v23 }
 0xd77   :  { %3823 = vmatpush1.bf16.msra.mxu0 %v4947_v17  ;;  %3864 = vmatpush1.bf16.msra.mxu1 %v4948_v18 }
 0xd78   :  { %4423 = vmatprep.subr.bf16.mxu0 %v4974_v39 }
 0xe2d   :  { %v3727_v24 = vpop.f32.mrb[80].mxu0  ;;  %v3768_v25 = vpop.f32.mrb[80].mxu1 }
 0xe2e   :  { %v3775_v26 = vadd.f32 %v3727_v24, %v2780_v20  ;;  %v3777_v27 = vadd.f32 %v3768_v25, %v2853_v42  ;;  %v3729_v28 = vpop.f32.mrb[81].mxu0  ;;  %v3770_v29 = vpop.f32.mrb[81].mxu1 }
 0xe2f   :  { %v3776_v31 = vadd.f32 %v3729_v28, %v2782_v1  ;;  %v3778_v33 = vadd.f32 %v3770_v29, %v2855_v21  ;;  %v3731_v35 = vpop.f32.mrb[82].mxu0  ;;  %v3772_v34 = vpop.f32.mrb[82].mxu1 }
 0xe30   :  { %v4398_v6 = vmul.f32 -1.442695, %v3775_v26  ;;  %v3732_v48 = vpop.f32.mrb[83].mxu0  ;;  %v3773_v32 = vpop.f32.mrb[83].mxu1 }
 0xe31   :  { %v4399_v54 = vmul.f32 -1.442695, %v3776_v31  ;;  %v4400_v61 = vmul.f32 -1.442695, %v3778_v33 }
 0xe32   :  { %4881 = vpow2.f32 %v4398_v6 }
 0xe33   :  { %4883 = vpow2.f32 %v4399_v54 }
 0xe34   :  { %4885 = vpow2.f32 %v4400_v61 }
 0xe35   :  { %4887 = vtanh.f32 %v3777_v27 }
 0xe3c   :  { %v4882_v46 = vpop.eup %4881 }
 0xe3d   :  { %v4884_v55 = vpop.eup %4883  ;;  %v3782_v2 = vadd.f32 1.0, %v4882_v46  ;;  %v4404_v46 = vld [vmem:[%s6570_s8] ss:$0 sm:$0xff] }
 0xe3e   :  { %v3788_v59 = vadd.f32 1.0, %v4884_v55  ;;  %v4886_v3 = vpop.eup %4885 }
 0xe3f   :  { %4889 = vrcp.f32 %v3782_v2  ;;  %v4888_v4 = vpop.eup %4887  ;;  %v3795_v58 = vadd.f32 1.0, %v4886_v3 }
 0xe40   :  { %4891 = vrcp.f32 %v3788_v59 }
 0xe41   :  { %4893 = vrcp.f32 %v3795_v58 }
 0xe49   :  { %v4890_v63 = vpop.eup %4889 }
 0xe4a   :  { %v4892_v57 = vpop.eup %4891  ;;  %v3799_v43 = vmul.f32 %v4890_v63, %v4888_v4 }
 0xe4b   :  { %v3798_v36 = vmul.f32 %v4892_v57, %v6407_v0  ;;  %v4894_v14 = vpop.eup %4893  ;;  %v4650_v0 = vld [vmem:[%s6569_s7 + $0x8] sm:$0xff]  }
 0xe4d   :  { %v6511_v22 = vadd.f32 %v3799_v43, %v3798_v36 }
 0xe4f   :  { %4895 = vtanh.f32 %v6511_v22 }
 0xe59   :  { %v4896_v52 = vpop.eup %4895 }
 0xe5a   :  { %v3802_v44 = vmul.f32 %v4896_v52, %v4894_v14 }
 0xe5c   :  { %v3807_v37 = vpack.c.bf16 %v3802_v44, %v3802_v44 }
 0xe5e   :  { %3841 = vmatmul.mubr.bf16.vlgmr.msra.gmra.mrb[84].mxu0 %v3807_v37  ;;  %3882 = vmatmul.mubr.bf16.vlgmr.msra.gmra.mrb[84].mxu1 %v3807_v37 }
 0xe5f   :  { %4424 = vmatpush3.bf16.msra.mxu0 %v4649_v56  ;;  %4439 = vmatprep.mubr.msk.bf16.mxu0 %vm4975_vm1, %v4974_v39 }
 0xe60   :  { %4425 = vmatprep.subr.bf16.mxu0 %v4974_v39 }
 0xe63   :  { %4426 = vmatpush3.bf16.msra.mxu0 %v4650_v0 }
 0xe64   :  { %4427 = vmatprep.subr.bf16.mxu0 %v4974_v39 }
 0xe67   :  { %4428 = vmatpush3.bf16.msra.mxu0 %v4651_v40 }
 0xe68   :  { %4429 = vmatprep.subr.bf16.mxu0 %v4974_v39 }
 0xe6b   :  { %4430 = vmatpush3.bf16.msra.mxu0 %v4652_v51 }
 0xe6c   :  { %4431 = vmatprep.subr.bf16.mxu0 %v4974_v39 }
 0xe6f   :  { %4432 = vmatpush3.bf16.msra.mxu0 %v4653_v38 }
 0xe70   :  { %4433 = vmatprep.subr.bf16.mxu0 %v4974_v39 }
 0xe73   :  { %4434 = vmatpush3.bf16.msra.mxu0 %v4654_v47 }
 0xe74   :  { %4435 = vmatprep.subr.bf16.mxu0 %v4974_v39 }
 0xe77   :  { %4436 = vmatpush3.bf16.msra.mxu0 %v4655_v41 }
 0xe78   :  { %4437 = vmatprep.subr.bf16.mxu0 %v4974_v39 }
 0xe7b   :  { %4438 = vmatpush3.bf16.msra.mxu0 %v4656_v5 }
 0xf31   :  { %v3842_v15 = vpop.f32.mrb[84].mxu0  ;;  %v3883_v16 = vpop.f32.mrb[84].mxu1 }
 0xf32   :  { %v3890_v17 = vadd.f32 %v3842_v15, %v2784_v62  ;;  %v3892_v18 = vadd.f32 %v3883_v16, %v2857_v9  ;;  %v3844_v19 = vpop.f32.mrb[85].mxu0  ;;  %v3885_v20 = vpop.f32.mrb[85].mxu1 }
 0xf33   :  { %v3891_v30 = vadd.f32 %v3844_v19, %v2786_v11  ;;  %v3893_v42 = vadd.f32 %v3885_v20, %v2859_v13  ;;  %v3846_v45 = vpop.f32.mrb[86].mxu0  ;;  %v3887_v1 = vpop.f32.mrb[86].mxu1 }
 0xf34   :  { %v4401_v49 = vmul.f32 -1.442695, %v3890_v17  ;;  %v3847_v50 = vpop.f32.mrb[87].mxu0  ;;  %v3888_v21 = vpop.f32.mrb[87].mxu1 }
 0xf35   :  { %v4402_v53 = vmul.f32 -1.442695, %v3891_v30  ;;  %v4403_v7 = vmul.f32 -1.442695, %v3893_v42 }
 0xf36   :  { %4897 = vpow2.f32 %v4401_v49 }
 0xf37   :  { %4899 = vpow2.f32 %v4402_v53 }
 0xf38   :  { %4901 = vpow2.f32 %v4403_v7 }
 0xf39   :  { %4903 = vtanh.f32 %v3892_v18 }
 0xf40   :  { %v4898_v24 = vpop.eup %4897 }
 0xf41   :  { %v4900_v25 = vpop.eup %4899  ;;  %v3897_v23 = vadd.f32 1.0, %v4898_v24 }
 0xf42   :  { %v3903_v26 = vadd.f32 1.0, %v4900_v25  ;;  %v4902_v27 = vpop.eup %4901 }
 0xf43   :  { %4905 = vrcp.f32 %v3897_v23  ;;  %v4904_v28 = vpop.eup %4903  ;;  %v3910_v35 = vadd.f32 1.0, %v4902_v27 }
 0xf44   :  { %4907 = vrcp.f32 %v3903_v26 }
 0xf45   :  { %4909 = vrcp.f32 %v3910_v35 }
 0xf4d   :  { %v4906_v29 = vpop.eup %4905 }
 0xf4e   :  { %v4908_v31 = vpop.eup %4907  ;;  %v3914_v33 = vmul.f32 %v4906_v29, %v4904_v28 }
 0xf4f   :  { %v3913_v34 = vmul.f32 %v4908_v31, %v6511_v22  ;;  %v4910_v48 = vpop.eup %4909 }
 0xf51   :  { %v3915_v6 = vadd.f32 %v3914_v33, %v3913_v34 }
 0xf53   :  { %4911 = vtanh.f32 %v3915_v6 }
 0xf5d   :  { %v4912_v32 = vpop.eup %4911 }
 0xf5e   :  { %v3917_v54 = vmul.f32 %v4912_v32, %v4910_v48 }
 0xf60   :  { %v3918_v61 = vpack.c.bf16 %v3917_v54, %v3917_v54 }
 0xf62   :  { %4440 = vmatmul.mubr.bf16.vlgmr.msra.gmra.mrb[88].mxu0 %v3918_v61 }
0x1035   :  { %v4024_v55 = vpop.f32.mrb[88].mxu0 }
0x1036   :  { %v4025_v2 = vadd.f32 %v4404_v46, %v4024_v55  ;;  %v4441_v59 = vpop.f32.mrb[89].mxu0 }
0x1037   :  { %v4027_v3 = vpop.f32.mrb[90].mxu0 }
0x1038   :  { %v4413_v4 = vmul.f32 -1.442695, %v4025_v2  ;;  %v4442_v63 = vpop.f32.mrb[91].mxu0 }
0x103a   :  { %4913 = vpow2.f32 %v4413_v4 }
0x1044   :  { %v4914_v57 = vpop.eup %4913 }
0x1045   :  { %v4033_v43 = vadd.f32 1.0, %v4914_v57 }
0x1047   :  { %4915 = vrcp.f32 %v4033_v43 }
0x1051   :  { %v4916_v58 = vpop.eup %4915 }
0x1052   :  { %4037 = vst.msk [vmem:[#allocation4] sm:$0x3] %vm4036_vm2, %v4916_v58 }
0x1053   :  { %4960 = shalt.err (!%p4957_p4)
}
0x1054   :  { %s4961_s19 = scalar_lea.hbm %s6571_s9, 32 }
0x1055   :  { %p4962_p5 = scmp.ne.s32.totalorder %s6571_s9, %s4961_s19  ;;  %p4965_p6 = scmp.lt.u32.totalorder %s4961_s19, %s6571_s9 }
0x1057   :  { %p4967_p7 = pnand %p4965_p6, %p4962_p5 }
0x1059   :  { %4970 = shalt.err (!%p4967_p7)
}
0x105a   :  { %4047 = dma.vmem_to_hbm [thread:$0]  %s4045_s6, 32, %s6571_s9, [#allocation5]  }
0x105b   :  { %4971 = dma.done.wait [#allocation5], 32  }
0x105c   :  { %4972 = vsyncadd [#allocation5], 4294967264 }
0x105d   :  { %4051 = vsyncpa [#allocation5], 1 }

</bundles_post_ra>
